<compile_context>
chip_gen: v6e
topology: v6e:2x2x1
jax: 0.10.0
libtpu: 0.0.40
codegen_flags: <defaults>
</compile_context>

<pallas_src>
import functools

import jax
import jax.numpy as jnp
from jax.experimental import pallas as pl
from jax.experimental.pallas import tpu as pltpu

STACK = 4
CONV_OUT = 64 * 7 * 7          # 3136: conv feature size for 84x84 inputs
FEAT_PAD = 3200                # CONV_OUT zero-padded to a multiple of 128 lanes


# ---------------------------------------------------------------------------
# Pallas kernel: out = [relu](x @ w + b), tiled over (M, N, K)
# ---------------------------------------------------------------------------
def _matmul_bias_kernel(x_ref, w_ref, b_ref, o_ref, acc_ref, *, relu):
    k = pl.program_id(2)

    @pl.when(k == 0)
    def _():
        acc_ref[...] = jnp.zeros_like(acc_ref)

    x = x_ref[...]
    if x.dtype != jnp.bfloat16:
        x = x.astype(jnp.bfloat16)
    acc_ref[...] += jnp.dot(x, w_ref[...], preferred_element_type=jnp.float32)

    @pl.when(k == pl.num_programs(2) - 1)
    def _():
        out = acc_ref[...] + b_ref[...]
        if relu:
            out = jnp.maximum(out, 0.0)
        o_ref[...] = out.astype(o_ref.dtype)


def _vmem_limit_bytes(tm, tk, tn, x_bytes, o_bytes):
    # double-buffered input / bf16 weight / output tiles + bias + f32 acc scratch
    need = (2 * tm * tk * x_bytes + 2 * tk * tn * 2 + 2 * tn * 4
            + 2 * tm * tn * o_bytes + tm * tn * 4)
    need = int(need * 1.3) + (4 << 20)
    # Never request less than the footprint (previous version's bug); tiles
    # are chosen so this stays far inside v7x's 64 MiB physical VMEM.
    assert need <= (56 << 20), f"tile footprint too large for VMEM: {need}"
    return max(need, 32 << 20)


def matmul_bias(x, w, b, *, relu=False, block_m=1024, block_n=None,
                block_k=None, out_dtype=jnp.bfloat16):
    """out = [relu](x @ w + b); w is bf16 [K, N], x is bf16 [M, K]."""
    M, K = x.shape
    K2, N = w.shape
    assert K == K2 and b.shape == (N,)

    # block_m=1024 balances v5e/v6e's preference for big M tiles against
    # keeping >=2 M blocks for v7x's two TensorCores at training batch sizes.
    tm = min(block_m, M)
    tn = N if block_n is None else min(block_n, N)
    tk = K if block_k is None else min(block_k, K)
    assert N % tn == 0 and K % tk == 0, "N/K tiling must be exact"
    grid = (pl.cdiv(M, tm), N // tn, K // tk)

    kernel = functools.partial(_matmul_bias_kernel, relu=relu)
    return pl.pallas_call(
        kernel,
        out_shape=jax.ShapeDtypeStruct((M, N), out_dtype),
        grid=grid,
        in_specs=[
            pl.BlockSpec((tm, tk), lambda i, j, k: (i, k)),
            pl.BlockSpec((tk, tn), lambda i, j, k: (k, j)),
            pl.BlockSpec((1, tn), lambda i, j, k: (0, j)),
        ],
        out_specs=pl.BlockSpec((tm, tn), lambda i, j, k: (i, j)),
        scratch_shapes=[pltpu.VMEM((tm, tn), jnp.float32)],
        compiler_params=pltpu.CompilerParams(
            dimension_semantics=("parallel", "parallel", "arbitrary"),
            vmem_limit_bytes=_vmem_limit_bytes(
                tm, tk, tn, x.dtype.itemsize, jnp.dtype(out_dtype).itemsize),
        ),
    )(x, w, b.reshape(1, N).astype(jnp.float32))


# ---------------------------------------------------------------------------
# Plain-JAX glue: im2col on NHWC activations (VALID padding, stride s), bf16
# ---------------------------------------------------------------------------
def im2col_nhwc(x, kh, kw, stride):
    B, H, W, C = x.shape
    Ho = (H - kh) // stride + 1
    Wo = (W - kw) // stride + 1
    cols = []
    for i in range(kh):
        for j in range(kw):
            cols.append(x[:, i:i + stride * Ho:stride, j:j + stride * Wo:stride, :])
    p = jnp.stack(cols, axis=3)                   # [B, Ho, Wo, kh*kw, C]
    return p.reshape(B * Ho * Wo, kh * kw * C), Ho, Wo


# ---------------------------------------------------------------------------
# Deterministic parameter init (kaiming_normal fan_in, relu gain; bias=0),
# pre-laid-out for the NHWC / fused-head bf16 matmul pipeline.
# ---------------------------------------------------------------------------
def _kaiming(key, shape, fan_in):
    std = (2.0 / fan_in) ** 0.5
    return jax.random.normal(key, shape, dtype=jnp.float32) * std


def init_params(key, n_actions):
    ks = jax.random.split(key, 7)

    # Raw weights in PyTorch layout / f32 (kept for the f32 reference check).
    raw = {
        "c1w": _kaiming(ks[0], (32, STACK, 8, 8), STACK * 8 * 8),
        "c1b": jnp.zeros((32,), jnp.float32),
        "c2w": _kaiming(ks[1], (64, 32, 4, 4), 32 * 4 * 4),
        "c2b": jnp.zeros((64,), jnp.float32),
        "c3w": _kaiming(ks[2], (64, 64, 3, 3), 64 * 3 * 3),
        "c3b": jnp.zeros((64,), jnp.float32),
        "v1w": _kaiming(ks[3], (512, CONV_OUT), CONV_OUT),
        "v1b": jnp.zeros((512,), jnp.float32),
        "v2w": _kaiming(ks[4], (1, 512), 512),
        "v2b": jnp.zeros((1,), jnp.float32),
        "a1w": _kaiming(ks[5], (512, CONV_OUT), CONV_OUT),
        "a1b": jnp.zeros((512,), jnp.float32),
        "a2w": _kaiming(ks[6], (n_actions, 512), 512),
        "a2b": jnp.zeros((n_actions,), jnp.float32),
    }

    def conv_mat(w, scale=1.0):
        # PyTorch [Cout, Cin, kh, kw] -> matmul layout [(kh,kw,Cin), Cout], bf16.
        cout, cin, kh, kw = w.shape
        m = w.transpose(2, 3, 1, 0).reshape(kh * kw * cin, cout) * scale
        return m.astype(jnp.bfloat16)

    # Row permutation mapping the NHWC flatten order (h,w,c) of the conv
    # features onto PyTorch's (c,h,w) flatten order: perm[k_hwc] = k_chw.
    perm = jnp.arange(CONV_OUT).reshape(64, 7, 7).transpose(1, 2, 0).reshape(-1)

    # Fused first FC of both dueling heads: [3136,1024] = [val1 | adv1], rows
    # permuted to NHWC order and K zero-padded 3136 -> 3200 so the K grid axis
    # tiles in 128-lane multiples.
    head1 = jnp.concatenate([raw["v1w"].T[perm], raw["a1w"].T[perm]], axis=1)
    head1 = jnp.pad(head1, ((0, FEAT_PAD - CONV_OUT), (0, 0)))

    # Second FC of both heads with the dueling combine folded in (it is all
    # linear):  q = hidden @ q_w + q_b, where
    #   q_w[:512, j] = val2_w                       (v contributes to every action)
    #   q_w[512:, j] = adv2_w[:, j] - mean_j' adv2_w[:, j']
    q_w = jnp.concatenate([
        jnp.broadcast_to(raw["v2w"].T, (512, n_actions)),
        (raw["a2w"] - raw["a2w"].mean(axis=0, keepdims=True)).T,
    ], axis=0)
    q_b = raw["v2b"][0] + raw["a2b"] - raw["a2b"].mean()

    params = {
        "conv1_w": conv_mat(raw["c1w"], scale=1.0 / 255.0),   # /255 folded in
        "conv1_b": raw["c1b"],
        "conv2_w": conv_mat(raw["c2w"]),
        "conv2_b": raw["c2b"],
        "conv3_w": conv_mat(raw["c3w"]),
        "conv3_b": raw["c3b"],
        "head1_w": head1.astype(jnp.bfloat16),                # [3200, 1024]
        "head1_b": jnp.concatenate([raw["v1b"], raw["a1b"]]),
        "q_w": q_w.astype(jnp.bfloat16),                      # [1024, nA]
        "q_b": q_b,
    }
    return params, raw


# ---------------------------------------------------------------------------
# Forward pass (matches DQN.forward: x/255 -> conv stack -> dueling combine)
# ---------------------------------------------------------------------------
def dqn_forward(params, x_u8):
    B = x_u8.shape[0]
    # NCHW uint8 -> NHWC bf16 once; /255 is folded into conv1's weights.
    x = x_u8.transpose(0, 2, 3, 1).astype(jnp.bfloat16)

    # Conv1: 4 -> 32, k=8, s=4, ReLU      (84 -> 20)
    cols, Ho, Wo = im2col_nhwc(x, 8, 8, 4)
    x = matmul_bias(cols, params["conv1_w"], params["conv1_b"],
                    relu=True).reshape(B, Ho, Wo, 32)

    # Conv2: 32 -> 64, k=4, s=2, ReLU     (20 -> 9)
    cols, Ho, Wo = im2col_nhwc(x, 4, 4, 2)
    x = matmul_bias(cols, params["conv2_w"], params["conv2_b"],
                    relu=True).reshape(B, Ho, Wo, 64)

    # Conv3: 64 -> 64, k=3, s=1, ReLU     (9 -> 7)
    cols, Ho, Wo = im2col_nhwc(x, 3, 3, 1)
    x = matmul_bias(cols, params["conv3_w"], params["conv3_b"],
                    relu=True).reshape(B, Ho, Wo, 64)

    # NHWC flatten (head1_w rows were permuted at init to keep PyTorch
    # (C,H,W)-flatten semantics); zero-pad K to the 128-lane multiple that the
    # head1 K grid expects.
    feat = x.reshape(B, -1)
    feat = jnp.pad(feat, ((0, 0), (0, FEAT_PAD - feat.shape[1])))

    # Fused dueling first FC -> [B, 1024] bf16 hidden.  K streams in 640-wide
    # chunks (weight DMA overlaps the MXU); N splits 2x512 so both v7x
    # TensorCores work even when M (=batch) is a single block.
    hidden = matmul_bias(feat, params["head1_w"], params["head1_b"],
                         relu=True, block_m=256, block_n=512, block_k=640)

    # Second FC with v + a - mean(a) folded into the weights -> Q-values.
    q = matmul_bias(hidden, params["q_w"], params["q_b"],
                    relu=False, out_dtype=jnp.float32)
    return q


# ---------------------------------------------------------------------------
# Pure-JAX f32 reference (mirrors the PyTorch module exactly)
# ---------------------------------------------------------------------------
def dqn_forward_ref(raw, x_u8):
    x = x_u8.astype(jnp.float32) / 255.0

    def conv(x, w, b, s):
        y = jax.lax.conv_general_dilated(
            x, w, window_strides=(s, s), padding="VALID",
            dimension_numbers=("NCHW", "OIHW", "NCHW"))
        return jax.nn.relu(y + b[None, :, None, None])

    x = conv(x, raw["c1w"], raw["c1b"], 4)
    x = conv(x, raw["c2w"], raw["c2b"], 2)
    x = conv(x, raw["c3w"], raw["c3b"], 1)
    feat = x.reshape(x.shape[0], -1)                     # (C,H,W) flatten
    v = jax.nn.relu(feat @ raw["v1w"].T + raw["v1b"]) @ raw["v2w"].T + raw["v2b"]
    a = jax.nn.relu(feat @ raw["a1w"].T + raw["a1b"]) @ raw["a2w"].T + raw["a2b"]
    return v + a - a.mean(axis=1, keepdims=True)


if __name__ == "__main__":
    n_actions = 6
    batch = 2            # small batch; 84x84 spatial is fixed by Linear(conv_out, 512)

    key = jax.random.PRNGKey(0)
    pkey, xkey = jax.random.split(key)
    params, raw = init_params(pkey, n_actions)

    x = jax.random.randint(
        xkey, (batch, STACK, 84, 84), 0, 256, dtype=jnp.int32).astype(jnp.uint8)

    q = jax.block_until_ready(jax.jit(dqn_forward)(params, x))
    assert q.shape == (batch, n_actions) and q.dtype == jnp.float32

    # Tolerance-check the bf16 Pallas pipeline against the f32 JAX reference.
    q_ref = jax.block_until_ready(jax.jit(dqn_forward_ref)(raw, x))
    err = float(jnp.max(jnp.abs(q - q_ref)))
    scale = float(jnp.max(jnp.abs(q_ref)))
    assert err <= 0.05 * scale + 0.02, (err, scale)

    print("KERNEL_OK")
</pallas_src>

<mosaic_0001>
module attributes {stable_mosaic.version = 11 : i64} {
  func.func @_matmul_bias_kernel(%arg0: i32, %arg1: i32, %arg2: i32, %arg3: memref<800x256xbf16, #tpu.memory_space<vmem>>, %arg4: memref<256x32xbf16, #tpu.memory_space<vmem>>, %arg5: memref<1x32xf32, #tpu.memory_space<vmem>>, %arg6: memref<800x32xbf16, #tpu.memory_space<vmem>>, %arg7: memref<800x32xf32, #tpu.memory_space<vmem>>) attributes {dimension_semantics = [#tpu.dimension_semantics<parallel>, #tpu.dimension_semantics<parallel>, #tpu.dimension_semantics<arbitrary>], iteration_bounds = array<i64: 1, 1, 1>, scalar_prefetch = 0 : i64, scratch_operands = 1 : i64, tpu.core_type = #tpu.core_type<tc>, window_params = [{transform_indices = @transform_0, window_bounds = array<i64: 800, 256>}, {transform_indices = @transform_1, window_bounds = array<i64: 256, 32>}, {transform_indices = @transform_2, window_bounds = array<i64: 1, 32>}, {transform_indices = @transform_3, window_bounds = array<i64: 800, 32>}]} {
    %c0_i32 = arith.constant 0 : i32
    %0 = arith.cmpi eq, %arg2, %c0_i32 : i32
    %1 = arith.extui %0 : i1 to i32
    %c0_i32_0 = arith.constant 0 : i32
    %2 = arith.cmpi ne, %1, %c0_i32_0 : i32
    scf.if %2 {
      %cst_10 = arith.constant 0.000000e+00 : f32
      %12 = vector.broadcast %cst_10 : f32 to vector<800x32xf32>
      %c0_11 = arith.constant 0 : index
      %c0_12 = arith.constant 0 : index
      %13 = vector.load %arg7[%c0_11, %c0_12] : memref<800x32xf32, #tpu.memory_space<vmem>>, vector<800x32xf32>
      tpu.vector_store %arg7[%c0_11, %c0_12], %12 {strides = array<i32>} : memref<800x32xf32, #tpu.memory_space<vmem>>, vector<800x32xf32>,
    } else {
    }
    %c0 = arith.constant 0 : index
    %c0_1 = arith.constant 0 : index
    %3 = vector.load %arg3[%c0, %c0_1] : memref<800x256xbf16, #tpu.memory_space<vmem>>, vector<800x256xbf16>
    %c0_2 = arith.constant 0 : index
    %c0_3 = arith.constant 0 : index
    %4 = vector.load %arg7[%c0_2, %c0_3] : memref<800x32xf32, #tpu.memory_space<vmem>>, vector<800x32xf32>
    %c0_4 = arith.constant 0 : index
    %c0_5 = arith.constant 0 : index
    %5 = vector.load %arg4[%c0_4, %c0_5] : memref<256x32xbf16, #tpu.memory_space<vmem>>, vector<256x32xbf16>
    %cst = arith.constant dense<0.000000e+00> : vector<800x32xf32>
    %6 = tpu.matmul %3, %5, %cst {dimension_numbers = #tpu.dot_dimension_numbers<[1], [0], [0], [1], [0, 0, 1, 1], [], []>} : vector<800x256xbf16>, vector<256x32xbf16>, vector<800x32xf32> -> vector<800x32xf32>
    %7 = arith.addf %4, %6 : vector<800x32xf32>
    %c0_6 = arith.constant 0 : index
    %c0_7 = arith.constant 0 : index
    %8 = vector.load %arg7[%c0_6, %c0_7] : memref<800x32xf32, #tpu.memory_space<vmem>>, vector<800x32xf32>
    tpu.vector_store %arg7[%c0_6, %c0_7], %7 {strides = array<i32>} : memref<800x32xf32, #tpu.memory_space<vmem>>, vector<800x32xf32>,
    %c0_i32_8 = arith.constant 0 : i32
    %9 = arith.cmpi eq, %arg2, %c0_i32_8 : i32
    %10 = arith.extui %9 : i1 to i32
    %c0_i32_9 = arith.constant 0 : i32
    %11 = arith.cmpi ne, %10, %c0_i32_9 : i32
    scf.if %11 {
      %c0_10 = arith.constant 0 : index
      %c0_11 = arith.constant 0 : index
      %12 = vector.load %arg7[%c0_10, %c0_11] : memref<800x32xf32, #tpu.memory_space<vmem>>, vector<800x32xf32>
      %c0_12 = arith.constant 0 : index
      %c0_13 = arith.constant 0 : index
      %13 = vector.load %arg5[%c0_12, %c0_13] : memref<1x32xf32, #tpu.memory_space<vmem>>, vector<1x32xf32>
      %14 = vector.broadcast %13 : vector<1x32xf32> to vector<800x32xf32>
      %15 = arith.addf %12, %14 : vector<800x32xf32>
      %cst_14 = arith.constant 0.000000e+00 : f32
      %16 = vector.broadcast %cst_14 : f32 to vector<800x32xf32>
      %17 = arith.maximumf %15, %16 : vector<800x32xf32>
      %18 = arith.truncf %17 : vector<800x32xf32> to vector<800x32xbf16>
      %c0_15 = arith.constant 0 : index
      %c0_16 = arith.constant 0 : index
      %19 = vector.load %arg6[%c0_15, %c0_16] : memref<800x32xbf16, #tpu.memory_space<vmem>>, vector<800x32xbf16>
      tpu.vector_store %arg6[%c0_15, %c0_16], %18 {strides = array<i32>} : memref<800x32xbf16, #tpu.memory_space<vmem>>, vector<800x32xbf16>,
    } else {
    }
    return
  }
  func.func @transform_0(%arg0: i32, %arg1: i32, %arg2: i32) -> (i32, i32) {
    %c0_i32 = arith.constant 0 : i32
    return %arg0, %arg2 : i32, i32
  }
  func.func @transform_1(%arg0: i32, %arg1: i32, %arg2: i32) -> (i32, i32) {
    %c0_i32 = arith.constant 0 : i32
    return %arg2, %arg1 : i32, i32
  }
  func.func @transform_2(%arg0: i32, %arg1: i32, %arg2: i32) -> (i32, i32) {
    %c0_i32 = arith.constant 0 : i32
    %c0_i32_0 = arith.constant 0 : i32
    return %c0_i32, %arg1 : i32, i32
  }
  func.func @transform_3(%arg0: i32, %arg1: i32, %arg2: i32) -> (i32, i32) {
    %c0_i32 = arith.constant 0 : i32
    return %arg0, %arg1 : i32, i32
  }
}

module attributes {stable_mosaic.version = 11 : i64} {
  func.func @_matmul_bias_kernel(%arg0: i32, %arg1: i32, %arg2: i32, %arg3: memref<162x512xbf16, #tpu.memory_space<vmem>>, %arg4: memref<512x64xbf16, #tpu.memory_space<vmem>>, %arg5: memref<1x64xf32, #tpu.memory_space<vmem>>, %arg6: memref<162x64xbf16, #tpu.memory_space<vmem>>, %arg7: memref<162x64xf32, #tpu.memory_space<vmem>>) attributes {dimension_semantics = [#tpu.dimension_semantics<parallel>, #tpu.dimension_semantics<parallel>, #tpu.dimension_semantics<arbitrary>], iteration_bounds = array<i64: 1, 1, 1>, scalar_prefetch = 0 : i64, scratch_operands = 1 : i64, tpu.core_type = #tpu.core_type<tc>, window_params = [{transform_indices = @transform_0, window_bounds = array<i64: 162, 512>}, {transform_indices = @transform_1, window_bounds = array<i64: 512, 64>}, {transform_indices = @transform_2, window_bounds = array<i64: 1, 64>}, {transform_indices = @transform_3, window_bounds = array<i64: 162, 64>}]} {
    %c0_i32 = arith.constant 0 : i32
    %0 = arith.cmpi eq, %arg2, %c0_i32 : i32
    %1 = arith.extui %0 : i1 to i32
    %c0_i32_0 = arith.constant 0 : i32
    %2 = arith.cmpi ne, %1, %c0_i32_0 : i32
    scf.if %2 {
      %cst_10 = arith.constant 0.000000e+00 : f32
      %12 = vector.broadcast %cst_10 : f32 to vector<162x64xf32>
      %c0_11 = arith.constant 0 : index
      %c0_12 = arith.constant 0 : index
      %13 = vector.load %arg7[%c0_11, %c0_12] : memref<162x64xf32, #tpu.memory_space<vmem>>, vector<162x64xf32>
      tpu.vector_store %arg7[%c0_11, %c0_12], %12 {strides = array<i32>} : memref<162x64xf32, #tpu.memory_space<vmem>>, vector<162x64xf32>,
    } else {
    }
    %c0 = arith.constant 0 : index
    %c0_1 = arith.constant 0 : index
    %3 = vector.load %arg3[%c0, %c0_1] : memref<162x512xbf16, #tpu.memory_space<vmem>>, vector<162x512xbf16>
    %c0_2 = arith.constant 0 : index
    %c0_3 = arith.constant 0 : index
    %4 = vector.load %arg7[%c0_2, %c0_3] : memref<162x64xf32, #tpu.memory_space<vmem>>, vector<162x64xf32>
    %c0_4 = arith.constant 0 : index
    %c0_5 = arith.constant 0 : index
    %5 = vector.load %arg4[%c0_4, %c0_5] : memref<512x64xbf16, #tpu.memory_space<vmem>>, vector<512x64xbf16>
    %cst = arith.constant dense<0.000000e+00> : vector<162x64xf32>
    %6 = tpu.matmul %3, %5, %cst {dimension_numbers = #tpu.dot_dimension_numbers<[1], [0], [0], [1], [0, 0, 1, 1], [], []>} : vector<162x512xbf16>, vector<512x64xbf16>, vector<162x64xf32> -> vector<162x64xf32>
    %7 = arith.addf %4, %6 : vector<162x64xf32>
    %c0_6 = arith.constant 0 : index
    %c0_7 = arith.constant 0 : index
    %8 = vector.load %arg7[%c0_6, %c0_7] : memref<162x64xf32, #tpu.memory_space<vmem>>, vector<162x64xf32>
    tpu.vector_store %arg7[%c0_6, %c0_7], %7 {strides = array<i32>} : memref<162x64xf32, #tpu.memory_space<vmem>>, vector<162x64xf32>,
    %c0_i32_8 = arith.constant 0 : i32
    %9 = arith.cmpi eq, %arg2, %c0_i32_8 : i32
    %10 = arith.extui %9 : i1 to i32
    %c0_i32_9 = arith.constant 0 : i32
    %11 = arith.cmpi ne, %10, %c0_i32_9 : i32
    scf.if %11 {
      %c0_10 = arith.constant 0 : index
      %c0_11 = arith.constant 0 : index
      %12 = vector.load %arg7[%c0_10, %c0_11] : memref<162x64xf32, #tpu.memory_space<vmem>>, vector<162x64xf32>
      %c0_12 = arith.constant 0 : index
      %c0_13 = arith.constant 0 : index
      %13 = vector.load %arg5[%c0_12, %c0_13] : memref<1x64xf32, #tpu.memory_space<vmem>>, vector<1x64xf32>
      %14 = vector.broadcast %13 : vector<1x64xf32> to vector<162x64xf32>
      %15 = arith.addf %12, %14 : vector<162x64xf32>
      %cst_14 = arith.constant 0.000000e+00 : f32
      %16 = vector.broadcast %cst_14 : f32 to vector<162x64xf32>
      %17 = arith.maximumf %15, %16 : vector<162x64xf32>
      %18 = arith.truncf %17 : vector<162x64xf32> to vector<162x64xbf16>
      %c0_15 = arith.constant 0 : index
      %c0_16 = arith.constant 0 : index
      %19 = vector.load %arg6[%c0_15, %c0_16] : memref<162x64xbf16, #tpu.memory_space<vmem>>, vector<162x64xbf16>
      tpu.vector_store %arg6[%c0_15, %c0_16], %18 {strides = array<i32>} : memref<162x64xbf16, #tpu.memory_space<vmem>>, vector<162x64xbf16>,
    } else {
    }
    return
  }
  func.func @transform_0(%arg0: i32, %arg1: i32, %arg2: i32) -> (i32, i32) {
    %c0_i32 = arith.constant 0 : i32
    return %arg0, %arg2 : i32, i32
  }
  func.func @transform_1(%arg0: i32, %arg1: i32, %arg2: i32) -> (i32, i32) {
    %c0_i32 = arith.constant 0 : i32
    return %arg2, %arg1 : i32, i32
  }
  func.func @transform_2(%arg0: i32, %arg1: i32, %arg2: i32) -> (i32, i32) {
    %c0_i32 = arith.constant 0 : i32
    %c0_i32_0 = arith.constant 0 : i32
    return %c0_i32, %arg1 : i32, i32
  }
  func.func @transform_3(%arg0: i32, %arg1: i32, %arg2: i32) -> (i32, i32) {
    %c0_i32 = arith.constant 0 : i32
    return %arg0, %arg1 : i32, i32
  }
}

module attributes {stable_mosaic.version = 11 : i64} {
  func.func @_matmul_bias_kernel(%arg0: i32, %arg1: i32, %arg2: i32, %arg3: memref<98x576xbf16, #tpu.memory_space<vmem>>, %arg4: memref<576x64xbf16, #tpu.memory_space<vmem>>, %arg5: memref<1x64xf32, #tpu.memory_space<vmem>>, %arg6: memref<98x64xbf16, #tpu.memory_space<vmem>>, %arg7: memref<98x64xf32, #tpu.memory_space<vmem>>) attributes {dimension_semantics = [#tpu.dimension_semantics<parallel>, #tpu.dimension_semantics<parallel>, #tpu.dimension_semantics<arbitrary>], iteration_bounds = array<i64: 1, 1, 1>, scalar_prefetch = 0 : i64, scratch_operands = 1 : i64, tpu.core_type = #tpu.core_type<tc>, window_params = [{transform_indices = @transform_0, window_bounds = array<i64: 98, 576>}, {transform_indices = @transform_1, window_bounds = array<i64: 576, 64>}, {transform_indices = @transform_2, window_bounds = array<i64: 1, 64>}, {transform_indices = @transform_3, window_bounds = array<i64: 98, 64>}]} {
    %c0_i32 = arith.constant 0 : i32
    %0 = arith.cmpi eq, %arg2, %c0_i32 : i32
    %1 = arith.extui %0 : i1 to i32
    %c0_i32_0 = arith.constant 0 : i32
    %2 = arith.cmpi ne, %1, %c0_i32_0 : i32
    scf.if %2 {
      %cst_10 = arith.constant 0.000000e+00 : f32
      %12 = vector.broadcast %cst_10 : f32 to vector<98x64xf32>
      %c0_11 = arith.constant 0 : index
      %c0_12 = arith.constant 0 : index
      %13 = vector.load %arg7[%c0_11, %c0_12] : memref<98x64xf32, #tpu.memory_space<vmem>>, vector<98x64xf32>
      tpu.vector_store %arg7[%c0_11, %c0_12], %12 {strides = array<i32>} : memref<98x64xf32, #tpu.memory_space<vmem>>, vector<98x64xf32>,
    } else {
    }
    %c0 = arith.constant 0 : index
    %c0_1 = arith.constant 0 : index
    %3 = vector.load %arg3[%c0, %c0_1] : memref<98x576xbf16, #tpu.memory_space<vmem>>, vector<98x576xbf16>
    %c0_2 = arith.constant 0 : index
    %c0_3 = arith.constant 0 : index
    %4 = vector.load %arg7[%c0_2, %c0_3] : memref<98x64xf32, #tpu.memory_space<vmem>>, vector<98x64xf32>
    %c0_4 = arith.constant 0 : index
    %c0_5 = arith.constant 0 : index
    %5 = vector.load %arg4[%c0_4, %c0_5] : memref<576x64xbf16, #tpu.memory_space<vmem>>, vector<576x64xbf16>
    %cst = arith.constant dense<0.000000e+00> : vector<98x64xf32>
    %6 = tpu.matmul %3, %5, %cst {dimension_numbers = #tpu.dot_dimension_numbers<[1], [0], [0], [1], [0, 0, 1, 1], [], []>} : vector<98x576xbf16>, vector<576x64xbf16>, vector<98x64xf32> -> vector<98x64xf32>
    %7 = arith.addf %4, %6 : vector<98x64xf32>
    %c0_6 = arith.constant 0 : index
    %c0_7 = arith.constant 0 : index
    %8 = vector.load %arg7[%c0_6, %c0_7] : memref<98x64xf32, #tpu.memory_space<vmem>>, vector<98x64xf32>
    tpu.vector_store %arg7[%c0_6, %c0_7], %7 {strides = array<i32>} : memref<98x64xf32, #tpu.memory_space<vmem>>, vector<98x64xf32>,
    %c0_i32_8 = arith.constant 0 : i32
    %9 = arith.cmpi eq, %arg2, %c0_i32_8 : i32
    %10 = arith.extui %9 : i1 to i32
    %c0_i32_9 = arith.constant 0 : i32
    %11 = arith.cmpi ne, %10, %c0_i32_9 : i32
    scf.if %11 {
      %c0_10 = arith.constant 0 : index
      %c0_11 = arith.constant 0 : index
      %12 = vector.load %arg7[%c0_10, %c0_11] : memref<98x64xf32, #tpu.memory_space<vmem>>, vector<98x64xf32>
      %c0_12 = arith.constant 0 : index
      %c0_13 = arith.constant 0 : index
      %13 = vector.load %arg5[%c0_12, %c0_13] : memref<1x64xf32, #tpu.memory_space<vmem>>, vector<1x64xf32>
      %14 = vector.broadcast %13 : vector<1x64xf32> to vector<98x64xf32>
      %15 = arith.addf %12, %14 : vector<98x64xf32>
      %cst_14 = arith.constant 0.000000e+00 : f32
      %16 = vector.broadcast %cst_14 : f32 to vector<98x64xf32>
      %17 = arith.maximumf %15, %16 : vector<98x64xf32>
      %18 = arith.truncf %17 : vector<98x64xf32> to vector<98x64xbf16>
      %c0_15 = arith.constant 0 : index
      %c0_16 = arith.constant 0 : index
      %19 = vector.load %arg6[%c0_15, %c0_16] : memref<98x64xbf16, #tpu.memory_space<vmem>>, vector<98x64xbf16>
      tpu.vector_store %arg6[%c0_15, %c0_16], %18 {strides = array<i32>} : memref<98x64xbf16, #tpu.memory_space<vmem>>, vector<98x64xbf16>,
    } else {
    }
    return
  }
  func.func @transform_0(%arg0: i32, %arg1: i32, %arg2: i32) -> (i32, i32) {
    %c0_i32 = arith.constant 0 : i32
    return %arg0, %arg2 : i32, i32
  }
  func.func @transform_1(%arg0: i32, %arg1: i32, %arg2: i32) -> (i32, i32) {
    %c0_i32 = arith.constant 0 : i32
    return %arg2, %arg1 : i32, i32
  }
  func.func @transform_2(%arg0: i32, %arg1: i32, %arg2: i32) -> (i32, i32) {
    %c0_i32 = arith.constant 0 : i32
    %c0_i32_0 = arith.constant 0 : i32
    return %c0_i32, %arg1 : i32, i32
  }
  func.func @transform_3(%arg0: i32, %arg1: i32, %arg2: i32) -> (i32, i32) {
    %c0_i32 = arith.constant 0 : i32
    return %arg0, %arg1 : i32, i32
  }
}

module attributes {stable_mosaic.version = 11 : i64} {
  func.func @_matmul_bias_kernel(%arg0: i32, %arg1: i32, %arg2: i32, %arg3: memref<2x640xbf16, #tpu.memory_space<vmem>>, %arg4: memref<640x512xbf16, #tpu.memory_space<vmem>>, %arg5: memref<1x512xf32, #tpu.memory_space<vmem>>, %arg6: memref<2x512xbf16, #tpu.memory_space<vmem>>, %arg7: memref<2x512xf32, #tpu.memory_space<vmem>>) attributes {dimension_semantics = [#tpu.dimension_semantics<parallel>, #tpu.dimension_semantics<parallel>, #tpu.dimension_semantics<arbitrary>], iteration_bounds = array<i64: 1, 2, 5>, scalar_prefetch = 0 : i64, scratch_operands = 1 : i64, tpu.core_type = #tpu.core_type<tc>, window_params = [{transform_indices = @transform_0, window_bounds = array<i64: 2, 640>}, {transform_indices = @transform_1, window_bounds = array<i64: 640, 512>}, {transform_indices = @transform_2, window_bounds = array<i64: 1, 512>}, {transform_indices = @transform_3, window_bounds = array<i64: 2, 512>}]} {
    %c0_i32 = arith.constant 0 : i32
    %0 = arith.cmpi eq, %arg2, %c0_i32 : i32
    %1 = arith.extui %0 : i1 to i32
    %c0_i32_0 = arith.constant 0 : i32
    %2 = arith.cmpi ne, %1, %c0_i32_0 : i32
    scf.if %2 {
      %cst_9 = arith.constant 0.000000e+00 : f32
      %12 = vector.broadcast %cst_9 : f32 to vector<2x512xf32>
      %c0_10 = arith.constant 0 : index
      %c0_11 = arith.constant 0 : index
      %13 = vector.load %arg7[%c0_10, %c0_11] : memref<2x512xf32, #tpu.memory_space<vmem>>, vector<2x512xf32>
      tpu.vector_store %arg7[%c0_10, %c0_11], %12 {strides = array<i32>} : memref<2x512xf32, #tpu.memory_space<vmem>>, vector<2x512xf32>,
    } else {
    }
    %c0 = arith.constant 0 : index
    %c0_1 = arith.constant 0 : index
    %3 = vector.load %arg3[%c0, %c0_1] : memref<2x640xbf16, #tpu.memory_space<vmem>>, vector<2x640xbf16>
    %c0_2 = arith.constant 0 : index
    %c0_3 = arith.constant 0 : index
    %4 = vector.load %arg7[%c0_2, %c0_3] : memref<2x512xf32, #tpu.memory_space<vmem>>, vector<2x512xf32>
    %c0_4 = arith.constant 0 : index
    %c0_5 = arith.constant 0 : index
    %5 = vector.load %arg4[%c0_4, %c0_5] : memref<640x512xbf16, #tpu.memory_space<vmem>>, vector<640x512xbf16>
    %cst = arith.constant dense<0.000000e+00> : vector<2x512xf32>
    %6 = tpu.matmul %3, %5, %cst {dimension_numbers = #tpu.dot_dimension_numbers<[1], [0], [0], [1], [0, 0, 1, 1], [], []>} : vector<2x640xbf16>, vector<640x512xbf16>, vector<2x512xf32> -> vector<2x512xf32>
    %7 = arith.addf %4, %6 : vector<2x512xf32>
    %c0_6 = arith.constant 0 : index
    %c0_7 = arith.constant 0 : index
    %8 = vector.load %arg7[%c0_6, %c0_7] : memref<2x512xf32, #tpu.memory_space<vmem>>, vector<2x512xf32>
    tpu.vector_store %arg7[%c0_6, %c0_7], %7 {strides = array<i32>} : memref<2x512xf32, #tpu.memory_space<vmem>>, vector<2x512xf32>,
    %c4_i32 = arith.constant 4 : i32
    %9 = arith.cmpi eq, %arg2, %c4_i32 : i32
    %10 = arith.extui %9 : i1 to i32
    %c0_i32_8 = arith.constant 0 : i32
    %11 = arith.cmpi ne, %10, %c0_i32_8 : i32
    scf.if %11 {
      %c0_9 = arith.constant 0 : index
      %c0_10 = arith.constant 0 : index
      %12 = vector.load %arg7[%c0_9, %c0_10] : memref<2x512xf32, #tpu.memory_space<vmem>>, vector<2x512xf32>
      %c0_11 = arith.constant 0 : index
      %c0_12 = arith.constant 0 : index
      %13 = vector.load %arg5[%c0_11, %c0_12] : memref<1x512xf32, #tpu.memory_space<vmem>>, vector<1x512xf32>
      %14 = vector.broadcast %13 : vector<1x512xf32> to vector<2x512xf32>
      %15 = arith.addf %12, %14 : vector<2x512xf32>
      %cst_13 = arith.constant 0.000000e+00 : f32
      %16 = vector.broadcast %cst_13 : f32 to vector<2x512xf32>
      %17 = arith.maximumf %15, %16 : vector<2x512xf32>
      %18 = arith.truncf %17 : vector<2x512xf32> to vector<2x512xbf16>
      %c0_14 = arith.constant 0 : index
      %c0_15 = arith.constant 0 : index
      %19 = vector.load %arg6[%c0_14, %c0_15] : memref<2x512xbf16, #tpu.memory_space<vmem>>, vector<2x512xbf16>
      tpu.vector_store %arg6[%c0_14, %c0_15], %18 {strides = array<i32>} : memref<2x512xbf16, #tpu.memory_space<vmem>>, vector<2x512xbf16>,
    } else {
    }
    return
  }
  func.func @transform_0(%arg0: i32, %arg1: i32, %arg2: i32) -> (i32, i32) {
    %c0_i32 = arith.constant 0 : i32
    return %arg0, %arg2 : i32, i32
  }
  func.func @transform_1(%arg0: i32, %arg1: i32, %arg2: i32) -> (i32, i32) {
    %c0_i32 = arith.constant 0 : i32
    return %arg2, %arg1 : i32, i32
  }
  func.func @transform_2(%arg0: i32, %arg1: i32, %arg2: i32) -> (i32, i32) {
    %c0_i32 = arith.constant 0 : i32
    %c0_i32_0 = arith.constant 0 : i32
    return %c0_i32, %arg1 : i32, i32
  }
  func.func @transform_3(%arg0: i32, %arg1: i32, %arg2: i32) -> (i32, i32) {
    %c0_i32 = arith.constant 0 : i32
    return %arg0, %arg1 : i32, i32
  }
}

module attributes {stable_mosaic.version = 11 : i64} {
  func.func @_matmul_bias_kernel(%arg0: i32, %arg1: i32, %arg2: i32, %arg3: memref<2x1024xbf16, #tpu.memory_space<vmem>>, %arg4: memref<1024x6xbf16, #tpu.memory_space<vmem>>, %arg5: memref<1x6xf32, #tpu.memory_space<vmem>>, %arg6: memref<2x6xf32, #tpu.memory_space<vmem>>, %arg7: memref<2x6xf32, #tpu.memory_space<vmem>>) attributes {dimension_semantics = [#tpu.dimension_semantics<parallel>, #tpu.dimension_semantics<parallel>, #tpu.dimension_semantics<arbitrary>], iteration_bounds = array<i64: 1, 1, 1>, scalar_prefetch = 0 : i64, scratch_operands = 1 : i64, tpu.core_type = #tpu.core_type<tc>, window_params = [{transform_indices = @transform_0, window_bounds = array<i64: 2, 1024>}, {transform_indices = @transform_1, window_bounds = array<i64: 1024, 6>}, {transform_indices = @transform_2, window_bounds = array<i64: 1, 6>}, {transform_indices = @transform_3, window_bounds = array<i64: 2, 6>}]} {
    %c0_i32 = arith.constant 0 : i32
    %0 = arith.cmpi eq, %arg2, %c0_i32 : i32
    %1 = arith.extui %0 : i1 to i32
    %c0_i32_0 = arith.constant 0 : i32
    %2 = arith.cmpi ne, %1, %c0_i32_0 : i32
    scf.if %2 {
      %cst_10 = arith.constant 0.000000e+00 : f32
      %12 = vector.broadcast %cst_10 : f32 to vector<2x6xf32>
      %c0_11 = arith.constant 0 : index
      %c0_12 = arith.constant 0 : index
      %13 = vector.load %arg7[%c0_11, %c0_12] : memref<2x6xf32, #tpu.memory_space<vmem>>, vector<2x6xf32>
      tpu.vector_store %arg7[%c0_11, %c0_12], %12 {strides = array<i32>} : memref<2x6xf32, #tpu.memory_space<vmem>>, vector<2x6xf32>,
    } else {
    }
    %c0 = arith.constant 0 : index
    %c0_1 = arith.constant 0 : index
    %3 = vector.load %arg3[%c0, %c0_1] : memref<2x1024xbf16, #tpu.memory_space<vmem>>, vector<2x1024xbf16>
    %c0_2 = arith.constant 0 : index
    %c0_3 = arith.constant 0 : index
    %4 = vector.load %arg7[%c0_2, %c0_3] : memref<2x6xf32, #tpu.memory_space<vmem>>, vector<2x6xf32>
    %c0_4 = arith.constant 0 : index
    %c0_5 = arith.constant 0 : index
    %5 = vector.load %arg4[%c0_4, %c0_5] : memref<1024x6xbf16, #tpu.memory_space<vmem>>, vector<1024x6xbf16>
    %cst = arith.constant dense<0.000000e+00> : vector<2x6xf32>
    %6 = tpu.matmul %3, %5, %cst {dimension_numbers = #tpu.dot_dimension_numbers<[1], [0], [0], [1], [0, 0, 1, 1], [], []>} : vector<2x1024xbf16>, vector<1024x6xbf16>, vector<2x6xf32> -> vector<2x6xf32>
    %7 = arith.addf %4, %6 : vector<2x6xf32>
    %c0_6 = arith.constant 0 : index
    %c0_7 = arith.constant 0 : index
    %8 = vector.load %arg7[%c0_6, %c0_7] : memref<2x6xf32, #tpu.memory_space<vmem>>, vector<2x6xf32>
    tpu.vector_store %arg7[%c0_6, %c0_7], %7 {strides = array<i32>} : memref<2x6xf32, #tpu.memory_space<vmem>>, vector<2x6xf32>,
    %c0_i32_8 = arith.constant 0 : i32
    %9 = arith.cmpi eq, %arg2, %c0_i32_8 : i32
    %10 = arith.extui %9 : i1 to i32
    %c0_i32_9 = arith.constant 0 : i32
    %11 = arith.cmpi ne, %10, %c0_i32_9 : i32
    scf.if %11 {
      %c0_10 = arith.constant 0 : index
      %c0_11 = arith.constant 0 : index
      %12 = vector.load %arg7[%c0_10, %c0_11] : memref<2x6xf32, #tpu.memory_space<vmem>>, vector<2x6xf32>
      %c0_12 = arith.constant 0 : index
      %c0_13 = arith.constant 0 : index
      %13 = vector.load %arg5[%c0_12, %c0_13] : memref<1x6xf32, #tpu.memory_space<vmem>>, vector<1x6xf32>
      %14 = vector.broadcast %13 : vector<1x6xf32> to vector<2x6xf32>
      %15 = arith.addf %12, %14 : vector<2x6xf32>
      %c0_14 = arith.constant 0 : index
      %c0_15 = arith.constant 0 : index
      %16 = vector.load %arg6[%c0_14, %c0_15] : memref<2x6xf32, #tpu.memory_space<vmem>>, vector<2x6xf32>
      tpu.vector_store %arg6[%c0_14, %c0_15], %15 {strides = array<i32>} : memref<2x6xf32, #tpu.memory_space<vmem>>, vector<2x6xf32>,
    } else {
    }
    return
  }
  func.func @transform_0(%arg0: i32, %arg1: i32, %arg2: i32) -> (i32, i32) {
    %c0_i32 = arith.constant 0 : i32
    return %arg0, %arg2 : i32, i32
  }
  func.func @transform_1(%arg0: i32, %arg1: i32, %arg2: i32) -> (i32, i32) {
    %c0_i32 = arith.constant 0 : i32
    return %arg2, %arg1 : i32, i32
  }
  func.func @transform_2(%arg0: i32, %arg1: i32, %arg2: i32) -> (i32, i32) {
    %c0_i32 = arith.constant 0 : i32
    %c0_i32_0 = arith.constant 0 : i32
    return %c0_i32, %arg1 : i32, i32
  }
  func.func @transform_3(%arg0: i32, %arg1: i32, %arg2: i32) -> (i32, i32) {
    %c0_i32 = arith.constant 0 : i32
    return %arg0, %arg1 : i32, i32
  }
}

</mosaic_0001>

<bundles_post_ra>
// kernel: dqn_forward.5
= control target key start
LH: loop header
LB: loop body
LE: loop exit
PB: predicated region body
PF: predicated region fallthrough
CT: control target
= control target key end

     0   :  { %v2913_v0 = vmov 0   ;;  %vm19_vm0 = vcmask 261120   ;;  %v2914_v51 = vmov 0.0   ;;  %vm2292_vm1 = vcmask 257024   ;;  %s4131_s1 = inlined_call_operand.vmem [shape: bf16[256,32], index: 1, kind: input, shape index: {}]   ;;  %s4132_s0 = inlined_call_operand.vmem [shape: bf16[800,256], index: 0, kind: input, shape index: {}]   ;;  %s4133_s2 = inlined_call_operand.vmem [shape: f32[1,32], index: 2, kind: input, shape index: {}]   ;;  %s4134_s3 = inlined_call_operand.vmem [shape: bf16[800,32], index: 3, kind: output, shape index: {}]  }
   0x1   :  { %948 = vmatprep.subr.bf16.mxu0 %v2913_v0  ;;  %2714 = vmatprep.subr.bf16.mxu1 %v2913_v0  ;;  %v2748_v1 = vld [vmem:[%s4131_s1 + $0x38] sm:$0xff]   ;;  %v2749_v2 = vld [vmem:[%s4131_s1 + $0x30] sm:$0xff]   ;;  %v2750_v3 = vld [vmem:[%s4131_s1 + $0x28] sm:$0xff]   ;;  %20 = vst.msk [vmem:[#allocation2] sm:$0xff] %vm19_vm0, %v2914_v51 }
   0x2   :  { %949 = vmatpush1.bf16.msra.mxu0 %v2748_v1  ;;  %2730 = vmatpush1.bf16.msra.mxu1 %v2748_v1  ;;  %v2751_v4 = vld [vmem:[%s4131_s1 + $0x20] sm:$0xff]   ;;  %v2752_v5 = vld [vmem:[%s4131_s1 + $0x18] sm:$0xff]   ;;  %v2753_v7 = vld [vmem:[%s4131_s1 + $0x10] sm:$0xff]   ;;  %21 = vst.msk [vmem:[#allocation2 + $0x8] sm:$0xff] %vm19_vm0, %v2914_v51 }
   0x3   :  { %950 = vmatprep.subr.bf16.mxu0 %v2913_v0  ;;  %2715 = vmatprep.subr.bf16.mxu1 %v2913_v0  ;;  %v2766_v6 = vld [vmem:[%s4132_s0 + $0x4] ss:$8 sps:$4 sm:$0xff]   ;;  %v2769_v8 = vld [vmem:[%s4132_s0 + $0x194] ss:$8 sps:$4 sm:$0xff]   ;;  %v2764_v19 = vld [vmem:[%s4132_s0] ss:$8 sps:$4 sm:$0xff]  }
   0x4   :  { %980 = vmatprep.mubr.bf16.mxu0 %v2766_v6  ;;  %1180 = vmatprep.mubr.bf16.mxu1 %v2769_v8  ;;  %v2754_v9 = vld [vmem:[%s4131_s1 + $0x8] sm:$0xff]   ;;  %v2755_v10 = vld [vmem:[%s4131_s1] sm:$0xff]   ;;  %v2756_v11 = vld [vmem:[%s4131_s1 + $0x78] sm:$0xff]   ;;  %22 = vst.msk [vmem:[#allocation2 + $0x10] sm:$0xff] %vm19_vm0, %v2914_v51 }
   0x5   :  { %v2757_v12 = vld [vmem:[%s4131_s1 + $0x70] sm:$0xff]   ;;  %v2758_v13 = vld [vmem:[%s4131_s1 + $0x68] sm:$0xff]   ;;  %v2759_v14 = vld [vmem:[%s4131_s1 + $0x60] sm:$0xff]   ;;  %23 = vst.msk [vmem:[#allocation2 + $0x18] sm:$0xff] %vm19_vm0, %v2914_v51 }
   0x6   :  { %951 = vmatpush1.bf16.msra.mxu0 %v2749_v2  ;;  %2731 = vmatpush1.bf16.msra.mxu1 %v2749_v2  ;;  %v2760_v15 = vld [vmem:[%s4131_s1 + $0x58] sm:$0xff]   ;;  %v2761_v16 = vld [vmem:[%s4131_s1 + $0x50] sm:$0xff]   ;;  %v2762_v17 = vld [vmem:[%s4131_s1 + $0x48] sm:$0xff]   ;;  %24 = vst.msk [vmem:[#allocation2 + $0x20] sm:$0xff] %vm19_vm0, %v2914_v51 }
   0x7   :  { %952 = vmatprep.subr.bf16.mxu0 %v2913_v0  ;;  %2716 = vmatprep.subr.bf16.mxu1 %v2913_v0  ;;  %v2763_v18 = vld [vmem:[%s4131_s1 + $0x40] sm:$0xff]   ;;  %v2767_v20 = vld [vmem:[%s4132_s0 + $0x190] ss:$8 sps:$4 sm:$0xff]   ;;  %v2770_v21 = vld [vmem:[%s4132_s0 + $0x14] ss:$8 sps:$4 sm:$0xff]   ;;  %25 = vst.msk [vmem:[#allocation2 + $0x28] sm:$0xff] %vm19_vm0, %v2914_v51 }
   0x8   :  { %v2772_v22 = vld [vmem:[%s4132_s0 + $0x1a4] ss:$8 sps:$4 sm:$0xff]   ;;  %v2774_v23 = vld [vmem:[%s4132_s0 + $0x10] ss:$8 sps:$4 sm:$0xff]   ;;  %v2775_v24 = vld [vmem:[%s4132_s0 + $0x1a0] ss:$8 sps:$4 sm:$0xff]  }
   0x9   :  { %v2776_v25 = vld [vmem:[%s4132_s0 + $0x24] ss:$8 sps:$4 sm:$0xff]   ;;  %v2778_v26 = vld [vmem:[%s4132_s0 + $0x1b4] ss:$8 sps:$4 sm:$0xff]   ;;  %v2780_v27 = vld [vmem:[%s4132_s0 + $0x20] ss:$8 sps:$4 sm:$0xff]  }
   0xa   :  { %953 = vmatpush1.bf16.msra.mxu0 %v2750_v3  ;;  %2732 = vmatpush1.bf16.msra.mxu1 %v2750_v3  ;;  %v2781_v28 = vld [vmem:[%s4132_s0 + $0x1b0] ss:$8 sps:$4 sm:$0xff]   ;;  %v2782_v29 = vld [vmem:[%s4132_s0 + $0x34] ss:$8 sps:$4 sm:$0xff]   ;;  %v2784_v30 = vld [vmem:[%s4132_s0 + $0x1c4] ss:$8 sps:$4 sm:$0xff]  }
   0xb   :  { %954 = vmatprep.subr.bf16.mxu0 %v2913_v0  ;;  %2717 = vmatprep.subr.bf16.mxu1 %v2913_v0  ;;  %v2786_v31 = vld [vmem:[%s4132_s0 + $0x30] ss:$8 sps:$4 sm:$0xff]   ;;  %v2787_v32 = vld [vmem:[%s4132_s0 + $0x1c0] ss:$8 sps:$4 sm:$0xff]   ;;  %v2788_v33 = vld [vmem:[%s4132_s0 + $0x44] ss:$8 sps:$4 sm:$0xff]  }
   0xc   :  { %v2790_v34 = vld [vmem:[%s4132_s0 + $0x1d4] ss:$8 sps:$4 sm:$0xff]   ;;  %v2792_v35 = vld [vmem:[%s4132_s0 + $0x40] ss:$8 sps:$4 sm:$0xff]   ;;  %v2793_v36 = vld [vmem:[%s4132_s0 + $0x1d0] ss:$8 sps:$4 sm:$0xff]  }
   0xd   :  { %v2794_v37 = vld [vmem:[%s4132_s0 + $0x54] ss:$8 sps:$4 sm:$0xff]   ;;  %v2796_v38 = vld [vmem:[%s4132_s0 + $0x1e4] ss:$8 sps:$4 sm:$0xff]   ;;  %v2798_v39 = vld [vmem:[%s4132_s0 + $0x50] ss:$8 sps:$4 sm:$0xff]  }
   0xe   :  { %955 = vmatpush1.bf16.msra.mxu0 %v2751_v4  ;;  %2733 = vmatpush1.bf16.msra.mxu1 %v2751_v4  ;;  %v2799_v40 = vld [vmem:[%s4132_s0 + $0x1e0] ss:$8 sps:$4 sm:$0xff]   ;;  %v2800_v41 = vld [vmem:[%s4132_s0 + $0x64] ss:$8 sps:$4 sm:$0xff]   ;;  %v2802_v42 = vld [vmem:[%s4132_s0 + $0x1f4] ss:$8 sps:$4 sm:$0xff]  }
   0xf   :  { %956 = vmatprep.subr.bf16.mxu0 %v2913_v0  ;;  %2718 = vmatprep.subr.bf16.mxu1 %v2913_v0  ;;  %v2804_v43 = vld [vmem:[%s4132_s0 + $0x60] ss:$8 sps:$4 sm:$0xff]   ;;  %v2805_v44 = vld [vmem:[%s4132_s0 + $0x1f0] ss:$8 sps:$4 sm:$0xff]   ;;  %v2806_v45 = vld [vmem:[%s4132_s0 + $0x74] ss:$8 sps:$4 sm:$0xff]  }
  0x10   :  { %v2808_v46 = vld [vmem:[%s4132_s0 + $0x204] ss:$8 sps:$4 sm:$0xff]   ;;  %v2810_v47 = vld [vmem:[%s4132_s0 + $0x70] ss:$8 sps:$4 sm:$0xff]   ;;  %v2811_v48 = vld [vmem:[%s4132_s0 + $0x200] ss:$8 sps:$4 sm:$0xff]  }
  0x11   :  { %v2812_v49 = vld [vmem:[%s4132_s0 + $0x84] ss:$8 sps:$4 sm:$0xff]   ;;  %v2814_v50 = vld [vmem:[%s4132_s0 + $0x214] ss:$8 sps:$4 sm:$0xff]   ;;  %26 = vst.msk [vmem:[#allocation2 + $0x30] sm:$0xff] %vm19_vm0, %v2914_v51  ;;  %27 = vst.msk [vmem:[#allocation2 + $0x38] sm:$0xff] %vm19_vm0, %v2914_v51 }
  0x12   :  { %957 = vmatpush1.bf16.msra.mxu0 %v2752_v5  ;;  %2734 = vmatpush1.bf16.msra.mxu1 %v2752_v5  ;;  %28 = vst.msk [vmem:[#allocation2 + $0x40] sm:$0xff] %vm19_vm0, %v2914_v51  ;;  %29 = vst.msk [vmem:[#allocation2 + $0x48] sm:$0xff] %vm19_vm0, %v2914_v51  ;;  %v2816_v52 = vld [vmem:[%s4132_s0 + $0x80] ss:$8 sps:$4 sm:$0xff]   ;;  %v2817_v53 = vld [vmem:[%s4132_s0 + $0x210] ss:$8 sps:$4 sm:$0xff]  }
  0x13   :  { %958 = vmatprep.subr.bf16.mxu0 %v2913_v0  ;;  %2719 = vmatprep.subr.bf16.mxu1 %v2913_v0  ;;  %30 = vst.msk [vmem:[#allocation2 + $0x50] sm:$0xff] %vm19_vm0, %v2914_v51  ;;  %31 = vst.msk [vmem:[#allocation2 + $0x58] sm:$0xff] %vm19_vm0, %v2914_v51  ;;  %v2818_v54 = vld [vmem:[%s4132_s0 + $0x94] ss:$8 sps:$4 sm:$0xff]   ;;  %v2820_v55 = vld [vmem:[%s4132_s0 + $0x224] ss:$8 sps:$4 sm:$0xff]  }
  0x14   :  { %32 = vst.msk [vmem:[#allocation2 + $0x60] sm:$0xff] %vm19_vm0, %v2914_v51  ;;  %33 = vst.msk [vmem:[#allocation2 + $0x68] sm:$0xff] %vm19_vm0, %v2914_v51  ;;  %v2822_v56 = vld [vmem:[%s4132_s0 + $0x90] ss:$8 sps:$4 sm:$0xff]   ;;  %v2823_v57 = vld [vmem:[%s4132_s0 + $0x220] ss:$8 sps:$4 sm:$0xff]  }
  0x15   :  { %34 = vst.msk [vmem:[#allocation2 + $0x70] sm:$0xff] %vm19_vm0, %v2914_v51  ;;  %35 = vst.msk [vmem:[#allocation2 + $0x78] sm:$0xff] %vm19_vm0, %v2914_v51  ;;  %v2824_v58 = vld [vmem:[%s4132_s0 + $0xa4] ss:$8 sps:$4 sm:$0xff]   ;;  %v2826_v59 = vld [vmem:[%s4132_s0 + $0x234] ss:$8 sps:$4 sm:$0xff]  }
  0x16   :  { %959 = vmatpush1.bf16.msra.mxu0 %v2753_v7  ;;  %2735 = vmatpush1.bf16.msra.mxu1 %v2753_v7  ;;  %36 = vst.msk [vmem:[#allocation2 + $0x80] sm:$0xff] %vm19_vm0, %v2914_v51  ;;  %37 = vst.msk [vmem:[#allocation2 + $0x88] sm:$0xff] %vm19_vm0, %v2914_v51  ;;  %v2828_v60 = vld [vmem:[%s4132_s0 + $0xa0] ss:$8 sps:$4 sm:$0xff]   ;;  %v2829_v61 = vld [vmem:[%s4132_s0 + $0x230] ss:$8 sps:$4 sm:$0xff]  }
  0x17   :  { %960 = vmatprep.subr.bf16.mxu0 %v2913_v0  ;;  %2720 = vmatprep.subr.bf16.mxu1 %v2913_v0  ;;  %38 = vst.msk [vmem:[#allocation2 + $0x90] sm:$0xff] %vm19_vm0, %v2914_v51  ;;  %39 = vst.msk [vmem:[#allocation2 + $0x98] sm:$0xff] %vm19_vm0, %v2914_v51  ;;  %v2830_v62 = vld [vmem:[%s4132_s0 + $0xb4] ss:$8 sps:$4 sm:$0xff]   ;;  %v2832_v63 = vld [vmem:[%s4132_s0 + $0x244] ss:$8 sps:$4 sm:$0xff]  }
  0x18   :  { %40 = vst.msk [vmem:[#allocation2 + $0xa0] sm:$0xff] %vm19_vm0, %v2914_v51  ;;  %41 = vst.msk [vmem:[#allocation2 + $0xa8] sm:$0xff] %vm19_vm0, %v2914_v51  ;;  %v2835_v1 = vld [vmem:[%s4132_s0 + $0x240] ss:$8 sps:$4 sm:$0xff]   ;;  %v2836_v2 = vld [vmem:[%s4132_s0 + $0xc4] ss:$8 sps:$4 sm:$0xff]  }
  0x19   :  { %42 = vst.msk [vmem:[#allocation2 + $0xb0] sm:$0xff] %vm19_vm0, %v2914_v51  ;;  %43 = vst.msk [vmem:[#allocation2 + $0xb8] sm:$0xff] %vm19_vm0, %v2914_v51  ;;  %v2838_v3 = vld [vmem:[%s4132_s0 + $0x254] ss:$8 sps:$4 sm:$0xff]   ;;  %v2840_v4 = vld [vmem:[%s4132_s0 + $0xc0] ss:$8 sps:$4 sm:$0xff]  }
  0x1a   :  { %961 = vmatpush1.bf16.msra.mxu0 %v2754_v9  ;;  %2736 = vmatpush1.bf16.msra.mxu1 %v2754_v9  ;;  %44 = vst.msk [vmem:[#allocation2 + $0xc0] sm:$0xff] %vm19_vm0, %v2914_v51  ;;  %45 = vst.msk [vmem:[#allocation2 + $0xc8] sm:$0xff] %vm19_vm0, %v2914_v51  ;;  %v2841_v5 = vld [vmem:[%s4132_s0 + $0x250] ss:$8 sps:$4 sm:$0xff]   ;;  %v2842_v6 = vld [vmem:[%s4132_s0 + $0xd4] ss:$8 sps:$4 sm:$0xff]  }
  0x1b   :  { %962 = vmatprep.subr.bf16.mxu0 %v2913_v0  ;;  %2721 = vmatprep.subr.bf16.mxu1 %v2913_v0  ;;  %46 = vst.msk [vmem:[#allocation2 + $0xd0] sm:$0xff] %vm19_vm0, %v2914_v51  ;;  %47 = vst.msk [vmem:[#allocation2 + $0xd8] sm:$0xff] %vm19_vm0, %v2914_v51  ;;  %v2844_v7 = vld [vmem:[%s4132_s0 + $0x264] ss:$8 sps:$4 sm:$0xff]   ;;  %v2846_v8 = vld [vmem:[%s4132_s0 + $0xd0] ss:$8 sps:$4 sm:$0xff]  }
  0x1c   :  { %48 = vst.msk [vmem:[#allocation2 + $0xe0] sm:$0xff] %vm19_vm0, %v2914_v51  ;;  %49 = vst.msk [vmem:[#allocation2 + $0xe8] sm:$0xff] %vm19_vm0, %v2914_v51  ;;  %v2847_v9 = vld [vmem:[%s4132_s0 + $0x260] ss:$8 sps:$4 sm:$0xff]  }
  0x1d   :  { %50 = vst.msk [vmem:[#allocation2 + $0xf0] sm:$0xff] %vm19_vm0, %v2914_v51  ;;  %51 = vst.msk [vmem:[#allocation2 + $0xf8] sm:$0xff] %vm19_vm0, %v2914_v51 }
  0x1e   :  { %963 = vmatpush1.bf16.msra.mxu0 %v2755_v10  ;;  %2737 = vmatpush1.bf16.msra.mxu1 %v2755_v10  ;;  %52 = vst.msk [vmem:[#allocation2 + $0x100] sm:$0xff] %vm19_vm0, %v2914_v51  ;;  %53 = vst.msk [vmem:[#allocation2 + $0x108] sm:$0xff] %vm19_vm0, %v2914_v51  ;;  %v2848_v10 = vld [vmem:[%s4132_s0 + $0xe4] ss:$8 sps:$4 sm:$0xff]  }
  0x1f   :  { %964 = vmatprep.subr.bf16.mxu0 %v2913_v0  ;;  %2722 = vmatprep.subr.bf16.mxu1 %v2913_v0  ;;  %54 = vst.msk [vmem:[#allocation2 + $0x110] sm:$0xff] %vm19_vm0, %v2914_v51  ;;  %55 = vst.msk [vmem:[#allocation2 + $0x118] sm:$0xff] %vm19_vm0, %v2914_v51 }
  0x20   :  { %56 = vst.msk [vmem:[#allocation2 + $0x120] sm:$0xff] %vm19_vm0, %v2914_v51  ;;  %57 = vst.msk [vmem:[#allocation2 + $0x128] sm:$0xff] %vm19_vm0, %v2914_v51 }
  0x21   :  { %58 = vst.msk [vmem:[#allocation2 + $0x130] sm:$0xff] %vm19_vm0, %v2914_v51  ;;  %59 = vst.msk [vmem:[#allocation2 + $0x138] sm:$0xff] %vm19_vm0, %v2914_v51 }
  0x22   :  { %965 = vmatpush2.bf16.msra.mxu0 %v2756_v11  ;;  %2738 = vmatpush2.bf16.msra.mxu1 %v2756_v11  ;;  %60 = vst.msk [vmem:[#allocation2 + $0x140] sm:$0xff] %vm19_vm0, %v2914_v51  ;;  %61 = vst.msk [vmem:[#allocation2 + $0x148] sm:$0xff] %vm19_vm0, %v2914_v51  ;;  %v2850_v11 = vld [vmem:[%s4132_s0 + $0x274] ss:$8 sps:$4 sm:$0xff]  }
  0x23   :  { %966 = vmatprep.subr.bf16.mxu0 %v2913_v0  ;;  %2723 = vmatprep.subr.bf16.mxu1 %v2913_v0  ;;  %62 = vst.msk [vmem:[#allocation2 + $0x150] sm:$0xff] %vm19_vm0, %v2914_v51  ;;  %63 = vst.msk [vmem:[#allocation2 + $0x158] sm:$0xff] %vm19_vm0, %v2914_v51 }
  0x24   :  { %64 = vst.msk [vmem:[#allocation2 + $0x160] sm:$0xff] %vm19_vm0, %v2914_v51  ;;  %65 = vst.msk [vmem:[#allocation2 + $0x168] sm:$0xff] %vm19_vm0, %v2914_v51 }
  0x25   :  { %66 = vst.msk [vmem:[#allocation2 + $0x170] sm:$0xff] %vm19_vm0, %v2914_v51  ;;  %67 = vst.msk [vmem:[#allocation2 + $0x178] sm:$0xff] %vm19_vm0, %v2914_v51 }
  0x26   :  { %967 = vmatpush2.bf16.msra.mxu0 %v2757_v12  ;;  %2739 = vmatpush2.bf16.msra.mxu1 %v2757_v12  ;;  %68 = vst.msk [vmem:[#allocation2 + $0x180] sm:$0xff] %vm19_vm0, %v2914_v51  ;;  %69 = vst.msk [vmem:[#allocation2 + $0x188] sm:$0xff] %vm19_vm0, %v2914_v51  ;;  %v2852_v12 = vld [vmem:[%s4132_s0 + $0xe0] ss:$8 sps:$4 sm:$0xff]  }
  0x27   :  { %968 = vmatprep.subr.bf16.mxu0 %v2913_v0  ;;  %2724 = vmatprep.subr.bf16.mxu1 %v2913_v0  ;;  %70 = vst.msk [vmem:[#allocation2 + $0x190] sm:$0xff] %vm19_vm0, %v2914_v51  ;;  %71 = vst.msk [vmem:[#allocation2 + $0x198] sm:$0xff] %vm19_vm0, %v2914_v51 }
  0x28   :  { %72 = vst.msk [vmem:[#allocation2 + $0x1a0] sm:$0xff] %vm19_vm0, %v2914_v51  ;;  %73 = vst.msk [vmem:[#allocation2 + $0x1a8] sm:$0xff] %vm19_vm0, %v2914_v51 }
  0x29   :  { %74 = vst.msk [vmem:[#allocation2 + $0x1b0] sm:$0xff] %vm19_vm0, %v2914_v51  ;;  %75 = vst.msk [vmem:[#allocation2 + $0x1b8] sm:$0xff] %vm19_vm0, %v2914_v51 }
  0x2a   :  { %969 = vmatpush2.bf16.msra.mxu0 %v2758_v13  ;;  %2740 = vmatpush2.bf16.msra.mxu1 %v2758_v13  ;;  %76 = vst.msk [vmem:[#allocation2 + $0x1c0] sm:$0xff] %vm19_vm0, %v2914_v51  ;;  %77 = vst.msk [vmem:[#allocation2 + $0x1c8] sm:$0xff] %vm19_vm0, %v2914_v51  ;;  %v2853_v13 = vld [vmem:[%s4132_s0 + $0x270] ss:$8 sps:$4 sm:$0xff]  }
  0x2b   :  { %970 = vmatprep.subr.bf16.mxu0 %v2913_v0  ;;  %2725 = vmatprep.subr.bf16.mxu1 %v2913_v0  ;;  %78 = vst.msk [vmem:[#allocation2 + $0x1d0] sm:$0xff] %vm19_vm0, %v2914_v51  ;;  %79 = vst.msk [vmem:[#allocation2 + $0x1d8] sm:$0xff] %vm19_vm0, %v2914_v51 }
  0x2c   :  { %80 = vst.msk [vmem:[#allocation2 + $0x1e0] sm:$0xff] %vm19_vm0, %v2914_v51  ;;  %81 = vst.msk [vmem:[#allocation2 + $0x1e8] sm:$0xff] %vm19_vm0, %v2914_v51 }
  0x2d   :  { %82 = vst.msk [vmem:[#allocation2 + $0x1f0] sm:$0xff] %vm19_vm0, %v2914_v51  ;;  %83 = vst.msk [vmem:[#allocation2 + $0x1f8] sm:$0xff] %vm19_vm0, %v2914_v51 }
  0x2e   :  { %971 = vmatpush2.bf16.msra.mxu0 %v2759_v14  ;;  %2741 = vmatpush2.bf16.msra.mxu1 %v2759_v14  ;;  %84 = vst.msk [vmem:[#allocation2 + $0x200] sm:$0xff] %vm19_vm0, %v2914_v51  ;;  %85 = vst.msk [vmem:[#allocation2 + $0x208] sm:$0xff] %vm19_vm0, %v2914_v51  ;;  %v2854_v14 = vld [vmem:[%s4132_s0 + $0xf4] ss:$8 sps:$4 sm:$0xff]  }
  0x2f   :  { %972 = vmatprep.subr.bf16.mxu0 %v2913_v0  ;;  %2726 = vmatprep.subr.bf16.mxu1 %v2913_v0  ;;  %86 = vst.msk [vmem:[#allocation2 + $0x210] sm:$0xff] %vm19_vm0, %v2914_v51  ;;  %87 = vst.msk [vmem:[#allocation2 + $0x218] sm:$0xff] %vm19_vm0, %v2914_v51 }
  0x30   :  { %88 = vst.msk [vmem:[#allocation2 + $0x220] sm:$0xff] %vm19_vm0, %v2914_v51  ;;  %89 = vst.msk [vmem:[#allocation2 + $0x228] sm:$0xff] %vm19_vm0, %v2914_v51 }
  0x31   :  { %90 = vst.msk [vmem:[#allocation2 + $0x230] sm:$0xff] %vm19_vm0, %v2914_v51  ;;  %91 = vst.msk [vmem:[#allocation2 + $0x238] sm:$0xff] %vm19_vm0, %v2914_v51 }
  0x32   :  { %973 = vmatpush2.bf16.msra.mxu0 %v2760_v15  ;;  %2742 = vmatpush2.bf16.msra.mxu1 %v2760_v15  ;;  %92 = vst.msk [vmem:[#allocation2 + $0x240] sm:$0xff] %vm19_vm0, %v2914_v51  ;;  %93 = vst.msk [vmem:[#allocation2 + $0x248] sm:$0xff] %vm19_vm0, %v2914_v51  ;;  %v2856_v15 = vld [vmem:[%s4132_s0 + $0x284] ss:$8 sps:$4 sm:$0xff]  }
  0x33   :  { %974 = vmatprep.subr.bf16.mxu0 %v2913_v0  ;;  %2727 = vmatprep.subr.bf16.mxu1 %v2913_v0  ;;  %94 = vst.msk [vmem:[#allocation2 + $0x250] sm:$0xff] %vm19_vm0, %v2914_v51  ;;  %95 = vst.msk [vmem:[#allocation2 + $0x258] sm:$0xff] %vm19_vm0, %v2914_v51 }
  0x34   :  { %96 = vst.msk [vmem:[#allocation2 + $0x260] sm:$0xff] %vm19_vm0, %v2914_v51  ;;  %97 = vst.msk [vmem:[#allocation2 + $0x268] sm:$0xff] %vm19_vm0, %v2914_v51 }
  0x35   :  { %98 = vst.msk [vmem:[#allocation2 + $0x270] sm:$0xff] %vm19_vm0, %v2914_v51  ;;  %99 = vst.msk [vmem:[#allocation2 + $0x278] sm:$0xff] %vm19_vm0, %v2914_v51 }
  0x36   :  { %975 = vmatpush2.bf16.msra.mxu0 %v2761_v16  ;;  %2743 = vmatpush2.bf16.msra.mxu1 %v2761_v16  ;;  %100 = vst.msk [vmem:[#allocation2 + $0x280] sm:$0xff] %vm19_vm0, %v2914_v51  ;;  %101 = vst.msk [vmem:[#allocation2 + $0x288] sm:$0xff] %vm19_vm0, %v2914_v51  ;;  %v2858_v16 = vld [vmem:[%s4132_s0 + $0xf0] ss:$8 sps:$4 sm:$0xff]  }
  0x37   :  { %976 = vmatprep.subr.bf16.mxu0 %v2913_v0  ;;  %2728 = vmatprep.subr.bf16.mxu1 %v2913_v0  ;;  %102 = vst.msk [vmem:[#allocation2 + $0x290] sm:$0xff] %vm19_vm0, %v2914_v51  ;;  %103 = vst.msk [vmem:[#allocation2 + $0x298] sm:$0xff] %vm19_vm0, %v2914_v51 }
  0x38   :  { %104 = vst.msk [vmem:[#allocation2 + $0x2a0] sm:$0xff] %vm19_vm0, %v2914_v51  ;;  %105 = vst.msk [vmem:[#allocation2 + $0x2a8] sm:$0xff] %vm19_vm0, %v2914_v51 }
  0x39   :  { %106 = vst.msk [vmem:[#allocation2 + $0x2b0] sm:$0xff] %vm19_vm0, %v2914_v51  ;;  %107 = vst.msk [vmem:[#allocation2 + $0x2b8] sm:$0xff] %vm19_vm0, %v2914_v51 }
  0x3a   :  { %977 = vmatpush2.bf16.msra.mxu0 %v2762_v17  ;;  %2744 = vmatpush2.bf16.msra.mxu1 %v2762_v17  ;;  %108 = vst.msk [vmem:[#allocation2 + $0x2c0] sm:$0xff] %vm19_vm0, %v2914_v51  ;;  %109 = vst.msk [vmem:[#allocation2 + $0x2c8] sm:$0xff] %vm19_vm0, %v2914_v51  ;;  %v2859_v17 = vld [vmem:[%s4132_s0 + $0x280] ss:$8 sps:$4 sm:$0xff]  }
  0x3b   :  { %978 = vmatprep.subr.bf16.mxu0 %v2913_v0  ;;  %2729 = vmatprep.subr.bf16.mxu1 %v2913_v0  ;;  %110 = vst.msk [vmem:[#allocation2 + $0x2d0] sm:$0xff] %vm19_vm0, %v2914_v51  ;;  %111 = vst.msk [vmem:[#allocation2 + $0x2d8] sm:$0xff] %vm19_vm0, %v2914_v51  ;;  %v2834_v0 = vld [vmem:[%s4132_s0 + $0xb0] ss:$8 sps:$4 sm:$0xff]  }
  0x3c   :  { %112 = vst.msk [vmem:[#allocation2 + $0x2e0] sm:$0xff] %vm19_vm0, %v2914_v51  ;;  %113 = vst.msk [vmem:[#allocation2 + $0x2e8] sm:$0xff] %vm19_vm0, %v2914_v51 }
  0x3d   :  { %114 = vst.msk [vmem:[#allocation2 + $0x2f0] sm:$0xff] %vm19_vm0, %v2914_v51  ;;  %115 = vst.msk [vmem:[#allocation2 + $0x2f8] sm:$0xff] %vm19_vm0, %v2914_v51 }
  0x3e   :  { %979 = vmatpush2.bf16.msra.mxu0 %v2763_v18  ;;  %2745 = vmatpush2.bf16.msra.mxu1 %v2763_v18  ;;  %116 = vst.msk [vmem:[#allocation2 + $0x300] sm:$0xff] %vm19_vm0, %v2914_v51  ;;  %117 = vst.msk [vmem:[#allocation2 + $0x308] sm:$0xff] %vm19_vm0, %v2914_v51  ;;  %v2860_v18 = vld [vmem:[%s4132_s0 + $0x104] ss:$8 sps:$4 sm:$0xff]  }
  0x3f   :  { %118 = vst.msk [vmem:[#allocation2 + $0x310] sm:$0xff] %vm19_vm0, %v2914_v51  ;;  %119 = vst.msk [vmem:[#allocation2 + $0x318] sm:$0xff] %vm19_vm0, %v2914_v51  ;;  %v2910_v51 = vld [vmem:[%s4132_s0 + $0x314] ss:$8 sps:$4 sm:$0xff]  }
  0x41   :  { %981 = vmatmul.mubr.bf16.vlgmr.msra.gmra.mxu0 %v2764_v19  ;;  %1181 = vmatmul.mubr.bf16.vlgmr.msra.gmra.mxu1 %v2767_v20  ;;  %v2862_v19 = vld [vmem:[%s4132_s0 + $0x294] ss:$8 sps:$4 sm:$0xff]   ;;  %v2864_v20 = vld [vmem:[%s4132_s0 + $0x100] ss:$8 sps:$4 sm:$0xff]  }
  0x42   :  { %988 = vmatprep.mubr.bf16.mxu0 %v2770_v21  ;;  %1188 = vmatprep.mubr.bf16.mxu1 %v2772_v22  ;;  %v2865_v21 = vld [vmem:[%s4132_s0 + $0x290] ss:$8 sps:$4 sm:$0xff]   ;;  %v2866_v22 = vld [vmem:[%s4132_s0 + $0x114] ss:$8 sps:$4 sm:$0xff]  }
  0x49   :  { %989 = vmatmul.mubr.bf16.gmra.mxu0 %v2774_v23  ;;  %1189 = vmatmul.mubr.bf16.gmra.mxu1 %v2775_v24  ;;  %v2868_v23 = vld [vmem:[%s4132_s0 + $0x2a4] ss:$8 sps:$4 sm:$0xff]   ;;  %v2870_v24 = vld [vmem:[%s4132_s0 + $0x110] ss:$8 sps:$4 sm:$0xff]  }
  0x4a   :  { %996 = vmatprep.mubr.bf16.mxu0 %v2776_v25  ;;  %1196 = vmatprep.mubr.bf16.mxu1 %v2778_v26  ;;  %v2871_v25 = vld [vmem:[%s4132_s0 + $0x2a0] ss:$8 sps:$4 sm:$0xff]   ;;  %v2872_v26 = vld [vmem:[%s4132_s0 + $0x124] ss:$8 sps:$4 sm:$0xff]  }
  0x51   :  { %997 = vmatmul.mubr.bf16.gmra.mxu0 %v2780_v27  ;;  %1197 = vmatmul.mubr.bf16.gmra.mxu1 %v2781_v28  ;;  %v2874_v27 = vld [vmem:[%s4132_s0 + $0x2b4] ss:$8 sps:$4 sm:$0xff]   ;;  %v2876_v28 = vld [vmem:[%s4132_s0 + $0x120] ss:$8 sps:$4 sm:$0xff]  }
  0x52   :  { %1004 = vmatprep.mubr.bf16.mxu0 %v2782_v29  ;;  %1204 = vmatprep.mubr.bf16.mxu1 %v2784_v30  ;;  %v2877_v29 = vld [vmem:[%s4132_s0 + $0x2b0] ss:$8 sps:$4 sm:$0xff]   ;;  %v2878_v30 = vld [vmem:[%s4132_s0 + $0x134] ss:$8 sps:$4 sm:$0xff]  }
  0x59   :  { %1005 = vmatmul.mubr.bf16.gmra.mxu0 %v2786_v31  ;;  %1205 = vmatmul.mubr.bf16.gmra.mxu1 %v2787_v32  ;;  %v2880_v31 = vld [vmem:[%s4132_s0 + $0x2c4] ss:$8 sps:$4 sm:$0xff]   ;;  %v2882_v32 = vld [vmem:[%s4132_s0 + $0x130] ss:$8 sps:$4 sm:$0xff]  }
  0x5a   :  { %1012 = vmatprep.mubr.bf16.mxu0 %v2788_v33  ;;  %1212 = vmatprep.mubr.bf16.mxu1 %v2790_v34  ;;  %v2883_v33 = vld [vmem:[%s4132_s0 + $0x2c0] ss:$8 sps:$4 sm:$0xff]   ;;  %v2884_v34 = vld [vmem:[%s4132_s0 + $0x144] ss:$8 sps:$4 sm:$0xff]  }
  0x61   :  { %1013 = vmatmul.mubr.bf16.gmra.mxu0 %v2792_v35  ;;  %1213 = vmatmul.mubr.bf16.gmra.mxu1 %v2793_v36  ;;  %v2886_v35 = vld [vmem:[%s4132_s0 + $0x2d4] ss:$8 sps:$4 sm:$0xff]   ;;  %v2888_v36 = vld [vmem:[%s4132_s0 + $0x140] ss:$8 sps:$4 sm:$0xff]  }
  0x62   :  { %1020 = vmatprep.mubr.bf16.mxu0 %v2794_v37  ;;  %1220 = vmatprep.mubr.bf16.mxu1 %v2796_v38  ;;  %v2889_v37 = vld [vmem:[%s4132_s0 + $0x2d0] ss:$8 sps:$4 sm:$0xff]   ;;  %v2890_v38 = vld [vmem:[%s4132_s0 + $0x154] ss:$8 sps:$4 sm:$0xff]  }
  0x69   :  { %1021 = vmatmul.mubr.bf16.gmra.mxu0 %v2798_v39  ;;  %1221 = vmatmul.mubr.bf16.gmra.mxu1 %v2799_v40  ;;  %v2892_v39 = vld [vmem:[%s4132_s0 + $0x2e4] ss:$8 sps:$4 sm:$0xff]   ;;  %v2894_v40 = vld [vmem:[%s4132_s0 + $0x150] ss:$8 sps:$4 sm:$0xff]  }
  0x6a   :  { %1028 = vmatprep.mubr.bf16.mxu0 %v2800_v41  ;;  %1228 = vmatprep.mubr.bf16.mxu1 %v2802_v42  ;;  %v2895_v41 = vld [vmem:[%s4132_s0 + $0x2e0] ss:$8 sps:$4 sm:$0xff]   ;;  %v2896_v42 = vld [vmem:[%s4132_s0 + $0x164] ss:$8 sps:$4 sm:$0xff]  }
  0x71   :  { %1029 = vmatmul.mubr.bf16.gmra.mxu0 %v2804_v43  ;;  %1229 = vmatmul.mubr.bf16.gmra.mxu1 %v2805_v44  ;;  %v2898_v43 = vld [vmem:[%s4132_s0 + $0x2f4] ss:$8 sps:$4 sm:$0xff]   ;;  %v2900_v44 = vld [vmem:[%s4132_s0 + $0x160] ss:$8 sps:$4 sm:$0xff]  }
  0x72   :  { %1036 = vmatprep.mubr.bf16.mxu0 %v2806_v45  ;;  %1236 = vmatprep.mubr.bf16.mxu1 %v2808_v46  ;;  %v2901_v45 = vld [vmem:[%s4132_s0 + $0x2f0] ss:$8 sps:$4 sm:$0xff]   ;;  %v2902_v46 = vld [vmem:[%s4132_s0 + $0x174] ss:$8 sps:$4 sm:$0xff]  }
  0x79   :  { %1037 = vmatmul.mubr.bf16.gmra.mxu0 %v2810_v47  ;;  %1237 = vmatmul.mubr.bf16.gmra.mxu1 %v2811_v48  ;;  %v2904_v47 = vld [vmem:[%s4132_s0 + $0x304] ss:$8 sps:$4 sm:$0xff]   ;;  %v2906_v48 = vld [vmem:[%s4132_s0 + $0x170] ss:$8 sps:$4 sm:$0xff]  }
  0x7a   :  { %1044 = vmatprep.mubr.bf16.mxu0 %v2812_v49  ;;  %1244 = vmatprep.mubr.bf16.mxu1 %v2814_v50  ;;  %v2907_v49 = vld [vmem:[%s4132_s0 + $0x300] ss:$8 sps:$4 sm:$0xff]   ;;  %v2908_v50 = vld [vmem:[%s4132_s0 + $0x184] ss:$8 sps:$4 sm:$0xff]  }
  0x81   :  { %1045 = vmatmul.mubr.bf16.gmra.mxu0 %v2816_v52  ;;  %1245 = vmatmul.mubr.bf16.gmra.mxu1 %v2817_v53  ;;  %v168_v52 = vld [vmem:[%s4132_s0 + $0x180] sm:$0xff]  ;;  %v169_v53 = vld [vmem:[%s4132_s0 + $0x188] sm:$0xff] }
  0x82   :  { %1052 = vmatprep.mubr.bf16.mxu0 %v2818_v54  ;;  %1252 = vmatprep.mubr.bf16.mxu1 %v2820_v55  ;;  %v218_v54 = vld [vmem:[%s4132_s0 + $0x310] sm:$0xff]  ;;  %v219_v55 = vld [vmem:[%s4132_s0 + $0x318] sm:$0xff] }
  0x89   :  { %1053 = vmatmul.mubr.bf16.gmra.mxu0 %v2822_v56  ;;  %1253 = vmatmul.mubr.bf16.gmra.mxu1 %v2823_v57  ;;  %v2445_v56 = vcombine.low %v168_v52, %v169_v53  ;;  %v2495_v57 = vcombine.low %v218_v54, %v219_v55  ;;  %v275_v52 = vld [vmem:[#allocation2 + $0x1b8] sm:$0xff] }
  0x8a   :  { %1060 = vmatprep.mubr.bf16.mxu0 %v2824_v58  ;;  %1260 = vmatprep.mubr.bf16.mxu1 %v2826_v59  ;;  %v220_v58 = vld [vmem:[#allocation2] sm:$0xff]  ;;  %v270_v59 = vld [vmem:[#allocation2 + $0x190] sm:$0xff] }
  0x91   :  { %1061 = vmatmul.mubr.bf16.gmra.mxu0 %v2828_v60  ;;  %1261 = vmatmul.mubr.bf16.gmra.mxu1 %v2829_v61 }
  0x92   :  { %1068 = vmatprep.mubr.bf16.mxu0 %v2830_v62  ;;  %1268 = vmatprep.mubr.bf16.mxu1 %v2832_v63 }
  0x99   :  { %1069 = vmatmul.mubr.bf16.gmra.mxu0 %v2834_v0  ;;  %1269 = vmatmul.mubr.bf16.gmra.mxu1 %v2835_v1 }
  0x9a   :  { %1076 = vmatprep.mubr.bf16.mxu0 %v2836_v2  ;;  %1276 = vmatprep.mubr.bf16.mxu1 %v2838_v3  ;;  %v221_v2 = vld [vmem:[#allocation2 + $0x8] sm:$0xff]  ;;  %v271_v3 = vld [vmem:[#allocation2 + $0x198] sm:$0xff] }
  0xa1   :  { %1077 = vmatmul.mubr.bf16.gmra.mxu0 %v2840_v4  ;;  %1277 = vmatmul.mubr.bf16.gmra.mxu1 %v2841_v5 }
  0xa2   :  { %1084 = vmatprep.mubr.bf16.mxu0 %v2842_v6  ;;  %1284 = vmatprep.mubr.bf16.mxu1 %v2844_v7 }
  0xa9   :  { %1085 = vmatmul.mubr.bf16.gmra.mxu0 %v2846_v8  ;;  %1285 = vmatmul.mubr.bf16.gmra.mxu1 %v2847_v9 }
  0xaa   :  { %1092 = vmatprep.mubr.bf16.mxu0 %v2848_v10  ;;  %1292 = vmatprep.mubr.bf16.mxu1 %v2850_v11  ;;  %v222_v10 = vld [vmem:[#allocation2 + $0x10] sm:$0xff]  ;;  %v272_v11 = vld [vmem:[#allocation2 + $0x1a0] sm:$0xff] }
  0xb1   :  { %1093 = vmatmul.mubr.bf16.gmra.mxu0 %v2852_v12  ;;  %1293 = vmatmul.mubr.bf16.gmra.mxu1 %v2853_v13  ;;  %v3528_v12 = vld [vmem:[%s4133_s2] ss:$0 sm:$0xff] }
  0xb2   :  { %1100 = vmatprep.mubr.bf16.mxu0 %v2854_v14  ;;  %1300 = vmatprep.mubr.bf16.mxu1 %v2856_v15 }
  0xb9   :  { %1101 = vmatmul.mubr.bf16.gmra.mxu0 %v2858_v16  ;;  %1301 = vmatmul.mubr.bf16.gmra.mxu1 %v2859_v17  ;;  %v223_v17 = vld [vmem:[#allocation2 + $0x18] sm:$0xff] }
  0xba   :  { %1108 = vmatprep.mubr.bf16.mxu0 %v2860_v18  ;;  %1308 = vmatprep.mubr.bf16.mxu1 %v2862_v19 }
  0xc1   :  { %1109 = vmatmul.mubr.bf16.gmra.mxu0 %v2864_v20  ;;  %1309 = vmatmul.mubr.bf16.gmra.mxu1 %v2865_v21 }
  0xc2   :  { %1116 = vmatprep.mubr.bf16.mxu0 %v2866_v22  ;;  %1316 = vmatprep.mubr.bf16.mxu1 %v2868_v23  ;;  %v273_v22 = vld [vmem:[#allocation2 + $0x1a8] sm:$0xff] }
  0xc9   :  { %1117 = vmatmul.mubr.bf16.gmra.mxu0 %v2870_v24  ;;  %1317 = vmatmul.mubr.bf16.gmra.mxu1 %v2871_v25 }
  0xca   :  { %1124 = vmatprep.mubr.bf16.mxu0 %v2872_v26  ;;  %1324 = vmatprep.mubr.bf16.mxu1 %v2874_v27 }
  0xd1   :  { %1125 = vmatmul.mubr.bf16.gmra.mxu0 %v2876_v28  ;;  %1325 = vmatmul.mubr.bf16.gmra.mxu1 %v2877_v29 }
  0xd2   :  { %1132 = vmatprep.mubr.bf16.mxu0 %v2878_v30  ;;  %1332 = vmatprep.mubr.bf16.mxu1 %v2880_v31  ;;  %v224_v31 = vld [vmem:[#allocation2 + $0x20] sm:$0xff] }
  0xd9   :  { %1133 = vmatmul.mubr.bf16.gmra.mxu0 %v2882_v32  ;;  %1333 = vmatmul.mubr.bf16.gmra.mxu1 %v2883_v33 }
  0xda   :  { %1140 = vmatprep.mubr.bf16.mxu0 %v2884_v34  ;;  %1340 = vmatprep.mubr.bf16.mxu1 %v2886_v35 }
  0xe1   :  { %1141 = vmatmul.mubr.bf16.gmra.mxu0 %v2888_v36  ;;  %1341 = vmatmul.mubr.bf16.gmra.mxu1 %v2889_v37  ;;  %v274_v36 = vld [vmem:[#allocation2 + $0x1b0] sm:$0xff] }
  0xe2   :  { %1148 = vmatprep.mubr.bf16.mxu0 %v2890_v38  ;;  %1348 = vmatprep.mubr.bf16.mxu1 %v2892_v39 }
  0xe9   :  { %1149 = vmatmul.mubr.bf16.gmra.mxu0 %v2894_v40  ;;  %1349 = vmatmul.mubr.bf16.gmra.mxu1 %v2895_v41 }
  0xea   :  { %1156 = vmatprep.mubr.bf16.mxu0 %v2896_v42  ;;  %1356 = vmatprep.mubr.bf16.mxu1 %v2898_v43 }
  0xf1   :  { %1157 = vmatmul.mubr.bf16.gmra.mxu0 %v2900_v44  ;;  %1357 = vmatmul.mubr.bf16.gmra.mxu1 %v2901_v45 }
  0xf2   :  { %1164 = vmatprep.mubr.bf16.mxu0 %v2902_v46  ;;  %1364 = vmatprep.mubr.bf16.mxu1 %v2904_v47  ;;  %v225_v47 = vld [vmem:[#allocation2 + $0x28] sm:$0xff] }
  0xf9   :  { %1165 = vmatmul.mubr.bf16.gmra.mxu0 %v2906_v48  ;;  %1365 = vmatmul.mubr.bf16.gmra.mxu1 %v2907_v49 }
  0xfa   :  { %1172 = vmatprep.mubr.bf16.mxu0 %v2908_v50  ;;  %1372 = vmatprep.mubr.bf16.mxu1 %v2910_v51 }
 0x101   :  { %v982_v60 = vpop.f32.mrf.mxu0  ;;  %1173 = vmatmul.mubr.bf16.gmra.mxu0 %v2445_v56  ;;  %v1182_v61 = vpop.f32.mrf.mxu1  ;;  %1373 = vmatmul.mubr.bf16.gmra.mxu1 %v2495_v57 }
 0x102   :  { %v1381_v62 = vadd.f32 %v982_v60, %v220_v58  ;;  %v1431_v63 = vadd.f32 %v1182_v61, %v270_v59 }
 0x103   :  { %v984_v0 = vpop.f32.mrf.mxu0  ;;  %v1184_v1 = vpop.f32.mrf.mxu1 }
 0x104   :  { %1482 = vst.msk [vmem:[#allocation2] sm:$0xff] %vm19_vm0, %v1381_v62  ;;  %1532 = vst.msk [vmem:[#allocation2 + $0x190] sm:$0xff] %vm19_vm0, %v1431_v63  ;;  %v226_v63 = vld [vmem:[#allocation2 + $0x30] sm:$0xff] }
 0x105   :  { %v985_v4 = vpop.f32.mrf.mxu0  ;;  %v1185_v5 = vpop.f32.mrf.mxu1 }
 0x106   :  { %v1382_v6 = vadd.f32 %v985_v4, %v221_v2  ;;  %v1432_v7 = vadd.f32 %v1185_v5, %v271_v3  ;;  %v276_v4 = vld [vmem:[#allocation2 + $0x1c0] sm:$0xff] }
 0x107   :  { %v987_v8 = vpop.f32.mrf.mxu0  ;;  %v1187_v9 = vpop.f32.mrf.mxu1 }
 0x108   :  { %1483 = vst.msk [vmem:[#allocation2 + $0x8] sm:$0xff] %vm19_vm0, %v1382_v6  ;;  %1533 = vst.msk [vmem:[#allocation2 + $0x198] sm:$0xff] %vm19_vm0, %v1432_v7 }
 0x109   :  { %v990_v13 = vpop.f32.mrf.mxu0  ;;  %v1190_v14 = vpop.f32.mrf.mxu1 }
 0x10a   :  { %v1383_v15 = vadd.f32 %v990_v13, %v222_v10  ;;  %v1433_v16 = vadd.f32 %v1190_v14, %v272_v11 }
 0x10b   :  { %v1585_v18 = vld [vmem:[#allocation2] sm:$0xff]  ;;  %v1635_v19 = vld [vmem:[#allocation2 + $0x190] sm:$0xff]  ;;  %v992_v20 = vpop.f32.mrf.mxu0  ;;  %v1192_v21 = vpop.f32.mrf.mxu1 }
 0x10c   :  { %v1692_v23 = vadd.f32 %v3528_v12, %v1585_v18  ;;  %v1742_v24 = vadd.f32 %v3528_v12, %v1635_v19  ;;  %1484 = vst.msk [vmem:[#allocation2 + $0x10] sm:$0xff] %vm19_vm0, %v1383_v15  ;;  %1534 = vst.msk [vmem:[#allocation2 + $0x1a0] sm:$0xff] %vm19_vm0, %v1433_v16  ;;  %v227_v16 = vld [vmem:[#allocation2 + $0x38] sm:$0xff]  ;;  %v277_v21 = vld [vmem:[#allocation2 + $0x1c8] sm:$0xff] }
 0x10d   :  { %v993_v25 = vpop.f32.mrf.mxu0  ;;  %v1193_v26 = vpop.f32.mrf.mxu1 }
 0x10e   :  { %v1792_v27 = vmax.f32 %v1692_v23, 0.0  ;;  %v1842_v28 = vmax.f32 %v1742_v24, 0.0  ;;  %v1384_v29 = vadd.f32 %v993_v25, %v223_v17  ;;  %v1434_v30 = vadd.f32 %v1193_v26, %v273_v22 }
 0x10f   :  { %v1586_v32 = vld [vmem:[#allocation2 + $0x8] sm:$0xff]  ;;  %v1636_v33 = vld [vmem:[#allocation2 + $0x198] sm:$0xff]  ;;  %v995_v34 = vpop.f32.mrf.mxu0  ;;  %v1195_v35 = vpop.f32.mrf.mxu1 }
 0x110   :  { %v2614_v37 = vpack.c.bf16 %v1792_v27, %v1792_v27  ;;  %v2664_v38 = vpack.c.bf16 %v1842_v28, %v1842_v28  ;;  %v1693_v39 = vadd.f32 %v3528_v12, %v1586_v32  ;;  %v1743_v40 = vadd.f32 %v3528_v12, %v1636_v33  ;;  %1485 = vst.msk [vmem:[#allocation2 + $0x18] sm:$0xff] %vm19_vm0, %v1384_v29  ;;  %v228_v32 = vld [vmem:[#allocation2 + $0x40] sm:$0xff] }
 0x111   :  { %1535 = vst.msk [vmem:[#allocation2 + $0x1a8] sm:$0xff] %vm19_vm0, %v1434_v30  ;;  %v998_v41 = vpop.f32.mrf.mxu0  ;;  %v1198_v42 = vpop.f32.mrf.mxu1 }
 0x112   :  { %2293 = vst.msk [vmem:[%s4134_s3] sm:$0xf] %vm2292_vm1, %v2614_v37  ;;  %2343 = vst.msk [vmem:[%s4134_s3 + $0xc8] sm:$0xf] %vm2292_vm1, %v2664_v38  ;;  %v1793_v43 = vmax.f32 %v1693_v39, 0.0  ;;  %v1843_v44 = vmax.f32 %v1743_v40, 0.0  ;;  %v1385_v45 = vadd.f32 %v998_v41, %v224_v31  ;;  %v1435_v46 = vadd.f32 %v1198_v42, %v274_v36 }
 0x113   :  { %v1587_v48 = vld [vmem:[#allocation2 + $0x10] sm:$0xff]  ;;  %v1637_v49 = vld [vmem:[#allocation2 + $0x1a0] sm:$0xff]  ;;  %v1000_v50 = vpop.f32.mrf.mxu0  ;;  %v1200_v51 = vpop.f32.mrf.mxu1 }
 0x114   :  { %v2615_v53 = vpack.c.bf16 %v1793_v43, %v1793_v43  ;;  %v2665_v54 = vpack.c.bf16 %v1843_v44, %v1843_v44  ;;  %v1694_v55 = vadd.f32 %v3528_v12, %v1587_v48  ;;  %v1744_v56 = vadd.f32 %v3528_v12, %v1637_v49  ;;  %1486 = vst.msk [vmem:[#allocation2 + $0x20] sm:$0xff] %vm19_vm0, %v1385_v45  ;;  %v278_v37 = vld [vmem:[#allocation2 + $0x1d0] sm:$0xff]  ;;  %v229_v48 = vld [vmem:[#allocation2 + $0x48] sm:$0xff] }
 0x115   :  { %1536 = vst.msk [vmem:[#allocation2 + $0x1b0] sm:$0xff] %vm19_vm0, %v1435_v46  ;;  %v1001_v57 = vpop.f32.mrf.mxu0  ;;  %v1201_v58 = vpop.f32.mrf.mxu1 }
 0x116   :  { %2294 = vst.msk [vmem:[%s4134_s3 + $0x4] sm:$0xf] %vm2292_vm1, %v2615_v53  ;;  %2344 = vst.msk [vmem:[%s4134_s3 + $0xcc] sm:$0xf] %vm2292_vm1, %v2665_v54  ;;  %v1794_v59 = vmax.f32 %v1694_v55, 0.0  ;;  %v1844_v60 = vmax.f32 %v1744_v56, 0.0  ;;  %v1386_v61 = vadd.f32 %v1001_v57, %v225_v47  ;;  %v1436_v62 = vadd.f32 %v1201_v58, %v275_v52 }
 0x117   :  { %v1588_v0 = vld [vmem:[#allocation2 + $0x18] sm:$0xff]  ;;  %v1003_v2 = vpop.f32.mrf.mxu0  ;;  %v1203_v3 = vpop.f32.mrf.mxu1 }
 0x118   :  { %v1638_v1 = vld [vmem:[#allocation2 + $0x1a8] sm:$0xff]  ;;  %v2616_v5 = vpack.c.bf16 %v1794_v59, %v1794_v59  ;;  %v2666_v6 = vpack.c.bf16 %v1844_v60, %v1844_v60  ;;  %v1695_v7 = vadd.f32 %v3528_v12, %v1588_v0  ;;  %1487 = vst.msk [vmem:[#allocation2 + $0x28] sm:$0xff] %vm19_vm0, %v1386_v61  ;;  %1537 = vst.msk [vmem:[#allocation2 + $0x1b8] sm:$0xff] %vm19_vm0, %v1436_v62  ;;  %v279_v53 = vld [vmem:[#allocation2 + $0x1d8] sm:$0xff] }
 0x119   :  { %v1745_v8 = vadd.f32 %v3528_v12, %v1638_v1  ;;  %v1006_v9 = vpop.f32.mrf.mxu0  ;;  %v1206_v10 = vpop.f32.mrf.mxu1  ;;  %v230_v0 = vld [vmem:[#allocation2 + $0x50] sm:$0xff] }
 0x11a   :  { %2295 = vst.msk [vmem:[%s4134_s3 + $0x8] sm:$0xf] %vm2292_vm1, %v2616_v5  ;;  %2345 = vst.msk [vmem:[%s4134_s3 + $0xd0] sm:$0xf] %vm2292_vm1, %v2666_v6  ;;  %v1795_v11 = vmax.f32 %v1695_v7, 0.0  ;;  %v1387_v14 = vadd.f32 %v1006_v9, %v226_v63  ;;  %v1437_v15 = vadd.f32 %v1206_v10, %v276_v4  ;;  %v280_v5 = vld [vmem:[#allocation2 + $0x1e0] sm:$0xff] }
 0x11b   :  { %v1845_v13 = vmax.f32 %v1745_v8, 0.0  ;;  %v1589_v17 = vld [vmem:[#allocation2 + $0x20] sm:$0xff]  ;;  %v1008_v19 = vpop.f32.mrf.mxu0  ;;  %v1208_v20 = vpop.f32.mrf.mxu1 }
 0x11c   :  { %v1639_v18 = vld [vmem:[#allocation2 + $0x1b0] sm:$0xff]  ;;  %v2617_v22 = vpack.c.bf16 %v1795_v11, %v1795_v11  ;;  %v1696_v24 = vadd.f32 %v3528_v12, %v1589_v17  ;;  %1488 = vst.msk [vmem:[#allocation2 + $0x30] sm:$0xff] %vm19_vm0, %v1387_v14  ;;  %1538 = vst.msk [vmem:[#allocation2 + $0x1c0] sm:$0xff] %vm19_vm0, %v1437_v15  ;;  %v231_v17 = vld [vmem:[#allocation2 + $0x58] sm:$0xff] }
 0x11d   :  { %v2667_v23 = vpack.c.bf16 %v1845_v13, %v1845_v13  ;;  %v1746_v25 = vadd.f32 %v3528_v12, %v1639_v18  ;;  %v1009_v26 = vpop.f32.mrf.mxu0  ;;  %v1209_v27 = vpop.f32.mrf.mxu1 }
 0x11e   :  { %2296 = vst.msk [vmem:[%s4134_s3 + $0xc] sm:$0xf] %vm2292_vm1, %v2617_v22  ;;  %v1796_v28 = vmax.f32 %v1696_v24, 0.0  ;;  %v1388_v30 = vadd.f32 %v1009_v26, %v227_v16  ;;  %v1438_v31 = vadd.f32 %v1209_v27, %v277_v21  ;;  %v281_v22 = vld [vmem:[#allocation2 + $0x1e8] sm:$0xff] }
 0x11f   :  { %2346 = vst.msk [vmem:[%s4134_s3 + $0xd4] sm:$0xf] %vm2292_vm1, %v2667_v23  ;;  %v1846_v29 = vmax.f32 %v1746_v25, 0.0  ;;  %v1590_v33 = vld [vmem:[#allocation2 + $0x28] sm:$0xff]  ;;  %v1640_v34 = vld [vmem:[#allocation2 + $0x1b8] sm:$0xff]  ;;  %v1011_v35 = vpop.f32.mrf.mxu0  ;;  %v1211_v36 = vpop.f32.mrf.mxu1 }
 0x120   :  { %v2618_v38 = vpack.c.bf16 %v1796_v28, %v1796_v28  ;;  %v1697_v40 = vadd.f32 %v3528_v12, %v1590_v33  ;;  %v1747_v41 = vadd.f32 %v3528_v12, %v1640_v34  ;;  %1489 = vst.msk [vmem:[#allocation2 + $0x38] sm:$0xff] %vm19_vm0, %v1388_v30  ;;  %1539 = vst.msk [vmem:[#allocation2 + $0x1c8] sm:$0xff] %vm19_vm0, %v1438_v31  ;;  %v232_v33 = vld [vmem:[#allocation2 + $0x60] sm:$0xff] }
 0x121   :  { %v2668_v39 = vpack.c.bf16 %v1846_v29, %v1846_v29  ;;  %v1014_v42 = vpop.f32.mrf.mxu0  ;;  %v1214_v43 = vpop.f32.mrf.mxu1 }
 0x122   :  { %2297 = vst.msk [vmem:[%s4134_s3 + $0x10] sm:$0xf] %vm2292_vm1, %v2618_v38  ;;  %v1797_v44 = vmax.f32 %v1697_v40, 0.0  ;;  %v1847_v45 = vmax.f32 %v1747_v41, 0.0  ;;  %v1389_v46 = vadd.f32 %v1014_v42, %v228_v32  ;;  %v1439_v47 = vadd.f32 %v1214_v43, %v278_v37  ;;  %v282_v38 = vld [vmem:[#allocation2 + $0x1f0] sm:$0xff] }
 0x123   :  { %2347 = vst.msk [vmem:[%s4134_s3 + $0xd8] sm:$0xf] %vm2292_vm1, %v2668_v39  ;;  %v1591_v49 = vld [vmem:[#allocation2 + $0x30] sm:$0xff]  ;;  %v1641_v50 = vld [vmem:[#allocation2 + $0x1c0] sm:$0xff]  ;;  %v1016_v51 = vpop.f32.mrf.mxu0  ;;  %v1216_v52 = vpop.f32.mrf.mxu1 }
 0x124   :  { %v2619_v54 = vpack.c.bf16 %v1797_v44, %v1797_v44  ;;  %v2669_v55 = vpack.c.bf16 %v1847_v45, %v1847_v45  ;;  %v1698_v56 = vadd.f32 %v3528_v12, %v1591_v49  ;;  %v1748_v57 = vadd.f32 %v3528_v12, %v1641_v50  ;;  %1490 = vst.msk [vmem:[#allocation2 + $0x40] sm:$0xff] %vm19_vm0, %v1389_v46  ;;  %v233_v49 = vld [vmem:[#allocation2 + $0x68] sm:$0xff] }
 0x125   :  { %1540 = vst.msk [vmem:[#allocation2 + $0x1d0] sm:$0xff] %vm19_vm0, %v1439_v47  ;;  %v1017_v58 = vpop.f32.mrf.mxu0  ;;  %v1217_v59 = vpop.f32.mrf.mxu1 }
 0x126   :  { %2298 = vst.msk [vmem:[%s4134_s3 + $0x14] sm:$0xf] %vm2292_vm1, %v2619_v54  ;;  %2348 = vst.msk [vmem:[%s4134_s3 + $0xdc] sm:$0xf] %vm2292_vm1, %v2669_v55  ;;  %v1798_v60 = vmax.f32 %v1698_v56, 0.0  ;;  %v1848_v61 = vmax.f32 %v1748_v57, 0.0  ;;  %v1390_v62 = vadd.f32 %v1017_v58, %v229_v48  ;;  %v1440_v63 = vadd.f32 %v1217_v59, %v279_v53 }
 0x127   :  { %v1592_v1 = vld [vmem:[#allocation2 + $0x38] sm:$0xff]  ;;  %v1642_v2 = vld [vmem:[#allocation2 + $0x1c8] sm:$0xff]  ;;  %v1019_v3 = vpop.f32.mrf.mxu0  ;;  %v1219_v4 = vpop.f32.mrf.mxu1 }
 0x128   :  { %v2620_v6 = vpack.c.bf16 %v1798_v60, %v1798_v60  ;;  %v2670_v7 = vpack.c.bf16 %v1848_v61, %v1848_v61  ;;  %v1699_v8 = vadd.f32 %v3528_v12, %v1592_v1  ;;  %v1749_v9 = vadd.f32 %v3528_v12, %v1642_v2  ;;  %1491 = vst.msk [vmem:[#allocation2 + $0x48] sm:$0xff] %vm19_vm0, %v1390_v62  ;;  %v283_v54 = vld [vmem:[#allocation2 + $0x1f8] sm:$0xff]  ;;  %v234_v1 = vld [vmem:[#allocation2 + $0x70] sm:$0xff] }
 0x129   :  { %1541 = vst.msk [vmem:[#allocation2 + $0x1d8] sm:$0xff] %vm19_vm0, %v1440_v63  ;;  %v1022_v10 = vpop.f32.mrf.mxu0  ;;  %v1222_v11 = vpop.f32.mrf.mxu1 }
 0x12a   :  { %2299 = vst.msk [vmem:[%s4134_s3 + $0x18] sm:$0xf] %vm2292_vm1, %v2620_v6  ;;  %2349 = vst.msk [vmem:[%s4134_s3 + $0xe0] sm:$0xf] %vm2292_vm1, %v2670_v7  ;;  %v1799_v13 = vmax.f32 %v1699_v8, 0.0  ;;  %v1849_v14 = vmax.f32 %v1749_v9, 0.0  ;;  %v1391_v15 = vadd.f32 %v1022_v10, %v230_v0  ;;  %v1441_v16 = vadd.f32 %v1222_v11, %v280_v5 }
 0x12b   :  { %v1593_v18 = vld [vmem:[#allocation2 + $0x40] sm:$0xff]  ;;  %v1024_v20 = vpop.f32.mrf.mxu0  ;;  %v1224_v21 = vpop.f32.mrf.mxu1 }
 0x12c   :  { %v1643_v19 = vld [vmem:[#allocation2 + $0x1d0] sm:$0xff]  ;;  %v2621_v23 = vpack.c.bf16 %v1799_v13, %v1799_v13  ;;  %v2671_v24 = vpack.c.bf16 %v1849_v14, %v1849_v14  ;;  %v1700_v25 = vadd.f32 %v3528_v12, %v1593_v18  ;;  %1492 = vst.msk [vmem:[#allocation2 + $0x50] sm:$0xff] %vm19_vm0, %v1391_v15  ;;  %1542 = vst.msk [vmem:[#allocation2 + $0x1e0] sm:$0xff] %vm19_vm0, %v1441_v16  ;;  %v284_v6 = vld [vmem:[#allocation2 + $0x200] sm:$0xff] }
 0x12d   :  { %v1750_v26 = vadd.f32 %v3528_v12, %v1643_v19  ;;  %v1025_v27 = vpop.f32.mrf.mxu0  ;;  %v1225_v28 = vpop.f32.mrf.mxu1  ;;  %v235_v18 = vld [vmem:[#allocation2 + $0x78] sm:$0xff] }
 0x12e   :  { %2300 = vst.msk [vmem:[%s4134_s3 + $0x1c] sm:$0xf] %vm2292_vm1, %v2621_v23  ;;  %2350 = vst.msk [vmem:[%s4134_s3 + $0xe4] sm:$0xf] %vm2292_vm1, %v2671_v24  ;;  %v1800_v29 = vmax.f32 %v1700_v25, 0.0  ;;  %v1392_v31 = vadd.f32 %v1025_v27, %v231_v17  ;;  %v1442_v32 = vadd.f32 %v1225_v28, %v281_v22  ;;  %v285_v23 = vld [vmem:[#allocation2 + $0x208] sm:$0xff] }
 0x12f   :  { %v1850_v30 = vmax.f32 %v1750_v26, 0.0  ;;  %v1594_v34 = vld [vmem:[#allocation2 + $0x48] sm:$0xff]  ;;  %v1027_v36 = vpop.f32.mrf.mxu0  ;;  %v1227_v37 = vpop.f32.mrf.mxu1 }
 0x130   :  { %v1644_v35 = vld [vmem:[#allocation2 + $0x1d8] sm:$0xff]  ;;  %v2622_v39 = vpack.c.bf16 %v1800_v29, %v1800_v29  ;;  %v1701_v41 = vadd.f32 %v3528_v12, %v1594_v34  ;;  %1493 = vst.msk [vmem:[#allocation2 + $0x58] sm:$0xff] %vm19_vm0, %v1392_v31  ;;  %1543 = vst.msk [vmem:[#allocation2 + $0x1e8] sm:$0xff] %vm19_vm0, %v1442_v32  ;;  %v236_v34 = vld [vmem:[#allocation2 + $0x80] sm:$0xff] }
 0x131   :  { %v2672_v40 = vpack.c.bf16 %v1850_v30, %v1850_v30  ;;  %v1751_v42 = vadd.f32 %v3528_v12, %v1644_v35  ;;  %v1030_v43 = vpop.f32.mrf.mxu0  ;;  %v1230_v44 = vpop.f32.mrf.mxu1 }
 0x132   :  { %2301 = vst.msk [vmem:[%s4134_s3 + $0x20] sm:$0xf] %vm2292_vm1, %v2622_v39  ;;  %v1801_v45 = vmax.f32 %v1701_v41, 0.0  ;;  %v1393_v47 = vadd.f32 %v1030_v43, %v232_v33  ;;  %v1443_v48 = vadd.f32 %v1230_v44, %v282_v38  ;;  %v286_v39 = vld [vmem:[#allocation2 + $0x210] sm:$0xff] }
 0x133   :  { %2351 = vst.msk [vmem:[%s4134_s3 + $0xe8] sm:$0xf] %vm2292_vm1, %v2672_v40  ;;  %v1851_v46 = vmax.f32 %v1751_v42, 0.0  ;;  %v1595_v50 = vld [vmem:[#allocation2 + $0x50] sm:$0xff]  ;;  %v1645_v51 = vld [vmem:[#allocation2 + $0x1e0] sm:$0xff]  ;;  %v1032_v52 = vpop.f32.mrf.mxu0  ;;  %v1232_v53 = vpop.f32.mrf.mxu1 }
 0x134   :  { %v2623_v55 = vpack.c.bf16 %v1801_v45, %v1801_v45  ;;  %v1702_v57 = vadd.f32 %v3528_v12, %v1595_v50  ;;  %v1752_v58 = vadd.f32 %v3528_v12, %v1645_v51  ;;  %1494 = vst.msk [vmem:[#allocation2 + $0x60] sm:$0xff] %vm19_vm0, %v1393_v47  ;;  %1544 = vst.msk [vmem:[#allocation2 + $0x1f0] sm:$0xff] %vm19_vm0, %v1443_v48  ;;  %v237_v50 = vld [vmem:[#allocation2 + $0x88] sm:$0xff] }
 0x135   :  { %v2673_v56 = vpack.c.bf16 %v1851_v46, %v1851_v46  ;;  %v1033_v59 = vpop.f32.mrf.mxu0  ;;  %v1233_v60 = vpop.f32.mrf.mxu1 }
 0x136   :  { %2302 = vst.msk [vmem:[%s4134_s3 + $0x24] sm:$0xf] %vm2292_vm1, %v2623_v55  ;;  %v1802_v61 = vmax.f32 %v1702_v57, 0.0  ;;  %v1852_v62 = vmax.f32 %v1752_v58, 0.0  ;;  %v1394_v63 = vadd.f32 %v1033_v59, %v233_v49  ;;  %v1444_v0 = vadd.f32 %v1233_v60, %v283_v54  ;;  %v287_v55 = vld [vmem:[#allocation2 + $0x218] sm:$0xff] }
 0x137   :  { %2352 = vst.msk [vmem:[%s4134_s3 + $0xec] sm:$0xf] %vm2292_vm1, %v2673_v56  ;;  %v1596_v2 = vld [vmem:[#allocation2 + $0x58] sm:$0xff]  ;;  %v1646_v3 = vld [vmem:[#allocation2 + $0x1e8] sm:$0xff]  ;;  %v1035_v4 = vpop.f32.mrf.mxu0  ;;  %v1235_v5 = vpop.f32.mrf.mxu1 }
 0x138   :  { %v2624_v7 = vpack.c.bf16 %v1802_v61, %v1802_v61  ;;  %v2674_v8 = vpack.c.bf16 %v1852_v62, %v1852_v62  ;;  %v1703_v9 = vadd.f32 %v3528_v12, %v1596_v2  ;;  %v1753_v10 = vadd.f32 %v3528_v12, %v1646_v3  ;;  %1495 = vst.msk [vmem:[#allocation2 + $0x68] sm:$0xff] %vm19_vm0, %v1394_v63  ;;  %v238_v2 = vld [vmem:[#allocation2 + $0x90] sm:$0xff] }
 0x139   :  { %1545 = vst.msk [vmem:[#allocation2 + $0x1f8] sm:$0xff] %vm19_vm0, %v1444_v0  ;;  %v1038_v11 = vpop.f32.mrf.mxu0  ;;  %v1238_v13 = vpop.f32.mrf.mxu1 }
 0x13a   :  { %2303 = vst.msk [vmem:[%s4134_s3 + $0x28] sm:$0xf] %vm2292_vm1, %v2624_v7  ;;  %2353 = vst.msk [vmem:[%s4134_s3 + $0xf0] sm:$0xf] %vm2292_vm1, %v2674_v8  ;;  %v1803_v14 = vmax.f32 %v1703_v9, 0.0  ;;  %v1853_v15 = vmax.f32 %v1753_v10, 0.0  ;;  %v1395_v16 = vadd.f32 %v1038_v11, %v234_v1  ;;  %v1445_v17 = vadd.f32 %v1238_v13, %v284_v6 }
 0x13b   :  { %v1597_v19 = vld [vmem:[#allocation2 + $0x60] sm:$0xff]  ;;  %v1647_v20 = vld [vmem:[#allocation2 + $0x1f0] sm:$0xff]  ;;  %v1040_v21 = vpop.f32.mrf.mxu0  ;;  %v1240_v22 = vpop.f32.mrf.mxu1 }
 0x13c   :  { %v2625_v24 = vpack.c.bf16 %v1803_v14, %v1803_v14  ;;  %v2675_v25 = vpack.c.bf16 %v1853_v15, %v1853_v15  ;;  %v1704_v26 = vadd.f32 %v3528_v12, %v1597_v19  ;;  %v1754_v27 = vadd.f32 %v3528_v12, %v1647_v20  ;;  %1496 = vst.msk [vmem:[#allocation2 + $0x70] sm:$0xff] %vm19_vm0, %v1395_v16  ;;  %v288_v7 = vld [vmem:[#allocation2 + $0x220] sm:$0xff]  ;;  %v239_v19 = vld [vmem:[#allocation2 + $0x98] sm:$0xff] }
 0x13d   :  { %1546 = vst.msk [vmem:[#allocation2 + $0x200] sm:$0xff] %vm19_vm0, %v1445_v17  ;;  %v1041_v28 = vpop.f32.mrf.mxu0  ;;  %v1241_v29 = vpop.f32.mrf.mxu1 }
 0x13e   :  { %2304 = vst.msk [vmem:[%s4134_s3 + $0x2c] sm:$0xf] %vm2292_vm1, %v2625_v24  ;;  %2354 = vst.msk [vmem:[%s4134_s3 + $0xf4] sm:$0xf] %vm2292_vm1, %v2675_v25  ;;  %v1804_v30 = vmax.f32 %v1704_v26, 0.0  ;;  %v1854_v31 = vmax.f32 %v1754_v27, 0.0  ;;  %v1396_v32 = vadd.f32 %v1041_v28, %v235_v18  ;;  %v1446_v33 = vadd.f32 %v1241_v29, %v285_v23 }
 0x13f   :  { %v1598_v35 = vld [vmem:[#allocation2 + $0x68] sm:$0xff]  ;;  %v1043_v37 = vpop.f32.mrf.mxu0  ;;  %v1243_v38 = vpop.f32.mrf.mxu1 }
 0x140   :  { %v1648_v36 = vld [vmem:[#allocation2 + $0x1f8] sm:$0xff]  ;;  %v2626_v40 = vpack.c.bf16 %v1804_v30, %v1804_v30  ;;  %v2676_v41 = vpack.c.bf16 %v1854_v31, %v1854_v31  ;;  %v1705_v42 = vadd.f32 %v3528_v12, %v1598_v35  ;;  %1497 = vst.msk [vmem:[#allocation2 + $0x78] sm:$0xff] %vm19_vm0, %v1396_v32  ;;  %1547 = vst.msk [vmem:[#allocation2 + $0x208] sm:$0xff] %vm19_vm0, %v1446_v33  ;;  %v289_v24 = vld [vmem:[#allocation2 + $0x228] sm:$0xff] }
 0x141   :  { %v1755_v43 = vadd.f32 %v3528_v12, %v1648_v36  ;;  %v1046_v44 = vpop.f32.mrf.mxu0  ;;  %v1246_v45 = vpop.f32.mrf.mxu1  ;;  %v240_v35 = vld [vmem:[#allocation2 + $0xa0] sm:$0xff] }
 0x142   :  { %2305 = vst.msk [vmem:[%s4134_s3 + $0x30] sm:$0xf] %vm2292_vm1, %v2626_v40  ;;  %2355 = vst.msk [vmem:[%s4134_s3 + $0xf8] sm:$0xf] %vm2292_vm1, %v2676_v41  ;;  %v1805_v46 = vmax.f32 %v1705_v42, 0.0  ;;  %v1397_v48 = vadd.f32 %v1046_v44, %v236_v34  ;;  %v1447_v49 = vadd.f32 %v1246_v45, %v286_v39  ;;  %v290_v40 = vld [vmem:[#allocation2 + $0x230] sm:$0xff] }
 0x143   :  { %v1855_v47 = vmax.f32 %v1755_v43, 0.0  ;;  %v1599_v51 = vld [vmem:[#allocation2 + $0x70] sm:$0xff]  ;;  %v1048_v53 = vpop.f32.mrf.mxu0  ;;  %v1248_v54 = vpop.f32.mrf.mxu1 }
 0x144   :  { %v1649_v52 = vld [vmem:[#allocation2 + $0x200] sm:$0xff]  ;;  %v2627_v56 = vpack.c.bf16 %v1805_v46, %v1805_v46  ;;  %v1706_v58 = vadd.f32 %v3528_v12, %v1599_v51  ;;  %1498 = vst.msk [vmem:[#allocation2 + $0x80] sm:$0xff] %vm19_vm0, %v1397_v48  ;;  %1548 = vst.msk [vmem:[#allocation2 + $0x210] sm:$0xff] %vm19_vm0, %v1447_v49  ;;  %v241_v51 = vld [vmem:[#allocation2 + $0xa8] sm:$0xff] }
 0x145   :  { %v2677_v57 = vpack.c.bf16 %v1855_v47, %v1855_v47  ;;  %v1756_v59 = vadd.f32 %v3528_v12, %v1649_v52  ;;  %v1049_v60 = vpop.f32.mrf.mxu0  ;;  %v1249_v61 = vpop.f32.mrf.mxu1 }
 0x146   :  { %2306 = vst.msk [vmem:[%s4134_s3 + $0x34] sm:$0xf] %vm2292_vm1, %v2627_v56  ;;  %v1806_v62 = vmax.f32 %v1706_v58, 0.0  ;;  %v1398_v0 = vadd.f32 %v1049_v60, %v237_v50  ;;  %v1448_v1 = vadd.f32 %v1249_v61, %v287_v55  ;;  %v291_v56 = vld [vmem:[#allocation2 + $0x238] sm:$0xff] }
 0x147   :  { %2356 = vst.msk [vmem:[%s4134_s3 + $0xfc] sm:$0xf] %vm2292_vm1, %v2677_v57  ;;  %v1856_v63 = vmax.f32 %v1756_v59, 0.0  ;;  %v1600_v3 = vld [vmem:[#allocation2 + $0x78] sm:$0xff]  ;;  %v1650_v4 = vld [vmem:[#allocation2 + $0x208] sm:$0xff]  ;;  %v1051_v5 = vpop.f32.mrf.mxu0  ;;  %v1251_v6 = vpop.f32.mrf.mxu1 }
 0x148   :  { %v2628_v8 = vpack.c.bf16 %v1806_v62, %v1806_v62  ;;  %v1707_v10 = vadd.f32 %v3528_v12, %v1600_v3  ;;  %v1757_v11 = vadd.f32 %v3528_v12, %v1650_v4  ;;  %1499 = vst.msk [vmem:[#allocation2 + $0x88] sm:$0xff] %vm19_vm0, %v1398_v0  ;;  %1549 = vst.msk [vmem:[#allocation2 + $0x218] sm:$0xff] %vm19_vm0, %v1448_v1  ;;  %v242_v3 = vld [vmem:[#allocation2 + $0xb0] sm:$0xff] }
 0x149   :  { %v2678_v9 = vpack.c.bf16 %v1856_v63, %v1856_v63  ;;  %v1054_v13 = vpop.f32.mrf.mxu0  ;;  %v1254_v14 = vpop.f32.mrf.mxu1 }
 0x14a   :  { %2307 = vst.msk [vmem:[%s4134_s3 + $0x38] sm:$0xf] %vm2292_vm1, %v2628_v8  ;;  %v1807_v15 = vmax.f32 %v1707_v10, 0.0  ;;  %v1857_v16 = vmax.f32 %v1757_v11, 0.0  ;;  %v1399_v17 = vadd.f32 %v1054_v13, %v238_v2  ;;  %v1449_v18 = vadd.f32 %v1254_v14, %v288_v7  ;;  %v292_v8 = vld [vmem:[#allocation2 + $0x240] sm:$0xff] }
 0x14b   :  { %2357 = vst.msk [vmem:[%s4134_s3 + $0x100] sm:$0xf] %vm2292_vm1, %v2678_v9  ;;  %v1601_v20 = vld [vmem:[#allocation2 + $0x80] sm:$0xff]  ;;  %v1651_v21 = vld [vmem:[#allocation2 + $0x210] sm:$0xff]  ;;  %v1056_v22 = vpop.f32.mrf.mxu0  ;;  %v1256_v23 = vpop.f32.mrf.mxu1 }
 0x14c   :  { %v2629_v25 = vpack.c.bf16 %v1807_v15, %v1807_v15  ;;  %v2679_v26 = vpack.c.bf16 %v1857_v16, %v1857_v16  ;;  %v1708_v27 = vadd.f32 %v3528_v12, %v1601_v20  ;;  %v1758_v28 = vadd.f32 %v3528_v12, %v1651_v21  ;;  %1500 = vst.msk [vmem:[#allocation2 + $0x90] sm:$0xff] %vm19_vm0, %v1399_v17  ;;  %v243_v20 = vld [vmem:[#allocation2 + $0xb8] sm:$0xff] }
 0x14d   :  { %1550 = vst.msk [vmem:[#allocation2 + $0x220] sm:$0xff] %vm19_vm0, %v1449_v18  ;;  %v1057_v29 = vpop.f32.mrf.mxu0  ;;  %v1257_v30 = vpop.f32.mrf.mxu1 }
 0x14e   :  { %2308 = vst.msk [vmem:[%s4134_s3 + $0x3c] sm:$0xf] %vm2292_vm1, %v2629_v25  ;;  %2358 = vst.msk [vmem:[%s4134_s3 + $0x104] sm:$0xf] %vm2292_vm1, %v2679_v26  ;;  %v1808_v31 = vmax.f32 %v1708_v27, 0.0  ;;  %v1858_v32 = vmax.f32 %v1758_v28, 0.0  ;;  %v1400_v33 = vadd.f32 %v1057_v29, %v239_v19  ;;  %v1450_v34 = vadd.f32 %v1257_v30, %v289_v24 }
 0x14f   :  { %v1602_v36 = vld [vmem:[#allocation2 + $0x88] sm:$0xff]  ;;  %v1652_v37 = vld [vmem:[#allocation2 + $0x218] sm:$0xff]  ;;  %v1059_v38 = vpop.f32.mrf.mxu0  ;;  %v1259_v39 = vpop.f32.mrf.mxu1 }
 0x150   :  { %v2630_v41 = vpack.c.bf16 %v1808_v31, %v1808_v31  ;;  %v2680_v42 = vpack.c.bf16 %v1858_v32, %v1858_v32  ;;  %v1709_v43 = vadd.f32 %v3528_v12, %v1602_v36  ;;  %v1759_v44 = vadd.f32 %v3528_v12, %v1652_v37  ;;  %1501 = vst.msk [vmem:[#allocation2 + $0x98] sm:$0xff] %vm19_vm0, %v1400_v33  ;;  %v293_v25 = vld [vmem:[#allocation2 + $0x248] sm:$0xff]  ;;  %v244_v36 = vld [vmem:[#allocation2 + $0xc0] sm:$0xff] }
 0x151   :  { %1551 = vst.msk [vmem:[#allocation2 + $0x228] sm:$0xff] %vm19_vm0, %v1450_v34  ;;  %v1062_v45 = vpop.f32.mrf.mxu0  ;;  %v1262_v46 = vpop.f32.mrf.mxu1 }
 0x152   :  { %2309 = vst.msk [vmem:[%s4134_s3 + $0x40] sm:$0xf] %vm2292_vm1, %v2630_v41  ;;  %2359 = vst.msk [vmem:[%s4134_s3 + $0x108] sm:$0xf] %vm2292_vm1, %v2680_v42  ;;  %v1809_v47 = vmax.f32 %v1709_v43, 0.0  ;;  %v1859_v48 = vmax.f32 %v1759_v44, 0.0  ;;  %v1401_v49 = vadd.f32 %v1062_v45, %v240_v35  ;;  %v1451_v50 = vadd.f32 %v1262_v46, %v290_v40 }
 0x153   :  { %v1603_v52 = vld [vmem:[#allocation2 + $0x90] sm:$0xff]  ;;  %v1064_v54 = vpop.f32.mrf.mxu0  ;;  %v1264_v55 = vpop.f32.mrf.mxu1 }
 0x154   :  { %v1653_v53 = vld [vmem:[#allocation2 + $0x220] sm:$0xff]  ;;  %v2631_v57 = vpack.c.bf16 %v1809_v47, %v1809_v47  ;;  %v2681_v58 = vpack.c.bf16 %v1859_v48, %v1859_v48  ;;  %v1710_v59 = vadd.f32 %v3528_v12, %v1603_v52  ;;  %1502 = vst.msk [vmem:[#allocation2 + $0xa0] sm:$0xff] %vm19_vm0, %v1401_v49  ;;  %1552 = vst.msk [vmem:[#allocation2 + $0x230] sm:$0xff] %vm19_vm0, %v1451_v50  ;;  %v294_v41 = vld [vmem:[#allocation2 + $0x250] sm:$0xff] }
 0x155   :  { %v1760_v60 = vadd.f32 %v3528_v12, %v1653_v53  ;;  %v1065_v61 = vpop.f32.mrf.mxu0  ;;  %v1265_v62 = vpop.f32.mrf.mxu1  ;;  %v245_v52 = vld [vmem:[#allocation2 + $0xc8] sm:$0xff] }
 0x156   :  { %2310 = vst.msk [vmem:[%s4134_s3 + $0x44] sm:$0xf] %vm2292_vm1, %v2631_v57  ;;  %2360 = vst.msk [vmem:[%s4134_s3 + $0x10c] sm:$0xf] %vm2292_vm1, %v2681_v58  ;;  %v1810_v63 = vmax.f32 %v1710_v59, 0.0  ;;  %v1402_v1 = vadd.f32 %v1065_v61, %v241_v51  ;;  %v1452_v2 = vadd.f32 %v1265_v62, %v291_v56  ;;  %v295_v57 = vld [vmem:[#allocation2 + $0x258] sm:$0xff] }
 0x157   :  { %v1860_v0 = vmax.f32 %v1760_v60, 0.0  ;;  %v1604_v4 = vld [vmem:[#allocation2 + $0x98] sm:$0xff]  ;;  %v1067_v6 = vpop.f32.mrf.mxu0  ;;  %v1267_v7 = vpop.f32.mrf.mxu1 }
 0x158   :  { %v1654_v5 = vld [vmem:[#allocation2 + $0x228] sm:$0xff]  ;;  %v2632_v9 = vpack.c.bf16 %v1810_v63, %v1810_v63  ;;  %v1711_v11 = vadd.f32 %v3528_v12, %v1604_v4  ;;  %1503 = vst.msk [vmem:[#allocation2 + $0xa8] sm:$0xff] %vm19_vm0, %v1402_v1  ;;  %1553 = vst.msk [vmem:[#allocation2 + $0x238] sm:$0xff] %vm19_vm0, %v1452_v2  ;;  %v246_v4 = vld [vmem:[#allocation2 + $0xd0] sm:$0xff] }
 0x159   :  { %v2682_v10 = vpack.c.bf16 %v1860_v0, %v1860_v0  ;;  %v1761_v13 = vadd.f32 %v3528_v12, %v1654_v5  ;;  %v1070_v14 = vpop.f32.mrf.mxu0  ;;  %v1270_v15 = vpop.f32.mrf.mxu1 }
 0x15a   :  { %2311 = vst.msk [vmem:[%s4134_s3 + $0x48] sm:$0xf] %vm2292_vm1, %v2632_v9  ;;  %v1811_v16 = vmax.f32 %v1711_v11, 0.0  ;;  %v1403_v18 = vadd.f32 %v1070_v14, %v242_v3  ;;  %v1453_v19 = vadd.f32 %v1270_v15, %v292_v8  ;;  %v296_v9 = vld [vmem:[#allocation2 + $0x260] sm:$0xff] }
 0x15b   :  { %2361 = vst.msk [vmem:[%s4134_s3 + $0x110] sm:$0xf] %vm2292_vm1, %v2682_v10  ;;  %v1861_v17 = vmax.f32 %v1761_v13, 0.0  ;;  %v1605_v21 = vld [vmem:[#allocation2 + $0xa0] sm:$0xff]  ;;  %v1655_v22 = vld [vmem:[#allocation2 + $0x230] sm:$0xff]  ;;  %v1072_v23 = vpop.f32.mrf.mxu0  ;;  %v1272_v24 = vpop.f32.mrf.mxu1 }
 0x15c   :  { %v2633_v26 = vpack.c.bf16 %v1811_v16, %v1811_v16  ;;  %v1712_v28 = vadd.f32 %v3528_v12, %v1605_v21  ;;  %v1762_v29 = vadd.f32 %v3528_v12, %v1655_v22  ;;  %1504 = vst.msk [vmem:[#allocation2 + $0xb0] sm:$0xff] %vm19_vm0, %v1403_v18  ;;  %1554 = vst.msk [vmem:[#allocation2 + $0x240] sm:$0xff] %vm19_vm0, %v1453_v19  ;;  %v247_v21 = vld [vmem:[#allocation2 + $0xd8] sm:$0xff] }
 0x15d   :  { %v2683_v27 = vpack.c.bf16 %v1861_v17, %v1861_v17  ;;  %v1073_v30 = vpop.f32.mrf.mxu0  ;;  %v1273_v31 = vpop.f32.mrf.mxu1 }
 0x15e   :  { %2312 = vst.msk [vmem:[%s4134_s3 + $0x4c] sm:$0xf] %vm2292_vm1, %v2633_v26  ;;  %v1812_v32 = vmax.f32 %v1712_v28, 0.0  ;;  %v1862_v33 = vmax.f32 %v1762_v29, 0.0  ;;  %v1404_v34 = vadd.f32 %v1073_v30, %v243_v20  ;;  %v1454_v35 = vadd.f32 %v1273_v31, %v293_v25  ;;  %v297_v26 = vld [vmem:[#allocation2 + $0x268] sm:$0xff] }
 0x15f   :  { %2362 = vst.msk [vmem:[%s4134_s3 + $0x114] sm:$0xf] %vm2292_vm1, %v2683_v27  ;;  %v1606_v37 = vld [vmem:[#allocation2 + $0xa8] sm:$0xff]  ;;  %v1656_v38 = vld [vmem:[#allocation2 + $0x238] sm:$0xff]  ;;  %v1075_v39 = vpop.f32.mrf.mxu0  ;;  %v1275_v40 = vpop.f32.mrf.mxu1 }
 0x160   :  { %v2634_v42 = vpack.c.bf16 %v1812_v32, %v1812_v32  ;;  %v2684_v43 = vpack.c.bf16 %v1862_v33, %v1862_v33  ;;  %v1713_v44 = vadd.f32 %v3528_v12, %v1606_v37  ;;  %v1763_v45 = vadd.f32 %v3528_v12, %v1656_v38  ;;  %1505 = vst.msk [vmem:[#allocation2 + $0xb8] sm:$0xff] %vm19_vm0, %v1404_v34  ;;  %v248_v37 = vld [vmem:[#allocation2 + $0xe0] sm:$0xff] }
 0x161   :  { %1555 = vst.msk [vmem:[#allocation2 + $0x248] sm:$0xff] %vm19_vm0, %v1454_v35  ;;  %v1078_v46 = vpop.f32.mrf.mxu0  ;;  %v1278_v47 = vpop.f32.mrf.mxu1 }
 0x162   :  { %2313 = vst.msk [vmem:[%s4134_s3 + $0x50] sm:$0xf] %vm2292_vm1, %v2634_v42  ;;  %2363 = vst.msk [vmem:[%s4134_s3 + $0x118] sm:$0xf] %vm2292_vm1, %v2684_v43  ;;  %v1813_v48 = vmax.f32 %v1713_v44, 0.0  ;;  %v1863_v49 = vmax.f32 %v1763_v45, 0.0  ;;  %v1405_v50 = vadd.f32 %v1078_v46, %v244_v36  ;;  %v1455_v51 = vadd.f32 %v1278_v47, %v294_v41 }
 0x163   :  { %v1607_v53 = vld [vmem:[#allocation2 + $0xb0] sm:$0xff]  ;;  %v1657_v54 = vld [vmem:[#allocation2 + $0x240] sm:$0xff]  ;;  %v1080_v55 = vpop.f32.mrf.mxu0  ;;  %v1280_v56 = vpop.f32.mrf.mxu1 }
 0x164   :  { %v2635_v58 = vpack.c.bf16 %v1813_v48, %v1813_v48  ;;  %v2685_v59 = vpack.c.bf16 %v1863_v49, %v1863_v49  ;;  %v1714_v60 = vadd.f32 %v3528_v12, %v1607_v53  ;;  %v1764_v61 = vadd.f32 %v3528_v12, %v1657_v54  ;;  %1506 = vst.msk [vmem:[#allocation2 + $0xc0] sm:$0xff] %vm19_vm0, %v1405_v50  ;;  %v298_v42 = vld [vmem:[#allocation2 + $0x270] sm:$0xff]  ;;  %v3826_v46 = vld [vmem:[%s4133_s2] ss:$0 sm:$0xff]  ;;  %v249_v53 = vld [vmem:[#allocation2 + $0xe8] sm:$0xff] }
 0x165   :  { %1556 = vst.msk [vmem:[#allocation2 + $0x250] sm:$0xff] %vm19_vm0, %v1455_v51  ;;  %v1081_v62 = vpop.f32.mrf.mxu0  ;;  %v1281_v63 = vpop.f32.mrf.mxu1 }
 0x166   :  { %2314 = vst.msk [vmem:[%s4134_s3 + $0x54] sm:$0xf] %vm2292_vm1, %v2635_v58  ;;  %2364 = vst.msk [vmem:[%s4134_s3 + $0x11c] sm:$0xf] %vm2292_vm1, %v2685_v59  ;;  %v1814_v0 = vmax.f32 %v1714_v60, 0.0  ;;  %v1864_v1 = vmax.f32 %v1764_v61, 0.0  ;;  %v1406_v2 = vadd.f32 %v1081_v62, %v245_v52  ;;  %v1456_v3 = vadd.f32 %v1281_v63, %v295_v57 }
 0x167   :  { %v1608_v5 = vld [vmem:[#allocation2 + $0xb8] sm:$0xff]  ;;  %v1083_v7 = vpop.f32.mrf.mxu0  ;;  %v1283_v8 = vpop.f32.mrf.mxu1 }
 0x168   :  { %v1658_v6 = vld [vmem:[#allocation2 + $0x248] sm:$0xff]  ;;  %v2636_v10 = vpack.c.bf16 %v1814_v0, %v1814_v0  ;;  %v2686_v11 = vpack.c.bf16 %v1864_v1, %v1864_v1  ;;  %v1715_v13 = vadd.f32 %v3528_v12, %v1608_v5  ;;  %1507 = vst.msk [vmem:[#allocation2 + $0xc8] sm:$0xff] %vm19_vm0, %v1406_v2  ;;  %1557 = vst.msk [vmem:[#allocation2 + $0x258] sm:$0xff] %vm19_vm0, %v1456_v3  ;;  %v299_v58 = vld [vmem:[#allocation2 + $0x278] sm:$0xff] }
 0x169   :  { %v1765_v14 = vadd.f32 %v3528_v12, %v1658_v6  ;;  %v1086_v15 = vpop.f32.mrf.mxu0  ;;  %v1286_v16 = vpop.f32.mrf.mxu1  ;;  %v250_v5 = vld [vmem:[#allocation2 + $0xf0] sm:$0xff] }
 0x16a   :  { %2315 = vst.msk [vmem:[%s4134_s3 + $0x58] sm:$0xf] %vm2292_vm1, %v2636_v10  ;;  %2365 = vst.msk [vmem:[%s4134_s3 + $0x120] sm:$0xf] %vm2292_vm1, %v2686_v11  ;;  %v1815_v17 = vmax.f32 %v1715_v13, 0.0  ;;  %v1407_v19 = vadd.f32 %v1086_v15, %v246_v4  ;;  %v1457_v20 = vadd.f32 %v1286_v16, %v296_v9  ;;  %v300_v10 = vld [vmem:[#allocation2 + $0x280] sm:$0xff] }
 0x16b   :  { %v1865_v18 = vmax.f32 %v1765_v14, 0.0  ;;  %v1609_v22 = vld [vmem:[#allocation2 + $0xc0] sm:$0xff]  ;;  %v1088_v24 = vpop.f32.mrf.mxu0  ;;  %v1288_v25 = vpop.f32.mrf.mxu1 }
 0x16c   :  { %v1659_v23 = vld [vmem:[#allocation2 + $0x250] sm:$0xff]  ;;  %v2637_v27 = vpack.c.bf16 %v1815_v17, %v1815_v17  ;;  %v1716_v29 = vadd.f32 %v3528_v12, %v1609_v22  ;;  %1508 = vst.msk [vmem:[#allocation2 + $0xd0] sm:$0xff] %vm19_vm0, %v1407_v19  ;;  %1558 = vst.msk [vmem:[#allocation2 + $0x260] sm:$0xff] %vm19_vm0, %v1457_v20  ;;  %v251_v22 = vld [vmem:[#allocation2 + $0xf8] sm:$0xff] }
 0x16d   :  { %v2687_v28 = vpack.c.bf16 %v1865_v18, %v1865_v18  ;;  %v1766_v30 = vadd.f32 %v3528_v12, %v1659_v23  ;;  %v1089_v31 = vpop.f32.mrf.mxu0  ;;  %v1289_v32 = vpop.f32.mrf.mxu1 }
 0x16e   :  { %2316 = vst.msk [vmem:[%s4134_s3 + $0x5c] sm:$0xf] %vm2292_vm1, %v2637_v27  ;;  %v1816_v33 = vmax.f32 %v1716_v29, 0.0  ;;  %v1408_v35 = vadd.f32 %v1089_v31, %v247_v21  ;;  %v1458_v36 = vadd.f32 %v1289_v32, %v297_v26  ;;  %v301_v27 = vld [vmem:[#allocation2 + $0x288] sm:$0xff] }
 0x16f   :  { %2366 = vst.msk [vmem:[%s4134_s3 + $0x124] sm:$0xf] %vm2292_vm1, %v2687_v28  ;;  %v1866_v34 = vmax.f32 %v1766_v30, 0.0  ;;  %v1610_v38 = vld [vmem:[#allocation2 + $0xc8] sm:$0xff]  ;;  %v1660_v39 = vld [vmem:[#allocation2 + $0x258] sm:$0xff]  ;;  %v1091_v40 = vpop.f32.mrf.mxu0  ;;  %v1291_v41 = vpop.f32.mrf.mxu1 }
 0x170   :  { %v2638_v43 = vpack.c.bf16 %v1816_v33, %v1816_v33  ;;  %v1717_v45 = vadd.f32 %v3528_v12, %v1610_v38  ;;  %v1767_v47 = vadd.f32 %v3826_v46, %v1660_v39  ;;  %1509 = vst.msk [vmem:[#allocation2 + $0xd8] sm:$0xff] %vm19_vm0, %v1408_v35  ;;  %1559 = vst.msk [vmem:[#allocation2 + $0x268] sm:$0xff] %vm19_vm0, %v1458_v36  ;;  %v252_v38 = vld [vmem:[#allocation2 + $0x100] sm:$0xff] }
 0x171   :  { %v2688_v44 = vpack.c.bf16 %v1866_v34, %v1866_v34  ;;  %v1094_v48 = vpop.f32.mrf.mxu0  ;;  %v1294_v49 = vpop.f32.mrf.mxu1 }
 0x172   :  { %2317 = vst.msk [vmem:[%s4134_s3 + $0x60] sm:$0xf] %vm2292_vm1, %v2638_v43  ;;  %v1817_v12 = vmax.f32 %v1717_v45, 0.0  ;;  %v1867_v50 = vmax.f32 %v1767_v47, 0.0  ;;  %v1409_v51 = vadd.f32 %v1094_v48, %v248_v37  ;;  %v1459_v52 = vadd.f32 %v1294_v49, %v298_v42  ;;  %v302_v43 = vld [vmem:[#allocation2 + $0x290] sm:$0xff] }
 0x173   :  { %2367 = vst.msk [vmem:[%s4134_s3 + $0x128] sm:$0xf] %vm2292_vm1, %v2688_v44  ;;  %v1611_v54 = vld [vmem:[#allocation2 + $0xd0] sm:$0xff]  ;;  %v1661_v55 = vld [vmem:[#allocation2 + $0x260] sm:$0xff]  ;;  %v1096_v56 = vpop.f32.mrf.mxu0  ;;  %v1296_v57 = vpop.f32.mrf.mxu1 }
 0x174   :  { %v2639_v59 = vpack.c.bf16 %v1817_v12, %v1817_v12  ;;  %v2689_v60 = vpack.c.bf16 %v1867_v50, %v1867_v50  ;;  %v1718_v61 = vadd.f32 %v3826_v46, %v1611_v54  ;;  %v1768_v62 = vadd.f32 %v3826_v46, %v1661_v55  ;;  %1510 = vst.msk [vmem:[#allocation2 + $0xe0] sm:$0xff] %vm19_vm0, %v1409_v51  ;;  %v253_v54 = vld [vmem:[#allocation2 + $0x108] sm:$0xff] }
 0x175   :  { %1560 = vst.msk [vmem:[#allocation2 + $0x270] sm:$0xff] %vm19_vm0, %v1459_v52  ;;  %v1097_v63 = vpop.f32.mrf.mxu0  ;;  %v1297_v0 = vpop.f32.mrf.mxu1 }
 0x176   :  { %2318 = vst.msk [vmem:[%s4134_s3 + $0x64] sm:$0xf] %vm2292_vm1, %v2639_v59  ;;  %2368 = vst.msk [vmem:[%s4134_s3 + $0x12c] sm:$0xf] %vm2292_vm1, %v2689_v60  ;;  %v1818_v1 = vmax.f32 %v1718_v61, 0.0  ;;  %v1868_v2 = vmax.f32 %v1768_v62, 0.0  ;;  %v1410_v3 = vadd.f32 %v1097_v63, %v249_v53  ;;  %v1460_v4 = vadd.f32 %v1297_v0, %v299_v58 }
 0x177   :  { %v1612_v6 = vld [vmem:[#allocation2 + $0xd8] sm:$0xff]  ;;  %v1662_v7 = vld [vmem:[#allocation2 + $0x268] sm:$0xff]  ;;  %v1099_v8 = vpop.f32.mrf.mxu0  ;;  %v1299_v9 = vpop.f32.mrf.mxu1 }
 0x178   :  { %v2640_v11 = vpack.c.bf16 %v1818_v1, %v1818_v1  ;;  %v2690_v13 = vpack.c.bf16 %v1868_v2, %v1868_v2  ;;  %v1719_v14 = vadd.f32 %v3826_v46, %v1612_v6  ;;  %v1769_v15 = vadd.f32 %v3826_v46, %v1662_v7  ;;  %1511 = vst.msk [vmem:[#allocation2 + $0xe8] sm:$0xff] %vm19_vm0, %v1410_v3  ;;  %v303_v59 = vld [vmem:[#allocation2 + $0x298] sm:$0xff]  ;;  %v254_v6 = vld [vmem:[#allocation2 + $0x110] sm:$0xff] }
 0x179   :  { %1561 = vst.msk [vmem:[#allocation2 + $0x278] sm:$0xff] %vm19_vm0, %v1460_v4  ;;  %v1102_v16 = vpop.f32.mrf.mxu0  ;;  %v1302_v17 = vpop.f32.mrf.mxu1 }
 0x17a   :  { %2319 = vst.msk [vmem:[%s4134_s3 + $0x68] sm:$0xf] %vm2292_vm1, %v2640_v11  ;;  %2369 = vst.msk [vmem:[%s4134_s3 + $0x130] sm:$0xf] %vm2292_vm1, %v2690_v13  ;;  %v1819_v18 = vmax.f32 %v1719_v14, 0.0  ;;  %v1869_v19 = vmax.f32 %v1769_v15, 0.0  ;;  %v1411_v20 = vadd.f32 %v1102_v16, %v250_v5  ;;  %v1461_v21 = vadd.f32 %v1302_v17, %v300_v10 }
 0x17b   :  { %v1613_v23 = vld [vmem:[#allocation2 + $0xe0] sm:$0xff]  ;;  %v1104_v25 = vpop.f32.mrf.mxu0  ;;  %v1304_v26 = vpop.f32.mrf.mxu1 }
 0x17c   :  { %v1663_v24 = vld [vmem:[#allocation2 + $0x270] sm:$0xff]  ;;  %v2641_v28 = vpack.c.bf16 %v1819_v18, %v1819_v18  ;;  %v2691_v29 = vpack.c.bf16 %v1869_v19, %v1869_v19  ;;  %v1720_v30 = vadd.f32 %v3826_v46, %v1613_v23  ;;  %1512 = vst.msk [vmem:[#allocation2 + $0xf0] sm:$0xff] %vm19_vm0, %v1411_v20  ;;  %1562 = vst.msk [vmem:[#allocation2 + $0x280] sm:$0xff] %vm19_vm0, %v1461_v21  ;;  %v304_v11 = vld [vmem:[#allocation2 + $0x2a0] sm:$0xff] }
 0x17d   :  { %v1770_v31 = vadd.f32 %v3826_v46, %v1663_v24  ;;  %v1105_v32 = vpop.f32.mrf.mxu0  ;;  %v1305_v33 = vpop.f32.mrf.mxu1  ;;  %v255_v23 = vld [vmem:[#allocation2 + $0x118] sm:$0xff] }
 0x17e   :  { %2320 = vst.msk [vmem:[%s4134_s3 + $0x6c] sm:$0xf] %vm2292_vm1, %v2641_v28  ;;  %2370 = vst.msk [vmem:[%s4134_s3 + $0x134] sm:$0xf] %vm2292_vm1, %v2691_v29  ;;  %v1820_v34 = vmax.f32 %v1720_v30, 0.0  ;;  %v1412_v36 = vadd.f32 %v1105_v32, %v251_v22  ;;  %v1462_v37 = vadd.f32 %v1305_v33, %v301_v27  ;;  %v305_v28 = vld [vmem:[#allocation2 + $0x2a8] sm:$0xff] }
 0x17f   :  { %v1870_v35 = vmax.f32 %v1770_v31, 0.0  ;;  %v1614_v39 = vld [vmem:[#allocation2 + $0xe8] sm:$0xff]  ;;  %v1107_v41 = vpop.f32.mrf.mxu0  ;;  %v1307_v42 = vpop.f32.mrf.mxu1 }
 0x180   :  { %v1664_v40 = vld [vmem:[#allocation2 + $0x278] sm:$0xff]  ;;  %v2642_v44 = vpack.c.bf16 %v1820_v34, %v1820_v34  ;;  %v1721_v47 = vadd.f32 %v3826_v46, %v1614_v39  ;;  %1513 = vst.msk [vmem:[#allocation2 + $0xf8] sm:$0xff] %vm19_vm0, %v1412_v36  ;;  %1563 = vst.msk [vmem:[#allocation2 + $0x288] sm:$0xff] %vm19_vm0, %v1462_v37  ;;  %v256_v39 = vld [vmem:[#allocation2 + $0x120] sm:$0xff] }
 0x181   :  { %v2692_v45 = vpack.c.bf16 %v1870_v35, %v1870_v35  ;;  %v1771_v48 = vadd.f32 %v3826_v46, %v1664_v40  ;;  %v1110_v49 = vpop.f32.mrf.mxu0  ;;  %v1310_v12 = vpop.f32.mrf.mxu1 }
 0x182   :  { %2321 = vst.msk [vmem:[%s4134_s3 + $0x70] sm:$0xf] %vm2292_vm1, %v2642_v44  ;;  %v1821_v50 = vmax.f32 %v1721_v47, 0.0  ;;  %v1413_v52 = vadd.f32 %v1110_v49, %v252_v38  ;;  %v1463_v53 = vadd.f32 %v1310_v12, %v302_v43  ;;  %v306_v44 = vld [vmem:[#allocation2 + $0x2b0] sm:$0xff] }
 0x183   :  { %2371 = vst.msk [vmem:[%s4134_s3 + $0x138] sm:$0xf] %vm2292_vm1, %v2692_v45  ;;  %v1871_v51 = vmax.f32 %v1771_v48, 0.0  ;;  %v1615_v55 = vld [vmem:[#allocation2 + $0xf0] sm:$0xff]  ;;  %v1665_v56 = vld [vmem:[#allocation2 + $0x280] sm:$0xff]  ;;  %v1112_v57 = vpop.f32.mrf.mxu0  ;;  %v1312_v58 = vpop.f32.mrf.mxu1 }
 0x184   :  { %v2643_v60 = vpack.c.bf16 %v1821_v50, %v1821_v50  ;;  %v1722_v62 = vadd.f32 %v3826_v46, %v1615_v55  ;;  %v1772_v63 = vadd.f32 %v3826_v46, %v1665_v56  ;;  %1514 = vst.msk [vmem:[#allocation2 + $0x100] sm:$0xff] %vm19_vm0, %v1413_v52  ;;  %1564 = vst.msk [vmem:[#allocation2 + $0x290] sm:$0xff] %vm19_vm0, %v1463_v53  ;;  %v257_v55 = vld [vmem:[#allocation2 + $0x128] sm:$0xff] }
 0x185   :  { %v2693_v61 = vpack.c.bf16 %v1871_v51, %v1871_v51  ;;  %v1113_v0 = vpop.f32.mrf.mxu0  ;;  %v1313_v1 = vpop.f32.mrf.mxu1 }
 0x186   :  { %2322 = vst.msk [vmem:[%s4134_s3 + $0x74] sm:$0xf] %vm2292_vm1, %v2643_v60  ;;  %v1822_v2 = vmax.f32 %v1722_v62, 0.0  ;;  %v1872_v3 = vmax.f32 %v1772_v63, 0.0  ;;  %v1414_v4 = vadd.f32 %v1113_v0, %v253_v54  ;;  %v1464_v5 = vadd.f32 %v1313_v1, %v303_v59  ;;  %v307_v60 = vld [vmem:[#allocation2 + $0x2b8] sm:$0xff] }
 0x187   :  { %2372 = vst.msk [vmem:[%s4134_s3 + $0x13c] sm:$0xf] %vm2292_vm1, %v2693_v61  ;;  %v1616_v7 = vld [vmem:[#allocation2 + $0xf8] sm:$0xff]  ;;  %v1666_v8 = vld [vmem:[#allocation2 + $0x288] sm:$0xff]  ;;  %v1115_v9 = vpop.f32.mrf.mxu0  ;;  %v1315_v10 = vpop.f32.mrf.mxu1 }
 0x188   :  { %v2644_v13 = vpack.c.bf16 %v1822_v2, %v1822_v2  ;;  %v2694_v14 = vpack.c.bf16 %v1872_v3, %v1872_v3  ;;  %v1723_v15 = vadd.f32 %v3826_v46, %v1616_v7  ;;  %v1773_v16 = vadd.f32 %v3826_v46, %v1666_v8  ;;  %1515 = vst.msk [vmem:[#allocation2 + $0x108] sm:$0xff] %vm19_vm0, %v1414_v4  ;;  %v258_v7 = vld [vmem:[#allocation2 + $0x130] sm:$0xff] }
 0x189   :  { %1565 = vst.msk [vmem:[#allocation2 + $0x298] sm:$0xff] %vm19_vm0, %v1464_v5  ;;  %v1118_v17 = vpop.f32.mrf.mxu0  ;;  %v1318_v18 = vpop.f32.mrf.mxu1 }
 0x18a   :  { %2323 = vst.msk [vmem:[%s4134_s3 + $0x78] sm:$0xf] %vm2292_vm1, %v2644_v13  ;;  %2373 = vst.msk [vmem:[%s4134_s3 + $0x140] sm:$0xf] %vm2292_vm1, %v2694_v14  ;;  %v1823_v19 = vmax.f32 %v1723_v15, 0.0  ;;  %v1873_v20 = vmax.f32 %v1773_v16, 0.0  ;;  %v1415_v21 = vadd.f32 %v1118_v17, %v254_v6  ;;  %v1465_v22 = vadd.f32 %v1318_v18, %v304_v11 }
 0x18b   :  { %v1617_v24 = vld [vmem:[#allocation2 + $0x100] sm:$0xff]  ;;  %v1667_v25 = vld [vmem:[#allocation2 + $0x290] sm:$0xff]  ;;  %v1120_v26 = vpop.f32.mrf.mxu0  ;;  %v1320_v27 = vpop.f32.mrf.mxu1 }
 0x18c   :  { %v2645_v29 = vpack.c.bf16 %v1823_v19, %v1823_v19  ;;  %v2695_v30 = vpack.c.bf16 %v1873_v20, %v1873_v20  ;;  %v1724_v31 = vadd.f32 %v3826_v46, %v1617_v24  ;;  %v1774_v32 = vadd.f32 %v3826_v46, %v1667_v25  ;;  %1516 = vst.msk [vmem:[#allocation2 + $0x110] sm:$0xff] %vm19_vm0, %v1415_v21  ;;  %v308_v13 = vld [vmem:[#allocation2 + $0x2c0] sm:$0xff]  ;;  %v259_v24 = vld [vmem:[#allocation2 + $0x138] sm:$0xff] }
 0x18d   :  { %1566 = vst.msk [vmem:[#allocation2 + $0x2a0] sm:$0xff] %vm19_vm0, %v1465_v22  ;;  %v1121_v33 = vpop.f32.mrf.mxu0  ;;  %v1321_v34 = vpop.f32.mrf.mxu1 }
 0x18e   :  { %2324 = vst.msk [vmem:[%s4134_s3 + $0x7c] sm:$0xf] %vm2292_vm1, %v2645_v29  ;;  %2374 = vst.msk [vmem:[%s4134_s3 + $0x144] sm:$0xf] %vm2292_vm1, %v2695_v30  ;;  %v1824_v35 = vmax.f32 %v1724_v31, 0.0  ;;  %v1874_v36 = vmax.f32 %v1774_v32, 0.0  ;;  %v1416_v37 = vadd.f32 %v1121_v33, %v255_v23  ;;  %v1466_v38 = vadd.f32 %v1321_v34, %v305_v28 }
 0x18f   :  { %v1618_v40 = vld [vmem:[#allocation2 + $0x108] sm:$0xff]  ;;  %v1123_v42 = vpop.f32.mrf.mxu0  ;;  %v1323_v43 = vpop.f32.mrf.mxu1 }
 0x190   :  { %v1668_v41 = vld [vmem:[#allocation2 + $0x298] sm:$0xff]  ;;  %v2646_v45 = vpack.c.bf16 %v1824_v35, %v1824_v35  ;;  %v2696_v47 = vpack.c.bf16 %v1874_v36, %v1874_v36  ;;  %v1725_v48 = vadd.f32 %v3826_v46, %v1618_v40  ;;  %1517 = vst.msk [vmem:[#allocation2 + $0x118] sm:$0xff] %vm19_vm0, %v1416_v37  ;;  %1567 = vst.msk [vmem:[#allocation2 + $0x2a8] sm:$0xff] %vm19_vm0, %v1466_v38  ;;  %v309_v29 = vld [vmem:[#allocation2 + $0x2c8] sm:$0xff] }
 0x191   :  { %v1775_v49 = vadd.f32 %v3826_v46, %v1668_v41  ;;  %v1126_v12 = vpop.f32.mrf.mxu0  ;;  %v1326_v50 = vpop.f32.mrf.mxu1  ;;  %v260_v40 = vld [vmem:[#allocation2 + $0x140] sm:$0xff] }
 0x192   :  { %2325 = vst.msk [vmem:[%s4134_s3 + $0x80] sm:$0xf] %vm2292_vm1, %v2646_v45  ;;  %2375 = vst.msk [vmem:[%s4134_s3 + $0x148] sm:$0xf] %vm2292_vm1, %v2696_v47  ;;  %v1825_v51 = vmax.f32 %v1725_v48, 0.0  ;;  %v1417_v53 = vadd.f32 %v1126_v12, %v256_v39  ;;  %v1467_v54 = vadd.f32 %v1326_v50, %v306_v44  ;;  %v310_v45 = vld [vmem:[#allocation2 + $0x2d0] sm:$0xff] }
 0x193   :  { %v1875_v52 = vmax.f32 %v1775_v49, 0.0  ;;  %v1619_v56 = vld [vmem:[#allocation2 + $0x110] sm:$0xff]  ;;  %v1128_v58 = vpop.f32.mrf.mxu0  ;;  %v1328_v59 = vpop.f32.mrf.mxu1 }
 0x194   :  { %v1669_v57 = vld [vmem:[#allocation2 + $0x2a0] sm:$0xff]  ;;  %v2647_v61 = vpack.c.bf16 %v1825_v51, %v1825_v51  ;;  %v1726_v63 = vadd.f32 %v3826_v46, %v1619_v56  ;;  %1518 = vst.msk [vmem:[#allocation2 + $0x120] sm:$0xff] %vm19_vm0, %v1417_v53  ;;  %1568 = vst.msk [vmem:[#allocation2 + $0x2b0] sm:$0xff] %vm19_vm0, %v1467_v54  ;;  %v261_v56 = vld [vmem:[#allocation2 + $0x148] sm:$0xff] }
 0x195   :  { %v2697_v62 = vpack.c.bf16 %v1875_v52, %v1875_v52  ;;  %v1776_v0 = vadd.f32 %v3826_v46, %v1669_v57  ;;  %v1129_v1 = vpop.f32.mrf.mxu0  ;;  %v1329_v2 = vpop.f32.mrf.mxu1 }
 0x196   :  { %2326 = vst.msk [vmem:[%s4134_s3 + $0x84] sm:$0xf] %vm2292_vm1, %v2647_v61  ;;  %v1826_v3 = vmax.f32 %v1726_v63, 0.0  ;;  %v1418_v5 = vadd.f32 %v1129_v1, %v257_v55  ;;  %v1468_v6 = vadd.f32 %v1329_v2, %v307_v60  ;;  %v311_v61 = vld [vmem:[#allocation2 + $0x2d8] sm:$0xff] }
 0x197   :  { %2376 = vst.msk [vmem:[%s4134_s3 + $0x14c] sm:$0xf] %vm2292_vm1, %v2697_v62  ;;  %v1876_v4 = vmax.f32 %v1776_v0, 0.0  ;;  %v1620_v8 = vld [vmem:[#allocation2 + $0x118] sm:$0xff]  ;;  %v1670_v9 = vld [vmem:[#allocation2 + $0x2a8] sm:$0xff]  ;;  %v1131_v10 = vpop.f32.mrf.mxu0  ;;  %v1331_v11 = vpop.f32.mrf.mxu1 }
 0x198   :  { %v2648_v14 = vpack.c.bf16 %v1826_v3, %v1826_v3  ;;  %v1727_v16 = vadd.f32 %v3826_v46, %v1620_v8  ;;  %v1777_v17 = vadd.f32 %v3826_v46, %v1670_v9  ;;  %1519 = vst.msk [vmem:[#allocation2 + $0x128] sm:$0xff] %vm19_vm0, %v1418_v5  ;;  %1569 = vst.msk [vmem:[#allocation2 + $0x2b8] sm:$0xff] %vm19_vm0, %v1468_v6  ;;  %v262_v8 = vld [vmem:[#allocation2 + $0x150] sm:$0xff] }
 0x199   :  { %v2698_v15 = vpack.c.bf16 %v1876_v4, %v1876_v4  ;;  %v1134_v18 = vpop.f32.mrf.mxu0  ;;  %v1334_v19 = vpop.f32.mrf.mxu1 }
 0x19a   :  { %2327 = vst.msk [vmem:[%s4134_s3 + $0x88] sm:$0xf] %vm2292_vm1, %v2648_v14  ;;  %v1827_v20 = vmax.f32 %v1727_v16, 0.0  ;;  %v1877_v21 = vmax.f32 %v1777_v17, 0.0  ;;  %v1419_v22 = vadd.f32 %v1134_v18, %v258_v7  ;;  %v1469_v23 = vadd.f32 %v1334_v19, %v308_v13  ;;  %v312_v14 = vld [vmem:[#allocation2 + $0x2e0] sm:$0xff] }
 0x19b   :  { %2377 = vst.msk [vmem:[%s4134_s3 + $0x150] sm:$0xf] %vm2292_vm1, %v2698_v15  ;;  %v1621_v25 = vld [vmem:[#allocation2 + $0x120] sm:$0xff]  ;;  %v1671_v26 = vld [vmem:[#allocation2 + $0x2b0] sm:$0xff]  ;;  %v1136_v27 = vpop.f32.mrf.mxu0  ;;  %v1336_v28 = vpop.f32.mrf.mxu1 }
 0x19c   :  { %v2649_v30 = vpack.c.bf16 %v1827_v20, %v1827_v20  ;;  %v2699_v31 = vpack.c.bf16 %v1877_v21, %v1877_v21  ;;  %v1728_v32 = vadd.f32 %v3826_v46, %v1621_v25  ;;  %v1778_v33 = vadd.f32 %v3826_v46, %v1671_v26  ;;  %1520 = vst.msk [vmem:[#allocation2 + $0x130] sm:$0xff] %vm19_vm0, %v1419_v22  ;;  %v263_v25 = vld [vmem:[#allocation2 + $0x158] sm:$0xff] }
 0x19d   :  { %1570 = vst.msk [vmem:[#allocation2 + $0x2c0] sm:$0xff] %vm19_vm0, %v1469_v23  ;;  %v1137_v34 = vpop.f32.mrf.mxu0  ;;  %v1337_v35 = vpop.f32.mrf.mxu1 }
 0x19e   :  { %2328 = vst.msk [vmem:[%s4134_s3 + $0x8c] sm:$0xf] %vm2292_vm1, %v2649_v30  ;;  %2378 = vst.msk [vmem:[%s4134_s3 + $0x154] sm:$0xf] %vm2292_vm1, %v2699_v31  ;;  %v1828_v36 = vmax.f32 %v1728_v32, 0.0  ;;  %v1878_v37 = vmax.f32 %v1778_v33, 0.0  ;;  %v1420_v38 = vadd.f32 %v1137_v34, %v259_v24  ;;  %v1470_v39 = vadd.f32 %v1337_v35, %v309_v29 }
 0x19f   :  { %v1622_v41 = vld [vmem:[#allocation2 + $0x128] sm:$0xff]  ;;  %v1672_v42 = vld [vmem:[#allocation2 + $0x2b8] sm:$0xff]  ;;  %v1139_v43 = vpop.f32.mrf.mxu0  ;;  %v1339_v44 = vpop.f32.mrf.mxu1 }
 0x1a0   :  { %v2650_v47 = vpack.c.bf16 %v1828_v36, %v1828_v36  ;;  %v2700_v48 = vpack.c.bf16 %v1878_v37, %v1878_v37  ;;  %v1729_v49 = vadd.f32 %v3826_v46, %v1622_v41  ;;  %v1779_v12 = vadd.f32 %v3826_v46, %v1672_v42  ;;  %1521 = vst.msk [vmem:[#allocation2 + $0x138] sm:$0xff] %vm19_vm0, %v1420_v38  ;;  %v313_v30 = vld [vmem:[#allocation2 + $0x2e8] sm:$0xff]  ;;  %v264_v41 = vld [vmem:[#allocation2 + $0x160] sm:$0xff] }
 0x1a1   :  { %1571 = vst.msk [vmem:[#allocation2 + $0x2c8] sm:$0xff] %vm19_vm0, %v1470_v39  ;;  %v1142_v50 = vpop.f32.mrf.mxu0  ;;  %v1342_v51 = vpop.f32.mrf.mxu1 }
 0x1a2   :  { %2329 = vst.msk [vmem:[%s4134_s3 + $0x90] sm:$0xf] %vm2292_vm1, %v2650_v47  ;;  %2379 = vst.msk [vmem:[%s4134_s3 + $0x158] sm:$0xf] %vm2292_vm1, %v2700_v48  ;;  %v1829_v52 = vmax.f32 %v1729_v49, 0.0  ;;  %v1879_v53 = vmax.f32 %v1779_v12, 0.0  ;;  %v1421_v54 = vadd.f32 %v1142_v50, %v260_v40  ;;  %v1471_v55 = vadd.f32 %v1342_v51, %v310_v45 }
 0x1a3   :  { %v1623_v57 = vld [vmem:[#allocation2 + $0x130] sm:$0xff]  ;;  %v1144_v59 = vpop.f32.mrf.mxu0  ;;  %v1344_v60 = vpop.f32.mrf.mxu1 }
 0x1a4   :  { %v1673_v58 = vld [vmem:[#allocation2 + $0x2c0] sm:$0xff]  ;;  %v2651_v62 = vpack.c.bf16 %v1829_v52, %v1829_v52  ;;  %v2701_v63 = vpack.c.bf16 %v1879_v53, %v1879_v53  ;;  %v1730_v0 = vadd.f32 %v3826_v46, %v1623_v57  ;;  %1522 = vst.msk [vmem:[#allocation2 + $0x140] sm:$0xff] %vm19_vm0, %v1421_v54  ;;  %1572 = vst.msk [vmem:[#allocation2 + $0x2d0] sm:$0xff] %vm19_vm0, %v1471_v55  ;;  %v314_v47 = vld [vmem:[#allocation2 + $0x2f0] sm:$0xff] }
 0x1a5   :  { %v1780_v1 = vadd.f32 %v3826_v46, %v1673_v58  ;;  %v1145_v2 = vpop.f32.mrf.mxu0  ;;  %v1345_v3 = vpop.f32.mrf.mxu1  ;;  %v265_v57 = vld [vmem:[#allocation2 + $0x168] sm:$0xff] }
 0x1a6   :  { %2330 = vst.msk [vmem:[%s4134_s3 + $0x94] sm:$0xf] %vm2292_vm1, %v2651_v62  ;;  %2380 = vst.msk [vmem:[%s4134_s3 + $0x15c] sm:$0xf] %vm2292_vm1, %v2701_v63  ;;  %v1830_v4 = vmax.f32 %v1730_v0, 0.0  ;;  %v1422_v6 = vadd.f32 %v1145_v2, %v261_v56  ;;  %v1472_v7 = vadd.f32 %v1345_v3, %v311_v61  ;;  %v315_v62 = vld [vmem:[#allocation2 + $0x2f8] sm:$0xff] }
 0x1a7   :  { %v1880_v5 = vmax.f32 %v1780_v1, 0.0  ;;  %v1624_v9 = vld [vmem:[#allocation2 + $0x138] sm:$0xff]  ;;  %v1147_v11 = vpop.f32.mrf.mxu0  ;;  %v1347_v13 = vpop.f32.mrf.mxu1 }
 0x1a8   :  { %v1674_v10 = vld [vmem:[#allocation2 + $0x2c8] sm:$0xff]  ;;  %v2652_v15 = vpack.c.bf16 %v1830_v4, %v1830_v4  ;;  %v1731_v17 = vadd.f32 %v3826_v46, %v1624_v9  ;;  %1523 = vst.msk [vmem:[#allocation2 + $0x148] sm:$0xff] %vm19_vm0, %v1422_v6  ;;  %1573 = vst.msk [vmem:[#allocation2 + $0x2d8] sm:$0xff] %vm19_vm0, %v1472_v7  ;;  %v266_v9 = vld [vmem:[#allocation2 + $0x170] sm:$0xff] }
 0x1a9   :  { %v2702_v16 = vpack.c.bf16 %v1880_v5, %v1880_v5  ;;  %v1781_v18 = vadd.f32 %v3826_v46, %v1674_v10  ;;  %v1150_v19 = vpop.f32.mrf.mxu0  ;;  %v1350_v20 = vpop.f32.mrf.mxu1 }
 0x1aa   :  { %2331 = vst.msk [vmem:[%s4134_s3 + $0x98] sm:$0xf] %vm2292_vm1, %v2652_v15  ;;  %v1831_v21 = vmax.f32 %v1731_v17, 0.0  ;;  %v1423_v23 = vadd.f32 %v1150_v19, %v262_v8  ;;  %v1473_v24 = vadd.f32 %v1350_v20, %v312_v14  ;;  %v316_v15 = vld [vmem:[#allocation2 + $0x300] sm:$0xff] }
 0x1ab   :  { %2381 = vst.msk [vmem:[%s4134_s3 + $0x160] sm:$0xf] %vm2292_vm1, %v2702_v16  ;;  %v1881_v22 = vmax.f32 %v1781_v18, 0.0  ;;  %v1625_v26 = vld [vmem:[#allocation2 + $0x140] sm:$0xff]  ;;  %v1675_v27 = vld [vmem:[#allocation2 + $0x2d0] sm:$0xff]  ;;  %v1152_v28 = vpop.f32.mrf.mxu0  ;;  %v1352_v29 = vpop.f32.mrf.mxu1 }
 0x1ac   :  { %v2653_v31 = vpack.c.bf16 %v1831_v21, %v1831_v21  ;;  %v1732_v33 = vadd.f32 %v3826_v46, %v1625_v26  ;;  %v1782_v34 = vadd.f32 %v3826_v46, %v1675_v27  ;;  %1524 = vst.msk [vmem:[#allocation2 + $0x150] sm:$0xff] %vm19_vm0, %v1423_v23  ;;  %1574 = vst.msk [vmem:[#allocation2 + $0x2e0] sm:$0xff] %vm19_vm0, %v1473_v24  ;;  %v267_v26 = vld [vmem:[#allocation2 + $0x178] sm:$0xff] }
 0x1ad   :  { %v2703_v32 = vpack.c.bf16 %v1881_v22, %v1881_v22  ;;  %v1153_v35 = vpop.f32.mrf.mxu0  ;;  %v1353_v36 = vpop.f32.mrf.mxu1 }
 0x1ae   :  { %2332 = vst.msk [vmem:[%s4134_s3 + $0x9c] sm:$0xf] %vm2292_vm1, %v2653_v31  ;;  %v1832_v37 = vmax.f32 %v1732_v33, 0.0  ;;  %v1882_v38 = vmax.f32 %v1782_v34, 0.0  ;;  %v1424_v39 = vadd.f32 %v1153_v35, %v263_v25  ;;  %v1474_v40 = vadd.f32 %v1353_v36, %v313_v30  ;;  %v317_v31 = vld [vmem:[#allocation2 + $0x308] sm:$0xff] }
 0x1af   :  { %2382 = vst.msk [vmem:[%s4134_s3 + $0x164] sm:$0xf] %vm2292_vm1, %v2703_v32  ;;  %v1626_v42 = vld [vmem:[#allocation2 + $0x148] sm:$0xff]  ;;  %v1676_v43 = vld [vmem:[#allocation2 + $0x2d8] sm:$0xff]  ;;  %v1155_v44 = vpop.f32.mrf.mxu0  ;;  %v1355_v45 = vpop.f32.mrf.mxu1 }
 0x1b0   :  { %v2654_v48 = vpack.c.bf16 %v1832_v37, %v1832_v37  ;;  %v2704_v49 = vpack.c.bf16 %v1882_v38, %v1882_v38  ;;  %v1733_v12 = vadd.f32 %v3826_v46, %v1626_v42  ;;  %v1783_v50 = vadd.f32 %v3826_v46, %v1676_v43  ;;  %1525 = vst.msk [vmem:[#allocation2 + $0x158] sm:$0xff] %vm19_vm0, %v1424_v39  ;;  %v268_v42 = vld [vmem:[#allocation2 + $0x180] sm:$0xff] }
 0x1b1   :  { %1575 = vst.msk [vmem:[#allocation2 + $0x2e8] sm:$0xff] %vm19_vm0, %v1474_v40  ;;  %v1158_v51 = vpop.f32.mrf.mxu0  ;;  %v1358_v52 = vpop.f32.mrf.mxu1 }
 0x1b2   :  { %2333 = vst.msk [vmem:[%s4134_s3 + $0xa0] sm:$0xf] %vm2292_vm1, %v2654_v48  ;;  %2383 = vst.msk [vmem:[%s4134_s3 + $0x168] sm:$0xf] %vm2292_vm1, %v2704_v49  ;;  %v1833_v53 = vmax.f32 %v1733_v12, 0.0  ;;  %v1883_v54 = vmax.f32 %v1783_v50, 0.0  ;;  %v1425_v55 = vadd.f32 %v1158_v51, %v264_v41  ;;  %v1475_v56 = vadd.f32 %v1358_v52, %v314_v47 }
 0x1b3   :  { %v1627_v58 = vld [vmem:[#allocation2 + $0x150] sm:$0xff]  ;;  %v1677_v59 = vld [vmem:[#allocation2 + $0x2e0] sm:$0xff]  ;;  %v1160_v60 = vpop.f32.mrf.mxu0  ;;  %v1360_v61 = vpop.f32.mrf.mxu1 }
 0x1b4   :  { %v2655_v63 = vpack.c.bf16 %v1833_v53, %v1833_v53  ;;  %v2705_v0 = vpack.c.bf16 %v1883_v54, %v1883_v54  ;;  %v1734_v1 = vadd.f32 %v3826_v46, %v1627_v58  ;;  %v1784_v2 = vadd.f32 %v3826_v46, %v1677_v59  ;;  %1526 = vst.msk [vmem:[#allocation2 + $0x160] sm:$0xff] %vm19_vm0, %v1425_v55  ;;  %v318_v48 = vld [vmem:[#allocation2 + $0x310] sm:$0xff]  ;;  %v269_v58 = vld [vmem:[#allocation2 + $0x188] sm:$0xff] }
 0x1b5   :  { %1576 = vst.msk [vmem:[#allocation2 + $0x2f0] sm:$0xff] %vm19_vm0, %v1475_v56  ;;  %v1161_v3 = vpop.f32.mrf.mxu0  ;;  %v1361_v4 = vpop.f32.mrf.mxu1 }
 0x1b6   :  { %2334 = vst.msk [vmem:[%s4134_s3 + $0xa4] sm:$0xf] %vm2292_vm1, %v2655_v63  ;;  %2384 = vst.msk [vmem:[%s4134_s3 + $0x16c] sm:$0xf] %vm2292_vm1, %v2705_v0  ;;  %v1834_v5 = vmax.f32 %v1734_v1, 0.0  ;;  %v1884_v6 = vmax.f32 %v1784_v2, 0.0  ;;  %v1426_v7 = vadd.f32 %v1161_v3, %v265_v57  ;;  %v1476_v8 = vadd.f32 %v1361_v4, %v315_v62 }
 0x1b7   :  { %v1628_v10 = vld [vmem:[#allocation2 + $0x158] sm:$0xff]  ;;  %v1163_v13 = vpop.f32.mrf.mxu0  ;;  %v1363_v14 = vpop.f32.mrf.mxu1 }
 0x1b8   :  { %v1678_v11 = vld [vmem:[#allocation2 + $0x2e8] sm:$0xff]  ;;  %v2656_v16 = vpack.c.bf16 %v1834_v5, %v1834_v5  ;;  %v2706_v17 = vpack.c.bf16 %v1884_v6, %v1884_v6  ;;  %v1735_v18 = vadd.f32 %v3826_v46, %v1628_v10  ;;  %1527 = vst.msk [vmem:[#allocation2 + $0x168] sm:$0xff] %vm19_vm0, %v1426_v7  ;;  %1577 = vst.msk [vmem:[#allocation2 + $0x2f8] sm:$0xff] %vm19_vm0, %v1476_v8  ;;  %v319_v63 = vld [vmem:[#allocation2 + $0x318] sm:$0xff] }
 0x1b9   :  { %v1785_v19 = vadd.f32 %v3826_v46, %v1678_v11  ;;  %v1166_v20 = vpop.f32.mrf.mxu0  ;;  %v1366_v21 = vpop.f32.mrf.mxu1 }
 0x1ba   :  { %2335 = vst.msk [vmem:[%s4134_s3 + $0xa8] sm:$0xf] %vm2292_vm1, %v2656_v16  ;;  %2385 = vst.msk [vmem:[%s4134_s3 + $0x170] sm:$0xf] %vm2292_vm1, %v2706_v17  ;;  %v1835_v22 = vmax.f32 %v1735_v18, 0.0  ;;  %v1427_v24 = vadd.f32 %v1166_v20, %v266_v9  ;;  %v1477_v25 = vadd.f32 %v1366_v21, %v316_v15 }
 0x1bb   :  { %v1885_v23 = vmax.f32 %v1785_v19, 0.0  ;;  %v1629_v27 = vld [vmem:[#allocation2 + $0x160] sm:$0xff]  ;;  %v1168_v29 = vpop.f32.mrf.mxu0  ;;  %v1368_v30 = vpop.f32.mrf.mxu1 }
 0x1bc   :  { %v1679_v28 = vld [vmem:[#allocation2 + $0x2f0] sm:$0xff]  ;;  %v2657_v32 = vpack.c.bf16 %v1835_v22, %v1835_v22  ;;  %v1736_v34 = vadd.f32 %v3826_v46, %v1629_v27  ;;  %1528 = vst.msk [vmem:[#allocation2 + $0x170] sm:$0xff] %vm19_vm0, %v1427_v24  ;;  %1578 = vst.msk [vmem:[#allocation2 + $0x300] sm:$0xff] %vm19_vm0, %v1477_v25 }
 0x1bd   :  { %v2707_v33 = vpack.c.bf16 %v1885_v23, %v1885_v23  ;;  %v1786_v35 = vadd.f32 %v3826_v46, %v1679_v28  ;;  %v1169_v36 = vpop.f32.mrf.mxu0  ;;  %v1369_v37 = vpop.f32.mrf.mxu1 }
 0x1be   :  { %2336 = vst.msk [vmem:[%s4134_s3 + $0xac] sm:$0xf] %vm2292_vm1, %v2657_v32  ;;  %v1836_v38 = vmax.f32 %v1736_v34, 0.0  ;;  %v1428_v40 = vadd.f32 %v1169_v36, %v267_v26  ;;  %v1478_v41 = vadd.f32 %v1369_v37, %v317_v31 }
 0x1bf   :  { %2386 = vst.msk [vmem:[%s4134_s3 + $0x174] sm:$0xf] %vm2292_vm1, %v2707_v33  ;;  %v1886_v39 = vmax.f32 %v1786_v35, 0.0  ;;  %v1630_v43 = vld [vmem:[#allocation2 + $0x168] sm:$0xff]  ;;  %v1680_v44 = vld [vmem:[#allocation2 + $0x2f8] sm:$0xff]  ;;  %v1171_v45 = vpop.f32.mrf.mxu0  ;;  %v1371_v47 = vpop.f32.mrf.mxu1 }
 0x1c0   :  { %v2658_v49 = vpack.c.bf16 %v1836_v38, %v1836_v38  ;;  %v1737_v50 = vadd.f32 %v3826_v46, %v1630_v43  ;;  %v1787_v51 = vadd.f32 %v3826_v46, %v1680_v44  ;;  %1529 = vst.msk [vmem:[#allocation2 + $0x178] sm:$0xff] %vm19_vm0, %v1428_v40  ;;  %1579 = vst.msk [vmem:[#allocation2 + $0x308] sm:$0xff] %vm19_vm0, %v1478_v41 }
 0x1c1   :  { %v2708_v12 = vpack.c.bf16 %v1886_v39, %v1886_v39  ;;  %v1174_v52 = vpop.f32.mrf.mxu0  ;;  %v1374_v53 = vpop.f32.mrf.mxu1 }
 0x1c2   :  { %2337 = vst.msk [vmem:[%s4134_s3 + $0xb0] sm:$0xf] %vm2292_vm1, %v2658_v49  ;;  %v1837_v54 = vmax.f32 %v1737_v50, 0.0  ;;  %v1887_v55 = vmax.f32 %v1787_v51, 0.0  ;;  %v1429_v56 = vadd.f32 %v1174_v52, %v268_v42  ;;  %v1479_v57 = vadd.f32 %v1374_v53, %v318_v48 }
 0x1c3   :  { %2387 = vst.msk [vmem:[%s4134_s3 + $0x178] sm:$0xf] %vm2292_vm1, %v2708_v12  ;;  %v1631_v59 = vld [vmem:[#allocation2 + $0x170] sm:$0xff]  ;;  %v1681_v60 = vld [vmem:[#allocation2 + $0x300] sm:$0xff]  ;;  %v1176_v61 = vpop.f32.mrf.mxu0  ;;  %v1376_v62 = vpop.f32.mrf.mxu1 }
 0x1c4   :  { %v2659_v0 = vpack.c.bf16 %v1837_v54, %v1837_v54  ;;  %v2709_v1 = vpack.c.bf16 %v1887_v55, %v1887_v55  ;;  %v1738_v2 = vadd.f32 %v3826_v46, %v1631_v59  ;;  %v1788_v3 = vadd.f32 %v3826_v46, %v1681_v60  ;;  %1530 = vst.msk [vmem:[#allocation2 + $0x180] sm:$0xff] %vm19_vm0, %v1429_v56 }
 0x1c5   :  { %1580 = vst.msk [vmem:[#allocation2 + $0x310] sm:$0xff] %vm19_vm0, %v1479_v57  ;;  %v1177_v4 = vpop.f32.mrf.mxu0  ;;  %v1377_v5 = vpop.f32.mrf.mxu1 }
 0x1c6   :  { %2338 = vst.msk [vmem:[%s4134_s3 + $0xb4] sm:$0xf] %vm2292_vm1, %v2659_v0  ;;  %2388 = vst.msk [vmem:[%s4134_s3 + $0x17c] sm:$0xf] %vm2292_vm1, %v2709_v1  ;;  %v1838_v6 = vmax.f32 %v1738_v2, 0.0  ;;  %v1888_v7 = vmax.f32 %v1788_v3, 0.0  ;;  %v1430_v8 = vadd.f32 %v1177_v4, %v269_v58  ;;  %v1480_v9 = vadd.f32 %v1377_v5, %v319_v63 }
 0x1c7   :  { %v1632_v10 = vld [vmem:[#allocation2 + $0x178] sm:$0xff]  ;;  %v1682_v11 = vld [vmem:[#allocation2 + $0x308] sm:$0xff]  ;;  %v1179_v13 = vpop.f32.mrf.mxu0  ;;  %v1379_v14 = vpop.f32.mrf.mxu1 }
 0x1c8   :  { %v2660_v15 = vpack.c.bf16 %v1838_v6, %v1838_v6  ;;  %v2710_v16 = vpack.c.bf16 %v1888_v7, %v1888_v7  ;;  %v1739_v17 = vadd.f32 %v3826_v46, %v1632_v10  ;;  %v1789_v18 = vadd.f32 %v3826_v46, %v1682_v11  ;;  %1531 = vst.msk [vmem:[#allocation2 + $0x188] sm:$0xff] %vm19_vm0, %v1430_v8 }
 0x1c9   :  { %1581 = vst.msk [vmem:[#allocation2 + $0x318] sm:$0xff] %vm19_vm0, %v1480_v9 }
 0x1ca   :  { %2339 = vst.msk [vmem:[%s4134_s3 + $0xb8] sm:$0xf] %vm2292_vm1, %v2660_v15  ;;  %2389 = vst.msk [vmem:[%s4134_s3 + $0x180] sm:$0xf] %vm2292_vm1, %v2710_v16  ;;  %v1839_v19 = vmax.f32 %v1739_v17, 0.0  ;;  %v1889_v20 = vmax.f32 %v1789_v18, 0.0 }
 0x1cb   :  { %v1633_v21 = vld [vmem:[#allocation2 + $0x180] sm:$0xff] }
 0x1cc   :  { %v1683_v22 = vld [vmem:[#allocation2 + $0x310] sm:$0xff]  ;;  %v2661_v23 = vpack.c.bf16 %v1839_v19, %v1839_v19  ;;  %v2711_v24 = vpack.c.bf16 %v1889_v20, %v1889_v20  ;;  %v1740_v25 = vadd.f32 %v3826_v46, %v1633_v21 }
 0x1cd   :  { %v1790_v26 = vadd.f32 %v3826_v46, %v1683_v22 }
 0x1ce   :  { %2340 = vst.msk [vmem:[%s4134_s3 + $0xbc] sm:$0xf] %vm2292_vm1, %v2661_v23  ;;  %2390 = vst.msk [vmem:[%s4134_s3 + $0x184] sm:$0xf] %vm2292_vm1, %v2711_v24  ;;  %v1840_v27 = vmax.f32 %v1740_v25, 0.0 }
 0x1cf   :  { %v1890_v28 = vmax.f32 %v1790_v26, 0.0  ;;  %v1634_v29 = vld [vmem:[#allocation2 + $0x188] sm:$0xff] }
 0x1d0   :  { %v1684_v30 = vld [vmem:[#allocation2 + $0x318] sm:$0xff]  ;;  %v2662_v31 = vpack.c.bf16 %v1840_v27, %v1840_v27  ;;  %v1741_v33 = vadd.f32 %v3826_v46, %v1634_v29 }
 0x1d1   :  { %v2712_v32 = vpack.c.bf16 %v1890_v28, %v1890_v28  ;;  %v1791_v34 = vadd.f32 %v3826_v46, %v1684_v30 }
 0x1d2   :  { %2341 = vst.msk [vmem:[%s4134_s3 + $0xc0] sm:$0xf] %vm2292_vm1, %v2662_v31  ;;  %v1841_v35 = vmax.f32 %v1741_v33, 0.0 }
 0x1d3   :  { %2391 = vst.msk [vmem:[%s4134_s3 + $0x188] sm:$0xf] %vm2292_vm1, %v2712_v32  ;;  %v1891_v36 = vmax.f32 %v1791_v34, 0.0 }
 0x1d4   :  { %v2663_v37 = vpack.c.bf16 %v1841_v35, %v1841_v35 }
 0x1d5   :  { %v2713_v38 = vpack.c.bf16 %v1891_v36, %v1891_v36 }
 0x1d6   :  { %2342 = vst.msk [vmem:[%s4134_s3 + $0xc4] sm:$0xf] %vm2292_vm1, %v2663_v37 }
 0x1d7   :  { %2392 = vst.msk [vmem:[%s4134_s3 + $0x18c] sm:$0xf] %vm2292_vm1, %v2713_v38 }

// kernel: dqn_forward.6
= control target key start
LH: loop header
LB: loop body
LE: loop exit
PB: predicated region body
PF: predicated region fallthrough
CT: control target
= control target key end

     0   :  { %vm19_vm0 = vcmask 523264   ;;  %vm40_vm1 = vcmask 517120   ;;  %vm1017_vm2 = vcmask 519168   ;;  %vm1038_vm3 = vcmask 516096   ;;  %s1818_s1 = inlined_call_operand.vmem [shape: bf16[512,64], index: 1, kind: input, shape index: {}]   ;;  %s1819_s0 = inlined_call_operand.vmem [shape: bf16[162,512], index: 0, kind: input, shape index: {}]   ;;  %s1820_s2 = inlined_call_operand.vmem [shape: f32[1,64], index: 2, kind: input, shape index: {}]   ;;  %s1821_s3 = inlined_call_operand.vmem [shape: bf16[162,64], index: 3, kind: output, shape index: {}]  }
   0x1   :  { %v1328_v0 = vld [vmem:[%s1818_s1 + $0x78] sm:$0xff]   ;;  %v1332_v4 = vld [vmem:[%s1818_s1 + $0x70] sm:$0xff]   ;;  %v1336_v8 = vld [vmem:[%s1818_s1 + $0x68] sm:$0xff]  }
   0x2   :  { %v1329_v1 = vld [vmem:[%s1818_s1 + $0xf8] sm:$0xff]   ;;  %1163 = vmatprep.subr.bf16.mxu0 %v1328_v0  ;;  %v1333_v5 = vld [vmem:[%s1818_s1 + $0xf0] sm:$0xff]   ;;  %v1337_v9 = vld [vmem:[%s1818_s1 + $0xe8] sm:$0xff]  }
   0x3   :  { %v1330_v2 = vld [vmem:[%s1818_s1 + $0x38] sm:$0xff]   ;;  %1245 = vmatprep.subr.bf16.mxu1 %v1329_v1  ;;  %v1334_v6 = vld [vmem:[%s1818_s1 + $0x30] sm:$0xff]   ;;  %v1338_v10 = vld [vmem:[%s1818_s1 + $0x28] sm:$0xff]  }
   0x4   :  { %v1331_v3 = vld [vmem:[%s1818_s1 + $0xb8] sm:$0xff]   ;;  %1164 = vmatpush3.bf16.msra.mxu0 %v1330_v2  ;;  %v1335_v7 = vld [vmem:[%s1818_s1 + $0xb0] sm:$0xff]   ;;  %v1339_v11 = vld [vmem:[%s1818_s1 + $0xa8] sm:$0xff]  }
   0x5   :  { %1246 = vmatpush3.bf16.msra.mxu1 %v1331_v3  ;;  %1165 = vmatprep.subr.bf16.mxu0 %v1332_v4  ;;  %v1340_v12 = vld [vmem:[%s1818_s1 + $0x60] sm:$0xff]   ;;  %v1344_v16 = vld [vmem:[%s1818_s1 + $0x58] sm:$0xff]   ;;  %v1348_v20 = vld [vmem:[%s1818_s1 + $0x50] sm:$0xff]  }
   0x6   :  { %1247 = vmatprep.subr.bf16.mxu1 %v1333_v5  ;;  %v1341_v13 = vld [vmem:[%s1818_s1 + $0xe0] sm:$0xff]   ;;  %v1345_v17 = vld [vmem:[%s1818_s1 + $0xd8] sm:$0xff]   ;;  %v1349_v21 = vld [vmem:[%s1818_s1 + $0xd0] sm:$0xff]  }
   0x7   :  { %v1342_v14 = vld [vmem:[%s1818_s1 + $0x20] sm:$0xff]   ;;  %v1346_v18 = vld [vmem:[%s1818_s1 + $0x18] sm:$0xff]   ;;  %v1350_v22 = vld [vmem:[%s1818_s1 + $0x10] sm:$0xff]  }
   0x8   :  { %1166 = vmatpush3.bf16.msra.mxu0 %v1334_v6  ;;  %v1343_v15 = vld [vmem:[%s1818_s1 + $0xa0] sm:$0xff]   ;;  %v1347_v19 = vld [vmem:[%s1818_s1 + $0x98] sm:$0xff]   ;;  %v1351_v23 = vld [vmem:[%s1818_s1 + $0x90] sm:$0xff]   ;;  %v1424_v6 = vmov 0.0  }
   0x9   :  { %1248 = vmatpush3.bf16.msra.mxu1 %v1335_v7  ;;  %1167 = vmatprep.subr.bf16.mxu0 %v1336_v8  ;;  %v1352_v24 = vld [vmem:[%s1818_s1 + $0x48] sm:$0xff]   ;;  %v1356_v28 = vld [vmem:[%s1818_s1 + $0x40] sm:$0xff]   ;;  %20 = vst.msk [vmem:[#allocation2] sm:$0xff] %vm19_vm0, %v1424_v6  ;;  %21 = vst.msk [vmem:[#allocation2 + $0x8] sm:$0xff] %vm19_vm0, %v1424_v6 }
   0xa   :  { %1249 = vmatprep.subr.bf16.mxu1 %v1337_v9  ;;  %v1353_v25 = vld [vmem:[%s1818_s1 + $0xc8] sm:$0xff]   ;;  %v1357_v29 = vld [vmem:[%s1818_s1 + $0xc0] sm:$0xff]   ;;  %22 = vst.msk [vmem:[#allocation2 + $0x10] sm:$0xff] %vm19_vm0, %v1424_v6  ;;  %23 = vst.msk [vmem:[#allocation2 + $0x18] sm:$0xff] %vm19_vm0, %v1424_v6 }
   0xb   :  { %v1354_v26 = vld [vmem:[%s1818_s1 + $0x8] sm:$0xff]   ;;  %v1358_v30 = vld [vmem:[%s1818_s1] sm:$0xff]   ;;  %24 = vst.msk [vmem:[#allocation2 + $0x20] sm:$0xff] %vm19_vm0, %v1424_v6  ;;  %25 = vst.msk [vmem:[#allocation2 + $0x28] sm:$0xff] %vm19_vm0, %v1424_v6 }
   0xc   :  { %1168 = vmatpush3.bf16.msra.mxu0 %v1338_v10  ;;  %v1355_v27 = vld [vmem:[%s1818_s1 + $0x88] sm:$0xff]   ;;  %v1359_v31 = vld [vmem:[%s1818_s1 + $0x80] sm:$0xff]   ;;  %26 = vst.msk [vmem:[#allocation2 + $0x30] sm:$0xff] %vm19_vm0, %v1424_v6  ;;  %27 = vst.msk [vmem:[#allocation2 + $0x38] sm:$0xff] %vm19_vm0, %v1424_v6 }
   0xd   :  { %1250 = vmatpush3.bf16.msra.mxu1 %v1339_v11  ;;  %1169 = vmatprep.subr.bf16.mxu0 %v1340_v12  ;;  %v1360_v32 = vld [vmem:[%s1819_s0] ss:$16 sps:$4 sm:$0xff]   ;;  %v1362_v33 = vld [vmem:[%s1819_s0 + $0x4] ss:$16 sps:$4 sm:$0xff]   ;;  %v1363_v34 = vld [vmem:[%s1819_s0 + $0x8] ss:$16 sps:$4 sm:$0xff]  }
   0xe   :  { %1251 = vmatprep.subr.bf16.mxu1 %v1341_v13  ;;  %v1365_v35 = vld [vmem:[%s1819_s0 + $0xc] ss:$16 sps:$4 sm:$0xff]   ;;  %607 = vmatprep.mubr.bf16.mxu0 %v1362_v33  ;;  %v1366_v36 = vld [vmem:[%s1819_s0 + $0x24] ss:$16 sps:$4 sm:$0xff]   ;;  %v1370_v38 = vld [vmem:[%s1819_s0 + $0x20] ss:$16 sps:$4 sm:$0xff]  }
   0xf   :  { %727 = vmatprep.mubr.bf16.mxu1 %v1365_v35  ;;  %v1368_v37 = vld [vmem:[%s1819_s0 + $0x2c] ss:$16 sps:$4 sm:$0xff]   ;;  %v1371_v39 = vld [vmem:[%s1819_s0 + $0x28] ss:$16 sps:$4 sm:$0xff]   ;;  %v1372_v40 = vld [vmem:[%s1819_s0 + $0x44] ss:$16 sps:$4 sm:$0xff]  }
  0x10   :  { %1170 = vmatpush3.bf16.msra.mxu0 %v1342_v14  ;;  %v1374_v41 = vld [vmem:[%s1819_s0 + $0x4c] ss:$16 sps:$4 sm:$0xff]   ;;  %v1376_v42 = vld [vmem:[%s1819_s0 + $0x40] ss:$16 sps:$4 sm:$0xff]   ;;  %v1377_v43 = vld [vmem:[%s1819_s0 + $0x48] ss:$16 sps:$4 sm:$0xff]  }
  0x11   :  { %1252 = vmatpush3.bf16.msra.mxu1 %v1343_v15  ;;  %1171 = vmatprep.subr.bf16.mxu0 %v1344_v16  ;;  %v1378_v44 = vld [vmem:[%s1819_s0 + $0x64] ss:$16 sps:$4 sm:$0xff]   ;;  %v1380_v45 = vld [vmem:[%s1819_s0 + $0x6c] ss:$16 sps:$4 sm:$0xff]   ;;  %v1382_v46 = vld [vmem:[%s1819_s0 + $0x60] ss:$16 sps:$4 sm:$0xff]  }
  0x12   :  { %1253 = vmatprep.subr.bf16.mxu1 %v1345_v17  ;;  %v1383_v47 = vld [vmem:[%s1819_s0 + $0x68] ss:$16 sps:$4 sm:$0xff]   ;;  %v1384_v48 = vld [vmem:[%s1819_s0 + $0x84] ss:$16 sps:$4 sm:$0xff]   ;;  %v1386_v49 = vld [vmem:[%s1819_s0 + $0x8c] ss:$16 sps:$4 sm:$0xff]  }
  0x13   :  { %v1388_v50 = vld [vmem:[%s1819_s0 + $0x80] ss:$16 sps:$4 sm:$0xff]   ;;  %v1389_v51 = vld [vmem:[%s1819_s0 + $0x88] ss:$16 sps:$4 sm:$0xff]   ;;  %v1390_v52 = vld [vmem:[%s1819_s0 + $0xa4] ss:$16 sps:$4 sm:$0xff]  }
  0x14   :  { %1172 = vmatpush3.bf16.msra.mxu0 %v1346_v18  ;;  %v1392_v53 = vld [vmem:[%s1819_s0 + $0xac] ss:$16 sps:$4 sm:$0xff]   ;;  %v1394_v54 = vld [vmem:[%s1819_s0 + $0xa0] ss:$16 sps:$4 sm:$0xff]   ;;  %v1395_v55 = vld [vmem:[%s1819_s0 + $0xa8] ss:$16 sps:$4 sm:$0xff]  }
  0x15   :  { %1254 = vmatpush3.bf16.msra.mxu1 %v1347_v19  ;;  %1173 = vmatprep.subr.bf16.mxu0 %v1348_v20  ;;  %v1396_v56 = vld [vmem:[%s1819_s0 + $0xc4] ss:$16 sps:$4 sm:$0xff]   ;;  %v1398_v57 = vld [vmem:[%s1819_s0 + $0xcc] ss:$16 sps:$4 sm:$0xff]   ;;  %v1400_v58 = vld [vmem:[%s1819_s0 + $0xc0] ss:$16 sps:$4 sm:$0xff]  }
  0x16   :  { %1255 = vmatprep.subr.bf16.mxu1 %v1349_v21  ;;  %v1401_v59 = vld [vmem:[%s1819_s0 + $0xc8] ss:$16 sps:$4 sm:$0xff]   ;;  %v1402_v60 = vld [vmem:[%s1819_s0 + $0xe4] ss:$16 sps:$4 sm:$0xff]   ;;  %v1404_v61 = vld [vmem:[%s1819_s0 + $0xec] ss:$16 sps:$4 sm:$0xff]  }
  0x17   :  { %v1406_v62 = vld [vmem:[%s1819_s0 + $0xe0] ss:$16 sps:$4 sm:$0xff]   ;;  %v1407_v63 = vld [vmem:[%s1819_s0 + $0xe8] ss:$16 sps:$4 sm:$0xff]   ;;  %v1408_v0 = vld [vmem:[%s1819_s0 + $0x104] ss:$16 sps:$4 sm:$0xff]  }
  0x18   :  { %1174 = vmatpush3.bf16.msra.mxu0 %v1350_v22  ;;  %v1410_v1 = vld [vmem:[%s1819_s0 + $0x10c] ss:$16 sps:$4 sm:$0xff]   ;;  %v1412_v2 = vld [vmem:[%s1819_s0 + $0x100] ss:$16 sps:$4 sm:$0xff]   ;;  %v1413_v3 = vld [vmem:[%s1819_s0 + $0x108] ss:$16 sps:$4 sm:$0xff]  }
  0x19   :  { %1256 = vmatpush3.bf16.msra.mxu1 %v1351_v23  ;;  %1175 = vmatprep.subr.bf16.mxu0 %v1352_v24  ;;  %v1414_v4 = vld [vmem:[%s1819_s0 + $0x124] ss:$16 sps:$4 sm:$0xff]   ;;  %v1416_v5 = vld [vmem:[%s1819_s0 + $0x12c] ss:$16 sps:$4 sm:$0xff]   ;;  %28 = vst.msk [vmem:[#allocation2 + $0x40] sm:$0xff] %vm19_vm0, %v1424_v6  ;;  %29 = vst.msk [vmem:[#allocation2 + $0x48] sm:$0xff] %vm19_vm0, %v1424_v6 }
  0x1a   :  { %1257 = vmatprep.subr.bf16.mxu1 %v1353_v25  ;;  %30 = vst.msk [vmem:[#allocation2 + $0x50] sm:$0xff] %vm19_vm0, %v1424_v6  ;;  %31 = vst.msk [vmem:[#allocation2 + $0x58] sm:$0xff] %vm19_vm0, %v1424_v6  ;;  %v82_v7 = vld [vmem:[%s1819_s0 + $0x140] sm:$0x11]  ;;  %v83_v8 = vld [vmem:[%s1819_s0 + $0x148] sm:$0x11] }
  0x1b   :  { %32 = vst.msk [vmem:[#allocation2 + $0x60] sm:$0xff] %vm19_vm0, %v1424_v6  ;;  %33 = vst.msk [vmem:[#allocation2 + $0x68] sm:$0xff] %vm19_vm0, %v1424_v6  ;;  %v1418_v9 = vld [vmem:[%s1819_s0 + $0x120] ss:$16 sps:$4 sm:$0xff]   ;;  %v1419_v10 = vld [vmem:[%s1819_s0 + $0x128] ss:$16 sps:$4 sm:$0xff]   ;;  %v1085_v11 = vcombine.high %v82_v7, %v82_v7  ;;  %v1087_v12 = vcombine.high %v83_v8, %v83_v8  ;;  %v1084_v13 = vcombine.low %v82_v7, %v82_v7 }
  0x1c   :  { %1176 = vmatpush3.bf16.msra.mxu0 %v1354_v26  ;;  %34 = vst.msk [vmem:[#allocation2 + $0x70] sm:$0xff] %vm19_vm0, %v1424_v6  ;;  %35 = vst.msk [vmem:[#allocation2 + $0x78] sm:$0xff] %vm19_vm0, %v1424_v6  ;;  %v1086_v14 = vcombine.low %v83_v8, %v83_v8  ;;  %v84_v22 = vld [vmem:[#allocation2] sm:$0xff] }
  0x1d   :  { %1258 = vmatpush3.bf16.msra.mxu1 %v1355_v27  ;;  %1177 = vmatprep.subr.bf16.mxu0 %v1356_v28  ;;  %36 = vst.msk [vmem:[#allocation2 + $0x80] sm:$0xff] %vm19_vm0, %v1424_v6  ;;  %37 = vst.msk [vmem:[#allocation2 + $0x88] sm:$0xff] %vm19_vm0, %v1424_v6 }
  0x1e   :  { %1259 = vmatprep.subr.bf16.mxu1 %v1357_v29  ;;  %38 = vst.msk [vmem:[#allocation2 + $0x90] sm:$0xff] %vm19_vm0, %v1424_v6  ;;  %39 = vst.msk [vmem:[#allocation2 + $0x98] sm:$0xff] %vm19_vm0, %v1424_v6 }
  0x1f   :  { %41 = vst.msk [vmem:[#allocation2 + $0xa0] sm:$0x3] %vm40_vm1, %v1424_v6 }
  0x20   :  { %1178 = vmatpush3.bf16.msra.mxu0 %v1358_v30 }
  0x21   :  { %1260 = vmatpush3.bf16.msra.mxu1 %v1359_v31  ;;  %v85_v31 = vld [vmem:[#allocation2 + $0x8] sm:$0xff] }
  0x23   :  { %608 = vmatmul.mubr.bf16.vlgmr.msra.gmra.mxu0 %v1360_v32 }
  0x24   :  { %728 = vmatmul.mubr.bf16.vlgmr.msra.gmra.mxu1 %v1363_v34  ;;  %615 = vmatprep.mubr.bf16.mxu0 %v1366_v36 }
  0x25   :  { %735 = vmatprep.mubr.bf16.mxu1 %v1368_v37 }
  0x2b   :  { %616 = vmatmul.mubr.bf16.gmra.mxu0 %v1370_v38 }
  0x2c   :  { %736 = vmatmul.mubr.bf16.gmra.mxu1 %v1371_v39  ;;  %623 = vmatprep.mubr.bf16.mxu0 %v1372_v40  ;;  %v86_v40 = vld [vmem:[#allocation2 + $0x10] sm:$0xff] }
  0x2d   :  { %743 = vmatprep.mubr.bf16.mxu1 %v1374_v41 }
  0x33   :  { %624 = vmatmul.mubr.bf16.gmra.mxu0 %v1376_v42 }
  0x34   :  { %744 = vmatmul.mubr.bf16.gmra.mxu1 %v1377_v43  ;;  %631 = vmatprep.mubr.bf16.mxu0 %v1378_v44  ;;  %v1693_v44 = vld [vmem:[%s1820_s2] ss:$0 sm:$0xff] }
  0x35   :  { %751 = vmatprep.mubr.bf16.mxu1 %v1380_v45 }
  0x3b   :  { %632 = vmatmul.mubr.bf16.gmra.mxu0 %v1382_v46 }
  0x3c   :  { %752 = vmatmul.mubr.bf16.gmra.mxu1 %v1383_v47  ;;  %639 = vmatprep.mubr.bf16.mxu0 %v1384_v48 }
  0x3d   :  { %759 = vmatprep.mubr.bf16.mxu1 %v1386_v49 }
  0x43   :  { %640 = vmatmul.mubr.bf16.gmra.mxu0 %v1388_v50 }
  0x44   :  { %760 = vmatmul.mubr.bf16.gmra.mxu1 %v1389_v51  ;;  %647 = vmatprep.mubr.bf16.mxu0 %v1390_v52  ;;  %v87_v51 = vld [vmem:[#allocation2 + $0x18] sm:$0xff] }
  0x45   :  { %767 = vmatprep.mubr.bf16.mxu1 %v1392_v53 }
  0x4b   :  { %648 = vmatmul.mubr.bf16.gmra.mxu0 %v1394_v54 }
  0x4c   :  { %768 = vmatmul.mubr.bf16.gmra.mxu1 %v1395_v55  ;;  %655 = vmatprep.mubr.bf16.mxu0 %v1396_v56 }
  0x4d   :  { %775 = vmatprep.mubr.bf16.mxu1 %v1398_v57 }
  0x53   :  { %656 = vmatmul.mubr.bf16.gmra.mxu0 %v1400_v58 }
  0x54   :  { %776 = vmatmul.mubr.bf16.gmra.mxu1 %v1401_v59  ;;  %663 = vmatprep.mubr.bf16.mxu0 %v1402_v60 }
  0x55   :  { %783 = vmatprep.mubr.bf16.mxu1 %v1404_v61 }
  0x5b   :  { %664 = vmatmul.mubr.bf16.gmra.mxu0 %v1406_v62 }
  0x5c   :  { %784 = vmatmul.mubr.bf16.gmra.mxu1 %v1407_v63  ;;  %671 = vmatprep.mubr.bf16.mxu0 %v1408_v0  ;;  %v88_v63 = vld [vmem:[#allocation2 + $0x20] sm:$0xff] }
  0x5d   :  { %791 = vmatprep.mubr.bf16.mxu1 %v1410_v1 }
  0x63   :  { %672 = vmatmul.mubr.bf16.gmra.mxu0 %v1412_v2 }
  0x64   :  { %792 = vmatmul.mubr.bf16.gmra.mxu1 %v1413_v3  ;;  %679 = vmatprep.mubr.bf16.mxu0 %v1414_v4 }
  0x65   :  { %799 = vmatprep.mubr.bf16.mxu1 %v1416_v5 }
  0x6b   :  { %680 = vmatmul.mubr.bf16.gmra.mxu0 %v1418_v9 }
  0x6c   :  { %800 = vmatmul.mubr.bf16.gmra.mxu1 %v1419_v10  ;;  %687 = vmatprep.mubr.bf16.mxu0 %v1085_v11 }
  0x6d   :  { %807 = vmatprep.mubr.bf16.mxu1 %v1087_v12  ;;  %v89_v12 = vld [vmem:[#allocation2 + $0x28] sm:$0xff] }
  0x73   :  { %688 = vmatmul.mubr.bf16.gmra.mxu0 %v1084_v13 }
  0x74   :  { %808 = vmatmul.mubr.bf16.gmra.mxu1 %v1086_v14 }
  0xe3   :  { %v1179_v15 = vpop.f32.mrf.mxu0 }
  0xe4   :  { %v1261_v16 = vpop.f32.mrf.mxu1 }
  0xe5   :  { %v1180_v17 = vpop.f32.mrf.mxu0 }
  0xe6   :  { %v1181_v18 = vadd.f32 %v1180_v17, %v1179_v15  ;;  %v1262_v19 = vpop.f32.mrf.mxu1 }
  0xe7   :  { %v1263_v20 = vadd.f32 %v1262_v19, %v1261_v16  ;;  %v1182_v21 = vpop.f32.mrf.mxu0 }
  0xe8   :  { %v1264_v23 = vpop.f32.mrf.mxu1 }
  0xe9   :  { %v730_v24 = vadd.f32 %v1263_v20, %v1181_v18  ;;  %v1183_v25 = vpop.f32.mrf.mxu0 }
  0xea   :  { %v1184_v26 = vadd.f32 %v1183_v25, %v1182_v21  ;;  %v1265_v27 = vpop.f32.mrf.mxu1  ;;  %v90_v25 = vld [vmem:[#allocation2 + $0x30] sm:$0xff] }
  0xeb   :  { %v815_v28 = vadd.f32 %v730_v24, %v84_v22  ;;  %v1266_v29 = vadd.f32 %v1265_v27, %v1264_v23  ;;  %v1185_v30 = vpop.f32.mrf.mxu0 }
  0xec   :  { %v1267_v32 = vpop.f32.mrf.mxu1 }
  0xed   :  { %837 = vst.msk [vmem:[#allocation2] sm:$0xff] %vm19_vm0, %v815_v28  ;;  %v733_v33 = vadd.f32 %v1266_v29, %v1184_v26  ;;  %v1186_v34 = vpop.f32.mrf.mxu0 }
  0xee   :  { %v1187_v35 = vadd.f32 %v1186_v34, %v1185_v30  ;;  %v1268_v36 = vpop.f32.mrf.mxu1 }
  0xef   :  { %v816_v37 = vadd.f32 %v733_v33, %v85_v31  ;;  %v1269_v38 = vadd.f32 %v1268_v36, %v1267_v32  ;;  %v1188_v39 = vpop.f32.mrf.mxu0 }
  0xf0   :  { %v1270_v41 = vpop.f32.mrf.mxu1 }
  0xf1   :  { %838 = vst.msk [vmem:[#allocation2 + $0x8] sm:$0xff] %vm19_vm0, %v816_v37  ;;  %v738_v42 = vadd.f32 %v1269_v38, %v1187_v35  ;;  %v1189_v43 = vpop.f32.mrf.mxu0  ;;  %v91_v38 = vld [vmem:[#allocation2 + $0x38] sm:$0xff] }
  0xf2   :  { %v1190_v45 = vadd.f32 %v1189_v43, %v1188_v39  ;;  %v1271_v46 = vpop.f32.mrf.mxu1 }
  0xf3   :  { %v817_v47 = vadd.f32 %v738_v42, %v86_v40  ;;  %v1272_v48 = vadd.f32 %v1271_v46, %v1270_v41  ;;  %v1191_v49 = vpop.f32.mrf.mxu0 }
  0xf4   :  { %v862_v50 = vld [vmem:[#allocation2] sm:$0xff]  ;;  %v1273_v52 = vpop.f32.mrf.mxu1 }
  0xf5   :  { %v890_v53 = vadd.f32 %v1693_v44, %v862_v50  ;;  %839 = vst.msk [vmem:[#allocation2 + $0x10] sm:$0xff] %vm19_vm0, %v817_v47  ;;  %v741_v54 = vadd.f32 %v1272_v48, %v1190_v45  ;;  %v1192_v55 = vpop.f32.mrf.mxu0 }
  0xf6   :  { %v1193_v56 = vadd.f32 %v1192_v55, %v1191_v49  ;;  %v1274_v57 = vpop.f32.mrf.mxu1 }
  0xf7   :  { %v911_v58 = vmax.f32 %v890_v53, 0.0  ;;  %v818_v59 = vadd.f32 %v741_v54, %v87_v51  ;;  %v1275_v60 = vadd.f32 %v1274_v57, %v1273_v52  ;;  %v1194_v61 = vpop.f32.mrf.mxu0  ;;  %v92_v52 = vld [vmem:[#allocation2 + $0x40] sm:$0xff] }
  0xf8   :  { %v863_v62 = vld [vmem:[#allocation2 + $0x8] sm:$0xff]  ;;  %v1276_v0 = vpop.f32.mrf.mxu1 }
  0xf9   :  { %v1142_v1 = vpack.c.bf16 %v911_v58, %v911_v58  ;;  %v891_v2 = vadd.f32 %v1693_v44, %v863_v62  ;;  %840 = vst.msk [vmem:[#allocation2 + $0x18] sm:$0xff] %vm19_vm0, %v818_v59  ;;  %v746_v3 = vadd.f32 %v1275_v60, %v1193_v56  ;;  %v1195_v4 = vpop.f32.mrf.mxu0 }
  0xfa   :  { %v1196_v5 = vadd.f32 %v1195_v4, %v1194_v61  ;;  %v1277_v6 = vpop.f32.mrf.mxu1 }
  0xfb   :  { %1018 = vst.msk [vmem:[%s1821_s3] sm:$0xf] %vm1017_vm2, %v1142_v1  ;;  %v912_v7 = vmax.f32 %v891_v2, 0.0  ;;  %v819_v8 = vadd.f32 %v746_v3, %v88_v63  ;;  %v1278_v9 = vadd.f32 %v1277_v6, %v1276_v0  ;;  %v1197_v10 = vpop.f32.mrf.mxu0  ;;  %v93_v1 = vld [vmem:[#allocation2 + $0x48] sm:$0xff] }
  0xfc   :  { %v864_v11 = vld [vmem:[#allocation2 + $0x10] sm:$0xff]  ;;  %v1279_v13 = vpop.f32.mrf.mxu1 }
  0xfd   :  { %v1143_v14 = vpack.c.bf16 %v912_v7, %v912_v7  ;;  %v892_v15 = vadd.f32 %v1693_v44, %v864_v11  ;;  %841 = vst.msk [vmem:[#allocation2 + $0x20] sm:$0xff] %vm19_vm0, %v819_v8  ;;  %v749_v16 = vadd.f32 %v1278_v9, %v1196_v5  ;;  %v1198_v17 = vpop.f32.mrf.mxu0 }
  0xfe   :  { %v1199_v18 = vadd.f32 %v1198_v17, %v1197_v10  ;;  %v1280_v19 = vpop.f32.mrf.mxu1 }
  0xff   :  { %1019 = vst.msk [vmem:[%s1821_s3 + $0x4] sm:$0xf] %vm1017_vm2, %v1143_v14  ;;  %v913_v20 = vmax.f32 %v892_v15, 0.0  ;;  %v820_v21 = vadd.f32 %v749_v16, %v89_v12  ;;  %v1281_v22 = vadd.f32 %v1280_v19, %v1279_v13  ;;  %v1200_v23 = vpop.f32.mrf.mxu0  ;;  %v94_v14 = vld [vmem:[#allocation2 + $0x50] sm:$0xff] }
 0x100   :  { %v865_v24 = vld [vmem:[#allocation2 + $0x18] sm:$0xff]  ;;  %v1282_v26 = vpop.f32.mrf.mxu1 }
 0x101   :  { %v1144_v27 = vpack.c.bf16 %v913_v20, %v913_v20  ;;  %v893_v28 = vadd.f32 %v1693_v44, %v865_v24  ;;  %842 = vst.msk [vmem:[#allocation2 + $0x28] sm:$0xff] %vm19_vm0, %v820_v21  ;;  %v754_v29 = vadd.f32 %v1281_v22, %v1199_v18  ;;  %v1201_v30 = vpop.f32.mrf.mxu0 }
 0x102   :  { %v1202_v31 = vadd.f32 %v1201_v30, %v1200_v23  ;;  %v1283_v32 = vpop.f32.mrf.mxu1 }
 0x103   :  { %1020 = vst.msk [vmem:[%s1821_s3 + $0x8] sm:$0xf] %vm1017_vm2, %v1144_v27  ;;  %v914_v33 = vmax.f32 %v893_v28, 0.0  ;;  %v821_v34 = vadd.f32 %v754_v29, %v90_v25  ;;  %v1284_v35 = vadd.f32 %v1283_v32, %v1282_v26  ;;  %v1203_v36 = vpop.f32.mrf.mxu0  ;;  %v95_v27 = vld [vmem:[#allocation2 + $0x58] sm:$0xff] }
 0x104   :  { %v866_v37 = vld [vmem:[#allocation2 + $0x20] sm:$0xff]  ;;  %v1285_v39 = vpop.f32.mrf.mxu1 }
 0x105   :  { %v1145_v40 = vpack.c.bf16 %v914_v33, %v914_v33  ;;  %v894_v41 = vadd.f32 %v1693_v44, %v866_v37  ;;  %843 = vst.msk [vmem:[#allocation2 + $0x30] sm:$0xff] %vm19_vm0, %v821_v34  ;;  %v757_v42 = vadd.f32 %v1284_v35, %v1202_v31  ;;  %v1204_v43 = vpop.f32.mrf.mxu0 }
 0x106   :  { %v1205_v45 = vadd.f32 %v1204_v43, %v1203_v36  ;;  %v1286_v46 = vpop.f32.mrf.mxu1 }
 0x107   :  { %1021 = vst.msk [vmem:[%s1821_s3 + $0xc] sm:$0xf] %vm1017_vm2, %v1145_v40  ;;  %v915_v47 = vmax.f32 %v894_v41, 0.0  ;;  %v822_v48 = vadd.f32 %v757_v42, %v91_v38  ;;  %v1287_v49 = vadd.f32 %v1286_v46, %v1285_v39  ;;  %v1206_v50 = vpop.f32.mrf.mxu0  ;;  %v96_v40 = vld [vmem:[#allocation2 + $0x60] sm:$0xff] }
 0x108   :  { %v867_v51 = vld [vmem:[#allocation2 + $0x28] sm:$0xff]  ;;  %v1288_v53 = vpop.f32.mrf.mxu1 }
 0x109   :  { %v1146_v54 = vpack.c.bf16 %v915_v47, %v915_v47  ;;  %v895_v55 = vadd.f32 %v1693_v44, %v867_v51  ;;  %844 = vst.msk [vmem:[#allocation2 + $0x38] sm:$0xff] %vm19_vm0, %v822_v48  ;;  %v762_v56 = vadd.f32 %v1287_v49, %v1205_v45  ;;  %v1207_v57 = vpop.f32.mrf.mxu0 }
 0x10a   :  { %v1208_v58 = vadd.f32 %v1207_v57, %v1206_v50  ;;  %v1289_v59 = vpop.f32.mrf.mxu1 }
 0x10b   :  { %1022 = vst.msk [vmem:[%s1821_s3 + $0x10] sm:$0xf] %vm1017_vm2, %v1146_v54  ;;  %v916_v60 = vmax.f32 %v895_v55, 0.0  ;;  %v823_v61 = vadd.f32 %v762_v56, %v92_v52  ;;  %v1290_v62 = vadd.f32 %v1289_v59, %v1288_v53  ;;  %v1209_v63 = vpop.f32.mrf.mxu0  ;;  %v97_v54 = vld [vmem:[#allocation2 + $0x68] sm:$0xff] }
 0x10c   :  { %v868_v0 = vld [vmem:[#allocation2 + $0x30] sm:$0xff]  ;;  %v1291_v2 = vpop.f32.mrf.mxu1 }
 0x10d   :  { %v1147_v3 = vpack.c.bf16 %v916_v60, %v916_v60  ;;  %v896_v4 = vadd.f32 %v1693_v44, %v868_v0  ;;  %845 = vst.msk [vmem:[#allocation2 + $0x40] sm:$0xff] %vm19_vm0, %v823_v61  ;;  %v765_v5 = vadd.f32 %v1290_v62, %v1208_v58  ;;  %v1210_v6 = vpop.f32.mrf.mxu0 }
 0x10e   :  { %v1211_v7 = vadd.f32 %v1210_v6, %v1209_v63  ;;  %v1292_v8 = vpop.f32.mrf.mxu1 }
 0x10f   :  { %1023 = vst.msk [vmem:[%s1821_s3 + $0x14] sm:$0xf] %vm1017_vm2, %v1147_v3  ;;  %v917_v9 = vmax.f32 %v896_v4, 0.0  ;;  %v824_v10 = vadd.f32 %v765_v5, %v93_v1  ;;  %v1293_v11 = vadd.f32 %v1292_v8, %v1291_v2  ;;  %v1212_v12 = vpop.f32.mrf.mxu0  ;;  %v98_v3 = vld [vmem:[#allocation2 + $0x70] sm:$0xff] }
 0x110   :  { %v869_v13 = vld [vmem:[#allocation2 + $0x38] sm:$0xff]  ;;  %v1294_v15 = vpop.f32.mrf.mxu1 }
 0x111   :  { %v1148_v16 = vpack.c.bf16 %v917_v9, %v917_v9  ;;  %v897_v17 = vadd.f32 %v1693_v44, %v869_v13  ;;  %846 = vst.msk [vmem:[#allocation2 + $0x48] sm:$0xff] %vm19_vm0, %v824_v10  ;;  %v770_v18 = vadd.f32 %v1293_v11, %v1211_v7  ;;  %v1213_v19 = vpop.f32.mrf.mxu0 }
 0x112   :  { %v1214_v20 = vadd.f32 %v1213_v19, %v1212_v12  ;;  %v1295_v21 = vpop.f32.mrf.mxu1 }
 0x113   :  { %1024 = vst.msk [vmem:[%s1821_s3 + $0x18] sm:$0xf] %vm1017_vm2, %v1148_v16  ;;  %v918_v22 = vmax.f32 %v897_v17, 0.0  ;;  %v825_v23 = vadd.f32 %v770_v18, %v94_v14  ;;  %v1296_v24 = vadd.f32 %v1295_v21, %v1294_v15  ;;  %v1215_v25 = vpop.f32.mrf.mxu0  ;;  %v99_v16 = vld [vmem:[#allocation2 + $0x78] sm:$0xff] }
 0x114   :  { %v870_v26 = vld [vmem:[#allocation2 + $0x40] sm:$0xff]  ;;  %v1297_v28 = vpop.f32.mrf.mxu1 }
 0x115   :  { %v1149_v29 = vpack.c.bf16 %v918_v22, %v918_v22  ;;  %v898_v30 = vadd.f32 %v1693_v44, %v870_v26  ;;  %847 = vst.msk [vmem:[#allocation2 + $0x50] sm:$0xff] %vm19_vm0, %v825_v23  ;;  %v773_v31 = vadd.f32 %v1296_v24, %v1214_v20  ;;  %v1216_v32 = vpop.f32.mrf.mxu0 }
 0x116   :  { %v1217_v33 = vadd.f32 %v1216_v32, %v1215_v25  ;;  %v1298_v34 = vpop.f32.mrf.mxu1 }
 0x117   :  { %1025 = vst.msk [vmem:[%s1821_s3 + $0x1c] sm:$0xf] %vm1017_vm2, %v1149_v29  ;;  %v919_v35 = vmax.f32 %v898_v30, 0.0  ;;  %v826_v36 = vadd.f32 %v773_v31, %v95_v27  ;;  %v1299_v37 = vadd.f32 %v1298_v34, %v1297_v28  ;;  %v1218_v38 = vpop.f32.mrf.mxu0  ;;  %v100_v29 = vld [vmem:[#allocation2 + $0x80] sm:$0xff] }
 0x118   :  { %v871_v39 = vld [vmem:[#allocation2 + $0x48] sm:$0xff]  ;;  %v1300_v41 = vpop.f32.mrf.mxu1 }
 0x119   :  { %v1150_v42 = vpack.c.bf16 %v919_v35, %v919_v35  ;;  %v899_v43 = vadd.f32 %v1693_v44, %v871_v39  ;;  %848 = vst.msk [vmem:[#allocation2 + $0x58] sm:$0xff] %vm19_vm0, %v826_v36  ;;  %v778_v45 = vadd.f32 %v1299_v37, %v1217_v33  ;;  %v1219_v46 = vpop.f32.mrf.mxu0 }
 0x11a   :  { %v1220_v47 = vadd.f32 %v1219_v46, %v1218_v38  ;;  %v1301_v48 = vpop.f32.mrf.mxu1 }
 0x11b   :  { %1026 = vst.msk [vmem:[%s1821_s3 + $0x20] sm:$0xf] %vm1017_vm2, %v1150_v42  ;;  %v920_v49 = vmax.f32 %v899_v43, 0.0  ;;  %v827_v50 = vadd.f32 %v778_v45, %v96_v40  ;;  %v1302_v51 = vadd.f32 %v1301_v48, %v1300_v41  ;;  %v1221_v52 = vpop.f32.mrf.mxu0  ;;  %v101_v42 = vld [vmem:[#allocation2 + $0x88] sm:$0xff] }
 0x11c   :  { %v872_v53 = vld [vmem:[#allocation2 + $0x50] sm:$0xff]  ;;  %v1303_v55 = vpop.f32.mrf.mxu1 }
 0x11d   :  { %v1151_v56 = vpack.c.bf16 %v920_v49, %v920_v49  ;;  %v900_v57 = vadd.f32 %v1693_v44, %v872_v53  ;;  %849 = vst.msk [vmem:[#allocation2 + $0x60] sm:$0xff] %vm19_vm0, %v827_v50  ;;  %v781_v58 = vadd.f32 %v1302_v51, %v1220_v47  ;;  %v1222_v59 = vpop.f32.mrf.mxu0 }
 0x11e   :  { %v1223_v60 = vadd.f32 %v1222_v59, %v1221_v52  ;;  %v1304_v61 = vpop.f32.mrf.mxu1 }
 0x11f   :  { %1027 = vst.msk [vmem:[%s1821_s3 + $0x24] sm:$0xf] %vm1017_vm2, %v1151_v56  ;;  %v921_v62 = vmax.f32 %v900_v57, 0.0  ;;  %v828_v63 = vadd.f32 %v781_v58, %v97_v54  ;;  %v1305_v0 = vadd.f32 %v1304_v61, %v1303_v55  ;;  %v1224_v1 = vpop.f32.mrf.mxu0  ;;  %v102_v56 = vld [vmem:[#allocation2 + $0x90] sm:$0xff] }
 0x120   :  { %v873_v2 = vld [vmem:[#allocation2 + $0x58] sm:$0xff]  ;;  %v1306_v4 = vpop.f32.mrf.mxu1 }
 0x121   :  { %v1152_v5 = vpack.c.bf16 %v921_v62, %v921_v62  ;;  %v901_v6 = vadd.f32 %v1693_v44, %v873_v2  ;;  %850 = vst.msk [vmem:[#allocation2 + $0x68] sm:$0xff] %vm19_vm0, %v828_v63  ;;  %v786_v7 = vadd.f32 %v1305_v0, %v1223_v60  ;;  %v1225_v8 = vpop.f32.mrf.mxu0 }
 0x122   :  { %v1226_v9 = vadd.f32 %v1225_v8, %v1224_v1  ;;  %v1307_v10 = vpop.f32.mrf.mxu1 }
 0x123   :  { %1028 = vst.msk [vmem:[%s1821_s3 + $0x28] sm:$0xf] %vm1017_vm2, %v1152_v5  ;;  %v922_v11 = vmax.f32 %v901_v6, 0.0  ;;  %v829_v12 = vadd.f32 %v786_v7, %v98_v3  ;;  %v1308_v13 = vadd.f32 %v1307_v10, %v1306_v4  ;;  %v1227_v14 = vpop.f32.mrf.mxu0  ;;  %v103_v5 = vld [vmem:[#allocation2 + $0x98] sm:$0xff] }
 0x124   :  { %v874_v15 = vld [vmem:[#allocation2 + $0x60] sm:$0xff]  ;;  %v1309_v17 = vpop.f32.mrf.mxu1 }
 0x125   :  { %v1153_v18 = vpack.c.bf16 %v922_v11, %v922_v11  ;;  %v902_v19 = vadd.f32 %v1693_v44, %v874_v15  ;;  %851 = vst.msk [vmem:[#allocation2 + $0x70] sm:$0xff] %vm19_vm0, %v829_v12  ;;  %v789_v20 = vadd.f32 %v1308_v13, %v1226_v9  ;;  %v1228_v21 = vpop.f32.mrf.mxu0 }
 0x126   :  { %v1229_v22 = vadd.f32 %v1228_v21, %v1227_v14  ;;  %v1310_v23 = vpop.f32.mrf.mxu1 }
 0x127   :  { %1029 = vst.msk [vmem:[%s1821_s3 + $0x2c] sm:$0xf] %vm1017_vm2, %v1153_v18  ;;  %v923_v24 = vmax.f32 %v902_v19, 0.0  ;;  %v830_v25 = vadd.f32 %v789_v20, %v99_v16  ;;  %v1311_v26 = vadd.f32 %v1310_v23, %v1309_v17  ;;  %v1230_v27 = vpop.f32.mrf.mxu0  ;;  %v104_v18 = vld [vmem:[#allocation2 + $0xa0] sm:$0x3] }
 0x128   :  { %v875_v28 = vld [vmem:[#allocation2 + $0x68] sm:$0xff]  ;;  %v1312_v30 = vpop.f32.mrf.mxu1 }
 0x129   :  { %v1154_v31 = vpack.c.bf16 %v923_v24, %v923_v24  ;;  %v903_v32 = vadd.f32 %v1693_v44, %v875_v28  ;;  %852 = vst.msk [vmem:[#allocation2 + $0x78] sm:$0xff] %vm19_vm0, %v830_v25  ;;  %v794_v33 = vadd.f32 %v1311_v26, %v1229_v22  ;;  %v1231_v34 = vpop.f32.mrf.mxu0 }
 0x12a   :  { %v1232_v35 = vadd.f32 %v1231_v34, %v1230_v27  ;;  %v1313_v36 = vpop.f32.mrf.mxu1 }
 0x12b   :  { %1030 = vst.msk [vmem:[%s1821_s3 + $0x30] sm:$0xf] %vm1017_vm2, %v1154_v31  ;;  %v924_v37 = vmax.f32 %v903_v32, 0.0  ;;  %v831_v38 = vadd.f32 %v794_v33, %v100_v29  ;;  %v1314_v39 = vadd.f32 %v1313_v36, %v1312_v30  ;;  %v1233_v40 = vpop.f32.mrf.mxu0 }
 0x12c   :  { %v876_v41 = vld [vmem:[#allocation2 + $0x70] sm:$0xff]  ;;  %v1315_v43 = vpop.f32.mrf.mxu1 }
 0x12d   :  { %v1155_v45 = vpack.c.bf16 %v924_v37, %v924_v37  ;;  %v904_v46 = vadd.f32 %v1693_v44, %v876_v41  ;;  %853 = vst.msk [vmem:[#allocation2 + $0x80] sm:$0xff] %vm19_vm0, %v831_v38  ;;  %v797_v47 = vadd.f32 %v1314_v39, %v1232_v35  ;;  %v1234_v48 = vpop.f32.mrf.mxu0 }
 0x12e   :  { %v1235_v49 = vadd.f32 %v1234_v48, %v1233_v40  ;;  %v1316_v50 = vpop.f32.mrf.mxu1 }
 0x12f   :  { %1031 = vst.msk [vmem:[%s1821_s3 + $0x34] sm:$0xf] %vm1017_vm2, %v1155_v45  ;;  %v925_v51 = vmax.f32 %v904_v46, 0.0  ;;  %v832_v52 = vadd.f32 %v797_v47, %v101_v42  ;;  %v1317_v53 = vadd.f32 %v1316_v50, %v1315_v43  ;;  %v1236_v54 = vpop.f32.mrf.mxu0 }
 0x130   :  { %v877_v55 = vld [vmem:[#allocation2 + $0x78] sm:$0xff]  ;;  %v1318_v57 = vpop.f32.mrf.mxu1 }
 0x131   :  { %v1156_v58 = vpack.c.bf16 %v925_v51, %v925_v51  ;;  %v905_v59 = vadd.f32 %v1693_v44, %v877_v55  ;;  %854 = vst.msk [vmem:[#allocation2 + $0x88] sm:$0xff] %vm19_vm0, %v832_v52  ;;  %v802_v60 = vadd.f32 %v1317_v53, %v1235_v49  ;;  %v1237_v61 = vpop.f32.mrf.mxu0 }
 0x132   :  { %v1238_v62 = vadd.f32 %v1237_v61, %v1236_v54  ;;  %v1319_v63 = vpop.f32.mrf.mxu1 }
 0x133   :  { %1032 = vst.msk [vmem:[%s1821_s3 + $0x38] sm:$0xf] %vm1017_vm2, %v1156_v58  ;;  %v926_v0 = vmax.f32 %v905_v59, 0.0  ;;  %v833_v1 = vadd.f32 %v802_v60, %v102_v56  ;;  %v1320_v2 = vadd.f32 %v1319_v63, %v1318_v57  ;;  %v1239_v3 = vpop.f32.mrf.mxu0 }
 0x134   :  { %v878_v4 = vld [vmem:[#allocation2 + $0x80] sm:$0xff]  ;;  %v1321_v6 = vpop.f32.mrf.mxu1 }
 0x135   :  { %v1157_v7 = vpack.c.bf16 %v926_v0, %v926_v0  ;;  %v906_v8 = vadd.f32 %v1693_v44, %v878_v4  ;;  %855 = vst.msk [vmem:[#allocation2 + $0x90] sm:$0xff] %vm19_vm0, %v833_v1  ;;  %v805_v9 = vadd.f32 %v1320_v2, %v1238_v62  ;;  %v1240_v10 = vpop.f32.mrf.mxu0 }
 0x136   :  { %v1241_v11 = vadd.f32 %v1240_v10, %v1239_v3  ;;  %v1322_v12 = vpop.f32.mrf.mxu1 }
 0x137   :  { %1033 = vst.msk [vmem:[%s1821_s3 + $0x3c] sm:$0xf] %vm1017_vm2, %v1157_v7  ;;  %v927_v13 = vmax.f32 %v906_v8, 0.0  ;;  %v834_v14 = vadd.f32 %v805_v9, %v103_v5  ;;  %v1323_v15 = vadd.f32 %v1322_v12, %v1321_v6  ;;  %v1242_v16 = vpop.f32.mrf.mxu0 }
 0x138   :  { %v879_v17 = vld [vmem:[#allocation2 + $0x88] sm:$0xff]  ;;  %v1324_v19 = vpop.f32.mrf.mxu1 }
 0x139   :  { %v1158_v20 = vpack.c.bf16 %v927_v13, %v927_v13  ;;  %v907_v21 = vadd.f32 %v1693_v44, %v879_v17  ;;  %856 = vst.msk [vmem:[#allocation2 + $0x98] sm:$0xff] %vm19_vm0, %v834_v14  ;;  %v810_v22 = vadd.f32 %v1323_v15, %v1241_v11  ;;  %v1243_v23 = vpop.f32.mrf.mxu0 }
 0x13a   :  { %v1325_v24 = vpop.f32.mrf.mxu1 }
 0x13b   :  { %1034 = vst.msk [vmem:[%s1821_s3 + $0x40] sm:$0xf] %vm1017_vm2, %v1158_v20  ;;  %v928_v25 = vmax.f32 %v907_v21, 0.0  ;;  %v835_v26 = vadd.f32 %v810_v22, %v104_v18 }
 0x13c   :  { %v880_v27 = vld [vmem:[#allocation2 + $0x90] sm:$0xff] }
 0x13d   :  { %v1159_v28 = vpack.c.bf16 %v928_v25, %v928_v25  ;;  %v908_v29 = vadd.f32 %v1693_v44, %v880_v27  ;;  %858 = vst.msk [vmem:[#allocation2 + $0xa0] sm:$0x3] %vm40_vm1, %v835_v26 }
 0x13f   :  { %1035 = vst.msk [vmem:[%s1821_s3 + $0x44] sm:$0xf] %vm1017_vm2, %v1159_v28  ;;  %v929_v30 = vmax.f32 %v908_v29, 0.0 }
 0x140   :  { %v881_v31 = vld [vmem:[#allocation2 + $0x98] sm:$0xff] }
 0x141   :  { %v1160_v32 = vpack.c.bf16 %v929_v30, %v929_v30  ;;  %v909_v33 = vadd.f32 %v1693_v44, %v881_v31 }
 0x143   :  { %1036 = vst.msk [vmem:[%s1821_s3 + $0x48] sm:$0xf] %vm1017_vm2, %v1160_v32  ;;  %v930_v34 = vmax.f32 %v909_v33, 0.0 }
 0x144   :  { %v882_v35 = vld [vmem:[#allocation2 + $0xa0] sm:$0x3] }
 0x145   :  { %v1161_v36 = vpack.c.bf16 %v930_v34, %v930_v34  ;;  %v910_v37 = vadd.f32 %v1693_v44, %v882_v35 }
 0x147   :  { %1037 = vst.msk [vmem:[%s1821_s3 + $0x4c] sm:$0xf] %vm1017_vm2, %v1161_v36  ;;  %v931_v38 = vmax.f32 %v910_v37, 0.0 }
 0x149   :  { %v1162_v39 = vpack.c.bf16 %v931_v38, %v931_v38 }
 0x14b   :  { %1039 = vst.msk [vmem:[%s1821_s3 + $0x50] sm:$0x1] %vm1038_vm3, %v1162_v39 }

// kernel: dqn_forward.8
= control target key start
LH: loop header
LB: loop body
LE: loop exit
PB: predicated region body
PF: predicated region fallthrough
CT: control target
= control target key end

     0   :  { %s2653_s12 = smov 0   ;;  %s2655_s13 = smov 0   ;;  %s3300_s0 = inlined_call_operand.vmem [shape: bf16[2,3200], index: 0, kind: input, shape index: {}]   ;;  %s3301_s1 = inlined_call_operand.vmem [shape: bf16[3200,1024], index: 1, kind: input, shape index: {}]   ;;  %s3302_s2 = inlined_call_operand.vmem [shape: f32[1,1024], index: 2, kind: input, shape index: {}]   ;;  %s3303_s3 = inlined_call_operand.vmem [shape: bf16[2,1024], index: 3, kind: output, shape index: {}]  }
   0x1   :  { %s2657_s14 = smov 0   ;;  %s2659_s15 = smov 0  }
   0x2   :  { %s2661_s16 = smov 0   ;;  %s2663_s17 = smov 0  }
   0x3   :  { %s2665_s18 = smov 0  }
   0x4 LB: > { %s25_s19 = sadd.s32 1, %s2619_s16  ;;  %s28_s20 = sadd.s32 1, %s2623_s17  ;;  %s2627_s18 = sphi %s2665_s18, %s13_s18   ;;  %s2623_s17 = sphi %s2663_s17, %s3309_s17   ;;  %s2619_s16 = sphi %s2661_s16, %s3308_s16   ;;  %s2615_s15 = sphi %s2659_s15, %s3307_s15   ;;  %s2611_s14 = sphi %s2657_s14, %s3306_s14   ;;  %s2607_s13 = sphi %s2655_s13, %s3305_s13   ;;  %s2603_s12 = sphi %s2653_s12, %s3304_s12  }
   0x5   : > { %p26_p0 = scmp.ge.s32.totalorder %s25_s19, 5  ;;  %p76_p1 = scmp.ne.s32.totalorder %s2607_s13, %s2603_s12 }
   0x6   : > { %p77_p2 = scmp.eq.s32.totalorder %s2627_s18, 0  ;;  %s69_s24 = sadd.s32 1, %s2607_s13 }
   0x7   : > { %s3311_s19 = smov (%p26_p0, %s25_s19), 0  ;;  %s3313_s20 = smov (!%p26_p0, %s28_s20), %s2623_s17 }
   0x8   : > { %p78_p3 = por %p77_p2, %p76_p1  ;;  %p30_p4 = scmp.ge.s32.totalorder %s3313_s20, 2 }
   0x9   : > { %s64_s21 = ssub.s32 %s2619_s16, %s3311_s19  ;;  %p2095_p6 = scmp.ge.s32.totalorder %s2627_s18, 10 }
   0xa   : > { %s3315_s20 = smov (%p30_p4, %s3313_s20), 0 }
   0xb   : > { %s65_s22 = ssub.s32 %s2623_s17, %s3315_s20  ;;  %156 = sbr.rel (%p2095_p6) target bundleno = 104 (0x68), region = 16 }
   0xc   : > { %s66_s23 = sor.u32 %s65_s22, %s64_s21 }
   0xd   : > { %p67_p5 = scmp.eq.s32.totalorder %s66_s23, 0 }
   0xf   : > { %s2704_s25 = scalar_select %p67_p5, %s2607_s13, %s69_s24  }
  0x10   : > { %171 = sbr.rel (!%p78_p3) target bundleno = 104 (0x68), region = 24  ;;  %s173_s26 = sand.u32 (%p78_p3), 1, %s2607_s13  }
  0x11   : > { %s2270_s27 = smul.u32 (%p78_p3), 1280, %s173_s26  ;;  %s2096_s28 = sshll.u32 (%p78_p3), %s2623_s17, 2 }
  0x12   : > { %s2269_s29 = smul.u32 (%p78_p3), 640, %s2619_s16 }
  0x13   : > { %s2718_s8 = scalar_lea.vmem (%p78_p3), [#allocation3], %s2270_s27 }
  0x14   : > { %s179_s30 = sadd.s32 (%p78_p3), %s2269_s29, %s2096_s28 }
  0x15   : > { %s2098_s4 = sshll.u32 %s179_s30, 2 }
  0x16   : > { %s2713_s7 = scalar_lea.vmem %s3301_s1, %s2098_s4 }
  0x17   : > { %v194_v0 = vld [vmem:[%s2713_s7] sm:$0xff]  ;;  %v196_v1 = vld [vmem:[%s2713_s7 + $0x8] sm:$0xff] }
  0x18   : > { %v198_v2 = vld [vmem:[%s2713_s7 + $0x20] sm:$0xff]  ;;  %195 = vst [vmem:[%s2718_s8] sm:$0xff] %v194_v0  ;;  %197 = vst [vmem:[%s2718_s8 + $0x8] sm:$0xff] %v196_v1  ;;  %v200_v3 = vld [vmem:[%s2713_s7 + $0x28] sm:$0xff] }
  0x19   : > { %199 = vst [vmem:[%s2718_s8 + $0x10] sm:$0xff] %v198_v2  ;;  %v202_v4 = vld [vmem:[%s2713_s7 + $0x40] sm:$0xff]  ;;  %v204_v5 = vld [vmem:[%s2713_s7 + $0x48] sm:$0xff]  ;;  %201 = vst [vmem:[%s2718_s8 + $0x18] sm:$0xff] %v200_v3 }
  0x1a   : > { %203 = vst [vmem:[%s2718_s8 + $0x20] sm:$0xff] %v202_v4  ;;  %205 = vst [vmem:[%s2718_s8 + $0x28] sm:$0xff] %v204_v5  ;;  %v206_v6 = vld [vmem:[%s2713_s7 + $0x60] sm:$0xff]  ;;  %v208_v7 = vld [vmem:[%s2713_s7 + $0x68] sm:$0xff] }
  0x1b   : > { %v210_v8 = vld [vmem:[%s2713_s7 + $0x80] sm:$0xff]  ;;  %207 = vst [vmem:[%s2718_s8 + $0x30] sm:$0xff] %v206_v6  ;;  %209 = vst [vmem:[%s2718_s8 + $0x38] sm:$0xff] %v208_v7  ;;  %v212_v9 = vld [vmem:[%s2713_s7 + $0x88] sm:$0xff] }
  0x1c   : > { %211 = vst [vmem:[%s2718_s8 + $0x40] sm:$0xff] %v210_v8  ;;  %v214_v10 = vld [vmem:[%s2713_s7 + $0xa0] sm:$0xff]  ;;  %v216_v11 = vld [vmem:[%s2713_s7 + $0xa8] sm:$0xff]  ;;  %213 = vst [vmem:[%s2718_s8 + $0x48] sm:$0xff] %v212_v9 }
  0x1d   : > { %215 = vst [vmem:[%s2718_s8 + $0x50] sm:$0xff] %v214_v10  ;;  %217 = vst [vmem:[%s2718_s8 + $0x58] sm:$0xff] %v216_v11  ;;  %v218_v12 = vld [vmem:[%s2713_s7 + $0xc0] sm:$0xff]  ;;  %v220_v13 = vld [vmem:[%s2713_s7 + $0xc8] sm:$0xff] }
  0x1e   : > { %v222_v14 = vld [vmem:[%s2713_s7 + $0xe0] sm:$0xff]  ;;  %219 = vst [vmem:[%s2718_s8 + $0x60] sm:$0xff] %v218_v12  ;;  %221 = vst [vmem:[%s2718_s8 + $0x68] sm:$0xff] %v220_v13  ;;  %v224_v15 = vld [vmem:[%s2713_s7 + $0xe8] sm:$0xff] }
  0x1f   : > { %223 = vst [vmem:[%s2718_s8 + $0x70] sm:$0xff] %v222_v14  ;;  %v226_v16 = vld [vmem:[%s2713_s7 + $0x100] sm:$0xff]  ;;  %v228_v17 = vld [vmem:[%s2713_s7 + $0x108] sm:$0xff]  ;;  %225 = vst [vmem:[%s2718_s8 + $0x78] sm:$0xff] %v224_v15 }
  0x20   : > { %227 = vst [vmem:[%s2718_s8 + $0x80] sm:$0xff] %v226_v16  ;;  %229 = vst [vmem:[%s2718_s8 + $0x88] sm:$0xff] %v228_v17  ;;  %v230_v18 = vld [vmem:[%s2713_s7 + $0x120] sm:$0xff]  ;;  %v232_v19 = vld [vmem:[%s2713_s7 + $0x128] sm:$0xff] }
  0x21   : > { %v234_v20 = vld [vmem:[%s2713_s7 + $0x140] sm:$0xff]  ;;  %231 = vst [vmem:[%s2718_s8 + $0x90] sm:$0xff] %v230_v18  ;;  %233 = vst [vmem:[%s2718_s8 + $0x98] sm:$0xff] %v232_v19  ;;  %v236_v21 = vld [vmem:[%s2713_s7 + $0x148] sm:$0xff] }
  0x22   : > { %235 = vst [vmem:[%s2718_s8 + $0xa0] sm:$0xff] %v234_v20  ;;  %v238_v22 = vld [vmem:[%s2713_s7 + $0x160] sm:$0xff]  ;;  %v240_v23 = vld [vmem:[%s2713_s7 + $0x168] sm:$0xff]  ;;  %237 = vst [vmem:[%s2718_s8 + $0xa8] sm:$0xff] %v236_v21 }
  0x23   : > { %239 = vst [vmem:[%s2718_s8 + $0xb0] sm:$0xff] %v238_v22  ;;  %241 = vst [vmem:[%s2718_s8 + $0xb8] sm:$0xff] %v240_v23  ;;  %v242_v24 = vld [vmem:[%s2713_s7 + $0x180] sm:$0xff]  ;;  %v244_v25 = vld [vmem:[%s2713_s7 + $0x188] sm:$0xff] }
  0x24   : > { %v246_v26 = vld [vmem:[%s2713_s7 + $0x1a0] sm:$0xff]  ;;  %243 = vst [vmem:[%s2718_s8 + $0xc0] sm:$0xff] %v242_v24  ;;  %245 = vst [vmem:[%s2718_s8 + $0xc8] sm:$0xff] %v244_v25  ;;  %v248_v27 = vld [vmem:[%s2713_s7 + $0x1a8] sm:$0xff] }
  0x25   : > { %247 = vst [vmem:[%s2718_s8 + $0xd0] sm:$0xff] %v246_v26  ;;  %v250_v28 = vld [vmem:[%s2713_s7 + $0x1c0] sm:$0xff]  ;;  %v252_v29 = vld [vmem:[%s2713_s7 + $0x1c8] sm:$0xff]  ;;  %249 = vst [vmem:[%s2718_s8 + $0xd8] sm:$0xff] %v248_v27 }
  0x26   : > { %251 = vst [vmem:[%s2718_s8 + $0xe0] sm:$0xff] %v250_v28  ;;  %253 = vst [vmem:[%s2718_s8 + $0xe8] sm:$0xff] %v252_v29  ;;  %v254_v30 = vld [vmem:[%s2713_s7 + $0x1e0] sm:$0xff]  ;;  %v256_v31 = vld [vmem:[%s2713_s7 + $0x1e8] sm:$0xff] }
  0x27   : > { %v258_v32 = vld [vmem:[%s2713_s7 + $0x200] sm:$0xff]  ;;  %255 = vst [vmem:[%s2718_s8 + $0xf0] sm:$0xff] %v254_v30  ;;  %257 = vst [vmem:[%s2718_s8 + $0xf8] sm:$0xff] %v256_v31  ;;  %v260_v33 = vld [vmem:[%s2713_s7 + $0x208] sm:$0xff] }
  0x28   : > { %259 = vst [vmem:[%s2718_s8 + $0x100] sm:$0xff] %v258_v32  ;;  %v262_v34 = vld [vmem:[%s2713_s7 + $0x220] sm:$0xff]  ;;  %v264_v35 = vld [vmem:[%s2713_s7 + $0x228] sm:$0xff]  ;;  %261 = vst [vmem:[%s2718_s8 + $0x108] sm:$0xff] %v260_v33 }
  0x29   : > { %263 = vst [vmem:[%s2718_s8 + $0x110] sm:$0xff] %v262_v34  ;;  %265 = vst [vmem:[%s2718_s8 + $0x118] sm:$0xff] %v264_v35  ;;  %v266_v36 = vld [vmem:[%s2713_s7 + $0x240] sm:$0xff]  ;;  %v268_v37 = vld [vmem:[%s2713_s7 + $0x248] sm:$0xff] }
  0x2a   : > { %v270_v38 = vld [vmem:[%s2713_s7 + $0x260] sm:$0xff]  ;;  %267 = vst [vmem:[%s2718_s8 + $0x120] sm:$0xff] %v266_v36  ;;  %269 = vst [vmem:[%s2718_s8 + $0x128] sm:$0xff] %v268_v37  ;;  %v272_v39 = vld [vmem:[%s2713_s7 + $0x268] sm:$0xff] }
  0x2b   : > { %271 = vst [vmem:[%s2718_s8 + $0x130] sm:$0xff] %v270_v38  ;;  %v274_v40 = vld [vmem:[%s2713_s7 + $0x280] sm:$0xff]  ;;  %v276_v41 = vld [vmem:[%s2713_s7 + $0x288] sm:$0xff]  ;;  %273 = vst [vmem:[%s2718_s8 + $0x138] sm:$0xff] %v272_v39 }
  0x2c   : > { %275 = vst [vmem:[%s2718_s8 + $0x140] sm:$0xff] %v274_v40  ;;  %277 = vst [vmem:[%s2718_s8 + $0x148] sm:$0xff] %v276_v41  ;;  %v278_v42 = vld [vmem:[%s2713_s7 + $0x2a0] sm:$0xff]  ;;  %v280_v43 = vld [vmem:[%s2713_s7 + $0x2a8] sm:$0xff] }
  0x2d   : > { %v282_v44 = vld [vmem:[%s2713_s7 + $0x2c0] sm:$0xff]  ;;  %279 = vst [vmem:[%s2718_s8 + $0x150] sm:$0xff] %v278_v42  ;;  %281 = vst [vmem:[%s2718_s8 + $0x158] sm:$0xff] %v280_v43  ;;  %v284_v45 = vld [vmem:[%s2713_s7 + $0x2c8] sm:$0xff] }
  0x2e   : > { %283 = vst [vmem:[%s2718_s8 + $0x160] sm:$0xff] %v282_v44  ;;  %v286_v46 = vld [vmem:[%s2713_s7 + $0x2e0] sm:$0xff]  ;;  %v288_v47 = vld [vmem:[%s2713_s7 + $0x2e8] sm:$0xff]  ;;  %285 = vst [vmem:[%s2718_s8 + $0x168] sm:$0xff] %v284_v45 }
  0x2f   : > { %287 = vst [vmem:[%s2718_s8 + $0x170] sm:$0xff] %v286_v46  ;;  %289 = vst [vmem:[%s2718_s8 + $0x178] sm:$0xff] %v288_v47  ;;  %v290_v48 = vld [vmem:[%s2713_s7 + $0x300] sm:$0xff]  ;;  %v292_v49 = vld [vmem:[%s2713_s7 + $0x308] sm:$0xff] }
  0x30   : > { %v294_v50 = vld [vmem:[%s2713_s7 + $0x320] sm:$0xff]  ;;  %291 = vst [vmem:[%s2718_s8 + $0x180] sm:$0xff] %v290_v48  ;;  %293 = vst [vmem:[%s2718_s8 + $0x188] sm:$0xff] %v292_v49  ;;  %v296_v51 = vld [vmem:[%s2713_s7 + $0x328] sm:$0xff] }
  0x31   : > { %295 = vst [vmem:[%s2718_s8 + $0x190] sm:$0xff] %v294_v50  ;;  %v298_v52 = vld [vmem:[%s2713_s7 + $0x340] sm:$0xff]  ;;  %v300_v53 = vld [vmem:[%s2713_s7 + $0x348] sm:$0xff]  ;;  %297 = vst [vmem:[%s2718_s8 + $0x198] sm:$0xff] %v296_v51 }
  0x32   : > { %299 = vst [vmem:[%s2718_s8 + $0x1a0] sm:$0xff] %v298_v52  ;;  %301 = vst [vmem:[%s2718_s8 + $0x1a8] sm:$0xff] %v300_v53  ;;  %v302_v54 = vld [vmem:[%s2713_s7 + $0x360] sm:$0xff]  ;;  %v304_v55 = vld [vmem:[%s2713_s7 + $0x368] sm:$0xff] }
  0x33   : > { %v306_v56 = vld [vmem:[%s2713_s7 + $0x380] sm:$0xff]  ;;  %303 = vst [vmem:[%s2718_s8 + $0x1b0] sm:$0xff] %v302_v54  ;;  %305 = vst [vmem:[%s2718_s8 + $0x1b8] sm:$0xff] %v304_v55  ;;  %v308_v57 = vld [vmem:[%s2713_s7 + $0x388] sm:$0xff] }
  0x34   : > { %307 = vst [vmem:[%s2718_s8 + $0x1c0] sm:$0xff] %v306_v56  ;;  %v310_v58 = vld [vmem:[%s2713_s7 + $0x3a0] sm:$0xff]  ;;  %v312_v59 = vld [vmem:[%s2713_s7 + $0x3a8] sm:$0xff]  ;;  %309 = vst [vmem:[%s2718_s8 + $0x1c8] sm:$0xff] %v308_v57 }
  0x35   : > { %311 = vst [vmem:[%s2718_s8 + $0x1d0] sm:$0xff] %v310_v58  ;;  %313 = vst [vmem:[%s2718_s8 + $0x1d8] sm:$0xff] %v312_v59  ;;  %v314_v60 = vld [vmem:[%s2713_s7 + $0x3c0] sm:$0xff]  ;;  %v316_v61 = vld [vmem:[%s2713_s7 + $0x3c8] sm:$0xff] }
  0x36   : > { %v318_v62 = vld [vmem:[%s2713_s7 + $0x3e0] sm:$0xff]  ;;  %315 = vst [vmem:[%s2718_s8 + $0x1e0] sm:$0xff] %v314_v60  ;;  %317 = vst [vmem:[%s2718_s8 + $0x1e8] sm:$0xff] %v316_v61  ;;  %v320_v63 = vld [vmem:[%s2713_s7 + $0x3e8] sm:$0xff] }
  0x37   : > { %319 = vst [vmem:[%s2718_s8 + $0x1f0] sm:$0xff] %v318_v62  ;;  %v322_v0 = vld [vmem:[%s2713_s7 + $0x400] sm:$0xff]  ;;  %v324_v1 = vld [vmem:[%s2713_s7 + $0x408] sm:$0xff]  ;;  %321 = vst [vmem:[%s2718_s8 + $0x1f8] sm:$0xff] %v320_v63 }
  0x38   : > { %323 = vst [vmem:[%s2718_s8 + $0x200] sm:$0xff] %v322_v0  ;;  %325 = vst [vmem:[%s2718_s8 + $0x208] sm:$0xff] %v324_v1  ;;  %v326_v2 = vld [vmem:[%s2713_s7 + $0x420] sm:$0xff]  ;;  %v328_v3 = vld [vmem:[%s2713_s7 + $0x428] sm:$0xff] }
  0x39   : > { %v330_v4 = vld [vmem:[%s2713_s7 + $0x440] sm:$0xff]  ;;  %327 = vst [vmem:[%s2718_s8 + $0x210] sm:$0xff] %v326_v2  ;;  %329 = vst [vmem:[%s2718_s8 + $0x218] sm:$0xff] %v328_v3  ;;  %v332_v5 = vld [vmem:[%s2713_s7 + $0x448] sm:$0xff] }
  0x3a   : > { %331 = vst [vmem:[%s2718_s8 + $0x220] sm:$0xff] %v330_v4  ;;  %v334_v6 = vld [vmem:[%s2713_s7 + $0x460] sm:$0xff]  ;;  %v336_v7 = vld [vmem:[%s2713_s7 + $0x468] sm:$0xff]  ;;  %333 = vst [vmem:[%s2718_s8 + $0x228] sm:$0xff] %v332_v5 }
  0x3b   : > { %335 = vst [vmem:[%s2718_s8 + $0x230] sm:$0xff] %v334_v6  ;;  %337 = vst [vmem:[%s2718_s8 + $0x238] sm:$0xff] %v336_v7  ;;  %v338_v8 = vld [vmem:[%s2713_s7 + $0x480] sm:$0xff]  ;;  %v340_v9 = vld [vmem:[%s2713_s7 + $0x488] sm:$0xff] }
  0x3c   : > { %v342_v10 = vld [vmem:[%s2713_s7 + $0x4a0] sm:$0xff]  ;;  %339 = vst [vmem:[%s2718_s8 + $0x240] sm:$0xff] %v338_v8  ;;  %341 = vst [vmem:[%s2718_s8 + $0x248] sm:$0xff] %v340_v9  ;;  %v344_v11 = vld [vmem:[%s2713_s7 + $0x4a8] sm:$0xff] }
  0x3d   : > { %343 = vst [vmem:[%s2718_s8 + $0x250] sm:$0xff] %v342_v10  ;;  %v346_v12 = vld [vmem:[%s2713_s7 + $0x4c0] sm:$0xff]  ;;  %v348_v13 = vld [vmem:[%s2713_s7 + $0x4c8] sm:$0xff]  ;;  %345 = vst [vmem:[%s2718_s8 + $0x258] sm:$0xff] %v344_v11 }
  0x3e   : > { %347 = vst [vmem:[%s2718_s8 + $0x260] sm:$0xff] %v346_v12  ;;  %349 = vst [vmem:[%s2718_s8 + $0x268] sm:$0xff] %v348_v13  ;;  %v350_v14 = vld [vmem:[%s2713_s7 + $0x4e0] sm:$0xff]  ;;  %v352_v15 = vld [vmem:[%s2713_s7 + $0x4e8] sm:$0xff] }
  0x3f   : > { %v354_v16 = vld [vmem:[%s2713_s7 + $0x500] sm:$0xff]  ;;  %351 = vst [vmem:[%s2718_s8 + $0x270] sm:$0xff] %v350_v14  ;;  %353 = vst [vmem:[%s2718_s8 + $0x278] sm:$0xff] %v352_v15  ;;  %v356_v17 = vld [vmem:[%s2713_s7 + $0x508] sm:$0xff] }
  0x40   : > { %355 = vst [vmem:[%s2718_s8 + $0x280] sm:$0xff] %v354_v16  ;;  %v358_v18 = vld [vmem:[%s2713_s7 + $0x520] sm:$0xff]  ;;  %v360_v19 = vld [vmem:[%s2713_s7 + $0x528] sm:$0xff]  ;;  %357 = vst [vmem:[%s2718_s8 + $0x288] sm:$0xff] %v356_v17 }
  0x41   : > { %359 = vst [vmem:[%s2718_s8 + $0x290] sm:$0xff] %v358_v18  ;;  %361 = vst [vmem:[%s2718_s8 + $0x298] sm:$0xff] %v360_v19  ;;  %v362_v20 = vld [vmem:[%s2713_s7 + $0x540] sm:$0xff]  ;;  %v364_v21 = vld [vmem:[%s2713_s7 + $0x548] sm:$0xff] }
  0x42   : > { %v366_v22 = vld [vmem:[%s2713_s7 + $0x560] sm:$0xff]  ;;  %363 = vst [vmem:[%s2718_s8 + $0x2a0] sm:$0xff] %v362_v20  ;;  %365 = vst [vmem:[%s2718_s8 + $0x2a8] sm:$0xff] %v364_v21  ;;  %v368_v23 = vld [vmem:[%s2713_s7 + $0x568] sm:$0xff] }
  0x43   : > { %367 = vst [vmem:[%s2718_s8 + $0x2b0] sm:$0xff] %v366_v22  ;;  %v370_v24 = vld [vmem:[%s2713_s7 + $0x580] sm:$0xff]  ;;  %v372_v25 = vld [vmem:[%s2713_s7 + $0x588] sm:$0xff]  ;;  %369 = vst [vmem:[%s2718_s8 + $0x2b8] sm:$0xff] %v368_v23 }
  0x44   : > { %371 = vst [vmem:[%s2718_s8 + $0x2c0] sm:$0xff] %v370_v24  ;;  %373 = vst [vmem:[%s2718_s8 + $0x2c8] sm:$0xff] %v372_v25  ;;  %v374_v26 = vld [vmem:[%s2713_s7 + $0x5a0] sm:$0xff]  ;;  %v376_v27 = vld [vmem:[%s2713_s7 + $0x5a8] sm:$0xff] }
  0x45   : > { %v378_v28 = vld [vmem:[%s2713_s7 + $0x5c0] sm:$0xff]  ;;  %375 = vst [vmem:[%s2718_s8 + $0x2d0] sm:$0xff] %v374_v26  ;;  %377 = vst [vmem:[%s2718_s8 + $0x2d8] sm:$0xff] %v376_v27  ;;  %v380_v29 = vld [vmem:[%s2713_s7 + $0x5c8] sm:$0xff] }
  0x46   : > { %379 = vst [vmem:[%s2718_s8 + $0x2e0] sm:$0xff] %v378_v28  ;;  %v382_v30 = vld [vmem:[%s2713_s7 + $0x5e0] sm:$0xff]  ;;  %v384_v31 = vld [vmem:[%s2713_s7 + $0x5e8] sm:$0xff]  ;;  %381 = vst [vmem:[%s2718_s8 + $0x2e8] sm:$0xff] %v380_v29 }
  0x47   : > { %383 = vst [vmem:[%s2718_s8 + $0x2f0] sm:$0xff] %v382_v30  ;;  %385 = vst [vmem:[%s2718_s8 + $0x2f8] sm:$0xff] %v384_v31  ;;  %v386_v32 = vld [vmem:[%s2713_s7 + $0x600] sm:$0xff]  ;;  %v388_v33 = vld [vmem:[%s2713_s7 + $0x608] sm:$0xff] }
  0x48   : > { %v390_v34 = vld [vmem:[%s2713_s7 + $0x620] sm:$0xff]  ;;  %387 = vst [vmem:[%s2718_s8 + $0x300] sm:$0xff] %v386_v32  ;;  %389 = vst [vmem:[%s2718_s8 + $0x308] sm:$0xff] %v388_v33  ;;  %v392_v35 = vld [vmem:[%s2713_s7 + $0x628] sm:$0xff] }
  0x49   : > { %391 = vst [vmem:[%s2718_s8 + $0x310] sm:$0xff] %v390_v34  ;;  %v394_v36 = vld [vmem:[%s2713_s7 + $0x640] sm:$0xff]  ;;  %v396_v37 = vld [vmem:[%s2713_s7 + $0x648] sm:$0xff]  ;;  %393 = vst [vmem:[%s2718_s8 + $0x318] sm:$0xff] %v392_v35 }
  0x4a   : > { %395 = vst [vmem:[%s2718_s8 + $0x320] sm:$0xff] %v394_v36  ;;  %397 = vst [vmem:[%s2718_s8 + $0x328] sm:$0xff] %v396_v37  ;;  %v398_v38 = vld [vmem:[%s2713_s7 + $0x660] sm:$0xff]  ;;  %v400_v39 = vld [vmem:[%s2713_s7 + $0x668] sm:$0xff] }
  0x4b   : > { %v402_v40 = vld [vmem:[%s2713_s7 + $0x680] sm:$0xff]  ;;  %399 = vst [vmem:[%s2718_s8 + $0x330] sm:$0xff] %v398_v38  ;;  %401 = vst [vmem:[%s2718_s8 + $0x338] sm:$0xff] %v400_v39  ;;  %v404_v41 = vld [vmem:[%s2713_s7 + $0x688] sm:$0xff] }
  0x4c   : > { %403 = vst [vmem:[%s2718_s8 + $0x340] sm:$0xff] %v402_v40  ;;  %v406_v42 = vld [vmem:[%s2713_s7 + $0x6a0] sm:$0xff]  ;;  %v408_v43 = vld [vmem:[%s2713_s7 + $0x6a8] sm:$0xff]  ;;  %405 = vst [vmem:[%s2718_s8 + $0x348] sm:$0xff] %v404_v41 }
  0x4d   : > { %407 = vst [vmem:[%s2718_s8 + $0x350] sm:$0xff] %v406_v42  ;;  %409 = vst [vmem:[%s2718_s8 + $0x358] sm:$0xff] %v408_v43  ;;  %v410_v44 = vld [vmem:[%s2713_s7 + $0x6c0] sm:$0xff]  ;;  %v412_v45 = vld [vmem:[%s2713_s7 + $0x6c8] sm:$0xff] }
  0x4e   : > { %v414_v46 = vld [vmem:[%s2713_s7 + $0x6e0] sm:$0xff]  ;;  %411 = vst [vmem:[%s2718_s8 + $0x360] sm:$0xff] %v410_v44  ;;  %413 = vst [vmem:[%s2718_s8 + $0x368] sm:$0xff] %v412_v45  ;;  %v416_v47 = vld [vmem:[%s2713_s7 + $0x6e8] sm:$0xff] }
  0x4f   : > { %415 = vst [vmem:[%s2718_s8 + $0x370] sm:$0xff] %v414_v46  ;;  %v418_v48 = vld [vmem:[%s2713_s7 + $0x700] sm:$0xff]  ;;  %v420_v49 = vld [vmem:[%s2713_s7 + $0x708] sm:$0xff]  ;;  %417 = vst [vmem:[%s2718_s8 + $0x378] sm:$0xff] %v416_v47 }
  0x50   : > { %419 = vst [vmem:[%s2718_s8 + $0x380] sm:$0xff] %v418_v48  ;;  %421 = vst [vmem:[%s2718_s8 + $0x388] sm:$0xff] %v420_v49  ;;  %v422_v50 = vld [vmem:[%s2713_s7 + $0x720] sm:$0xff]  ;;  %v424_v51 = vld [vmem:[%s2713_s7 + $0x728] sm:$0xff] }
  0x51   : > { %v426_v52 = vld [vmem:[%s2713_s7 + $0x740] sm:$0xff]  ;;  %423 = vst [vmem:[%s2718_s8 + $0x390] sm:$0xff] %v422_v50  ;;  %425 = vst [vmem:[%s2718_s8 + $0x398] sm:$0xff] %v424_v51  ;;  %v428_v53 = vld [vmem:[%s2713_s7 + $0x748] sm:$0xff] }
  0x52   : > { %427 = vst [vmem:[%s2718_s8 + $0x3a0] sm:$0xff] %v426_v52  ;;  %v430_v54 = vld [vmem:[%s2713_s7 + $0x760] sm:$0xff]  ;;  %v432_v55 = vld [vmem:[%s2713_s7 + $0x768] sm:$0xff]  ;;  %429 = vst [vmem:[%s2718_s8 + $0x3a8] sm:$0xff] %v428_v53 }
  0x53   : > { %431 = vst [vmem:[%s2718_s8 + $0x3b0] sm:$0xff] %v430_v54  ;;  %433 = vst [vmem:[%s2718_s8 + $0x3b8] sm:$0xff] %v432_v55  ;;  %v434_v56 = vld [vmem:[%s2713_s7 + $0x780] sm:$0xff]  ;;  %v436_v57 = vld [vmem:[%s2713_s7 + $0x788] sm:$0xff] }
  0x54   : > { %v438_v58 = vld [vmem:[%s2713_s7 + $0x7a0] sm:$0xff]  ;;  %435 = vst [vmem:[%s2718_s8 + $0x3c0] sm:$0xff] %v434_v56  ;;  %437 = vst [vmem:[%s2718_s8 + $0x3c8] sm:$0xff] %v436_v57  ;;  %v440_v59 = vld [vmem:[%s2713_s7 + $0x7a8] sm:$0xff] }
  0x55   : > { %439 = vst [vmem:[%s2718_s8 + $0x3d0] sm:$0xff] %v438_v58  ;;  %v442_v60 = vld [vmem:[%s2713_s7 + $0x7c0] sm:$0xff]  ;;  %v444_v61 = vld [vmem:[%s2713_s7 + $0x7c8] sm:$0xff]  ;;  %441 = vst [vmem:[%s2718_s8 + $0x3d8] sm:$0xff] %v440_v59 }
  0x56   : > { %443 = vst [vmem:[%s2718_s8 + $0x3e0] sm:$0xff] %v442_v60  ;;  %445 = vst [vmem:[%s2718_s8 + $0x3e8] sm:$0xff] %v444_v61  ;;  %v446_v62 = vld [vmem:[%s2713_s7 + $0x7e0] sm:$0xff]  ;;  %v448_v63 = vld [vmem:[%s2713_s7 + $0x7e8] sm:$0xff] }
  0x57   : > { %v450_v0 = vld [vmem:[%s2713_s7 + $0x800] sm:$0xff]  ;;  %447 = vst [vmem:[%s2718_s8 + $0x3f0] sm:$0xff] %v446_v62  ;;  %449 = vst [vmem:[%s2718_s8 + $0x3f8] sm:$0xff] %v448_v63  ;;  %v452_v1 = vld [vmem:[%s2713_s7 + $0x808] sm:$0xff] }
  0x58   : > { %451 = vst [vmem:[%s2718_s8 + $0x400] sm:$0xff] %v450_v0  ;;  %v454_v2 = vld [vmem:[%s2713_s7 + $0x820] sm:$0xff]  ;;  %v456_v3 = vld [vmem:[%s2713_s7 + $0x828] sm:$0xff]  ;;  %453 = vst [vmem:[%s2718_s8 + $0x408] sm:$0xff] %v452_v1 }
  0x59   : > { %455 = vst [vmem:[%s2718_s8 + $0x410] sm:$0xff] %v454_v2  ;;  %457 = vst [vmem:[%s2718_s8 + $0x418] sm:$0xff] %v456_v3  ;;  %v458_v4 = vld [vmem:[%s2713_s7 + $0x840] sm:$0xff]  ;;  %v460_v5 = vld [vmem:[%s2713_s7 + $0x848] sm:$0xff] }
  0x5a   : > { %v462_v6 = vld [vmem:[%s2713_s7 + $0x860] sm:$0xff]  ;;  %459 = vst [vmem:[%s2718_s8 + $0x420] sm:$0xff] %v458_v4  ;;  %461 = vst [vmem:[%s2718_s8 + $0x428] sm:$0xff] %v460_v5  ;;  %v464_v7 = vld [vmem:[%s2713_s7 + $0x868] sm:$0xff] }
  0x5b   : > { %463 = vst [vmem:[%s2718_s8 + $0x430] sm:$0xff] %v462_v6  ;;  %v466_v8 = vld [vmem:[%s2713_s7 + $0x880] sm:$0xff]  ;;  %v468_v9 = vld [vmem:[%s2713_s7 + $0x888] sm:$0xff]  ;;  %465 = vst [vmem:[%s2718_s8 + $0x438] sm:$0xff] %v464_v7 }
  0x5c   : > { %467 = vst [vmem:[%s2718_s8 + $0x440] sm:$0xff] %v466_v8  ;;  %469 = vst [vmem:[%s2718_s8 + $0x448] sm:$0xff] %v468_v9  ;;  %v470_v10 = vld [vmem:[%s2713_s7 + $0x8a0] sm:$0xff]  ;;  %v472_v11 = vld [vmem:[%s2713_s7 + $0x8a8] sm:$0xff] }
  0x5d   : > { %v474_v12 = vld [vmem:[%s2713_s7 + $0x8c0] sm:$0xff]  ;;  %471 = vst [vmem:[%s2718_s8 + $0x450] sm:$0xff] %v470_v10  ;;  %473 = vst [vmem:[%s2718_s8 + $0x458] sm:$0xff] %v472_v11  ;;  %v476_v13 = vld [vmem:[%s2713_s7 + $0x8c8] sm:$0xff] }
  0x5e   : > { %475 = vst [vmem:[%s2718_s8 + $0x460] sm:$0xff] %v474_v12  ;;  %v478_v14 = vld [vmem:[%s2713_s7 + $0x8e0] sm:$0xff]  ;;  %v480_v15 = vld [vmem:[%s2713_s7 + $0x8e8] sm:$0xff]  ;;  %477 = vst [vmem:[%s2718_s8 + $0x468] sm:$0xff] %v476_v13 }
  0x5f   : > { %479 = vst [vmem:[%s2718_s8 + $0x470] sm:$0xff] %v478_v14  ;;  %481 = vst [vmem:[%s2718_s8 + $0x478] sm:$0xff] %v480_v15  ;;  %v482_v16 = vld [vmem:[%s2713_s7 + $0x900] sm:$0xff]  ;;  %v484_v17 = vld [vmem:[%s2713_s7 + $0x908] sm:$0xff] }
  0x60   : > { %v486_v18 = vld [vmem:[%s2713_s7 + $0x920] sm:$0xff]  ;;  %483 = vst [vmem:[%s2718_s8 + $0x480] sm:$0xff] %v482_v16  ;;  %485 = vst [vmem:[%s2718_s8 + $0x488] sm:$0xff] %v484_v17  ;;  %v488_v19 = vld [vmem:[%s2713_s7 + $0x928] sm:$0xff] }
  0x61   : > { %487 = vst [vmem:[%s2718_s8 + $0x490] sm:$0xff] %v486_v18  ;;  %v490_v20 = vld [vmem:[%s2713_s7 + $0x940] sm:$0xff]  ;;  %v492_v21 = vld [vmem:[%s2713_s7 + $0x948] sm:$0xff]  ;;  %489 = vst [vmem:[%s2718_s8 + $0x498] sm:$0xff] %v488_v19 }
  0x62   : > { %491 = vst [vmem:[%s2718_s8 + $0x4a0] sm:$0xff] %v490_v20  ;;  %493 = vst [vmem:[%s2718_s8 + $0x4a8] sm:$0xff] %v492_v21  ;;  %v494_v22 = vld [vmem:[%s2713_s7 + $0x960] sm:$0xff]  ;;  %v496_v23 = vld [vmem:[%s2713_s7 + $0x968] sm:$0xff] }
  0x63   : > { %v498_v24 = vld [vmem:[%s2713_s7 + $0x980] sm:$0xff]  ;;  %495 = vst [vmem:[%s2718_s8 + $0x4b0] sm:$0xff] %v494_v22  ;;  %497 = vst [vmem:[%s2718_s8 + $0x4b8] sm:$0xff] %v496_v23  ;;  %v500_v25 = vld [vmem:[%s2713_s7 + $0x988] sm:$0xff] }
  0x64   : > { %499 = vst [vmem:[%s2718_s8 + $0x4c0] sm:$0xff] %v498_v24  ;;  %v502_v26 = vld [vmem:[%s2713_s7 + $0x9a0] sm:$0xff]  ;;  %v504_v27 = vld [vmem:[%s2713_s7 + $0x9a8] sm:$0xff]  ;;  %501 = vst [vmem:[%s2718_s8 + $0x4c8] sm:$0xff] %v500_v25 }
  0x65   : > { %503 = vst [vmem:[%s2718_s8 + $0x4d0] sm:$0xff] %v502_v26  ;;  %505 = vst [vmem:[%s2718_s8 + $0x4d8] sm:$0xff] %v504_v27  ;;  %v506_v28 = vld [vmem:[%s2713_s7 + $0x9c0] sm:$0xff]  ;;  %v508_v29 = vld [vmem:[%s2713_s7 + $0x9c8] sm:$0xff] }
  0x66   : > { %v510_v30 = vld [vmem:[%s2713_s7 + $0x9e0] sm:$0xff]  ;;  %507 = vst [vmem:[%s2718_s8 + $0x4e0] sm:$0xff] %v506_v28  ;;  %509 = vst [vmem:[%s2718_s8 + $0x4e8] sm:$0xff] %v508_v29  ;;  %v512_v31 = vld [vmem:[%s2713_s7 + $0x9e8] sm:$0xff] }
  0x67   : > { %511 = vst [vmem:[%s2718_s8 + $0x4f0] sm:$0xff] %v510_v30  ;;  %513 = vst [vmem:[%s2718_s8 + $0x4f8] sm:$0xff] %v512_v31 }
  0x68 PF: > { %p2099_p7 = scmp.ge.s32.totalorder %s2627_s18, 1  ;;  %p526_p8 = scmp.lt.s32.totalorder %s2627_s18, 11 }
  0x6a   : > { %p527_p9 = pnand %p2099_p7, %p526_p8 }
  0x6b   : > { %s533_s9 = sand.u32 (!%p527_p9), 1, %s2603_s12   ;;  %s571_s10 = smul.u32 (!%p527_p9), 5, %s2611_s14 }
  0x6c   : > { %530 = sbr.rel (%p527_p9) target bundleno = 518 (0x206), region = 51  ;;  %s2100_s21 = sshll.u32 (!%p527_p9), %s2615_s15, 2 }
  0x6d   : > { %s2271_s11 = smul.u32 (!%p527_p9), 1280, %s533_s9  ;;  %p574_p10 = scmp.lt.s32.totalorder (!%p527_p9), %s571_s10, 24 }
  0x6e   : > { %p583_p11 = scmp.lt.s32.totalorder (!%p527_p9), %s2100_s21, 7  ;;  %p2102_p12 = scmp.ne.s32.totalorder (!%p527_p9), %s2611_s14, 0 }
  0x6f   : > { %s3058_s30 = scalar_lea.vmem (!%p527_p9), [#allocation3], %s2271_s11 }
  0x71   : > { %s3317_s10 = smov (!%p574_p10, %s571_s10), 24  ;;  %s3319_s21 = smov (!%p583_p11, %s2100_s21), 7 }
  0x72   : > { %s578_s24 = scalar_lea.vmem %s3300_s0, %s3317_s10  ;;  %s585_s12 = scalar_lea.vmem %s3302_s2, %s3319_s21 }
  0x73   : > { %s594_s15 = scalar_lea.vmem %s3303_s3, %s3319_s21  ;;  %600 = sbr.rel (%p2102_p12) target bundleno = 122 (0x7a), region = 59 }
  0x78   : > { %v2629_v32 = vmov 0.0  }
  0x79   : > { %601 = vst [vmem:[#allocation2] sm:$0xff] %v2629_v32 }
  0x7a PF: > { %v2332_v33 = vld [vmem:[%s3058_s30 + $0xe4] ss:$16 sps:$4 sm:$0xff]   ;;  %v2336_v35 = vld [vmem:[%s3058_s30 + $0xe0] ss:$16 sps:$4 sm:$0xff]   ;;  %v2630_v5 = vmov 1966171168   ;;  %v769_v7 = vlaneseq }
  0x7b   : > { %v2334_v34 = vld [vmem:[%s3058_s30 + $0x2e4] ss:$16 sps:$4 sm:$0xff]   ;;  %1609 = vmatprep.subr.bf16.mxu0 %v2332_v33  ;;  %v2337_v36 = vld [vmem:[%s3058_s30 + $0x2e0] ss:$16 sps:$4 sm:$0xff]   ;;  %v767_v6 = vunpack.c.l.s4 %v2630_v5  ;;  %v3117_v21 = vld [vmem:[%s578_s24] sm:$0x1f] }
  0x7c   : > { %1650 = vmatprep.subr.bf16.mxu1 %v2334_v34  ;;  %v2338_v37 = vld [vmem:[%s3058_s30 + $0xc4] ss:$16 sps:$4 sm:$0xff]   ;;  %1610 = vmatpush1.bf16.msra.mxu0 %v2336_v35  ;;  %v2342_v39 = vld [vmem:[%s3058_s30 + $0xc0] ss:$16 sps:$4 sm:$0xff]   ;;  %v3100_v12 = vshrl.u32 %v769_v7, 7  ;;  %p2263_p13 = scmp.ne.s32.totalorder %s2611_s14, 4 }
  0x7d   : > { %1651 = vmatpush1.bf16.msra.mxu1 %v2337_v36  ;;  %v2340_v38 = vld [vmem:[%s3058_s30 + $0x2c4] ss:$16 sps:$4 sm:$0xff]   ;;  %1611 = vmatprep.subr.bf16.mxu0 %v2338_v37  ;;  %v2343_v40 = vld [vmem:[%s3058_s30 + $0x2c0] ss:$16 sps:$4 sm:$0xff]   ;;  %v768_v11 = vunpack.c.0.s8 %v767_v6  ;;  %v2462_v6 = vld [vmem:[%s3058_s30 + $0x48] ss:$16 sps:$4 sm:$0xff]  }
  0x7e   : > { %1652 = vmatprep.subr.bf16.mxu1 %v2340_v38  ;;  %v2344_v41 = vld [vmem:[%s3058_s30 + $0xa4] ss:$16 sps:$4 sm:$0xff]   ;;  %v2348_v43 = vld [vmem:[%s3058_s30 + $0xa0] ss:$16 sps:$4 sm:$0xff]  }
  0x7f   : > { %v2346_v42 = vld [vmem:[%s3058_s30 + $0x2a4] ss:$16 sps:$4 sm:$0xff]   ;;  %v2349_v44 = vld [vmem:[%s3058_s30 + $0x2a0] ss:$16 sps:$4 sm:$0xff]   ;;  %v3108_v18 = vsub.s32 %v768_v11, %v3100_v12  ;;  %v2468_v11 = vld [vmem:[%s3058_s30 + $0x28] ss:$16 sps:$4 sm:$0xff]  }
  0x80   : > { %1612 = vmatpush1.bf16.msra.mxu0 %v2342_v39  ;;  %v2350_v45 = vld [vmem:[%s3058_s30 + $0x84] ss:$16 sps:$4 sm:$0xff]   ;;  %v2354_v47 = vld [vmem:[%s3058_s30 + $0x80] ss:$16 sps:$4 sm:$0xff]  }
  0x81   : > { %1653 = vmatpush1.bf16.msra.mxu1 %v2343_v40  ;;  %1613 = vmatprep.subr.bf16.mxu0 %v2344_v41  ;;  %v2352_v46 = vld [vmem:[%s3058_s30 + $0x284] ss:$16 sps:$4 sm:$0xff]   ;;  %v2355_v48 = vld [vmem:[%s3058_s30 + $0x280] ss:$16 sps:$4 sm:$0xff]   ;;  %v772_v23 = vrot.slane %v3117_v21, %v3108_v18 }
  0x82   : > { %1654 = vmatprep.subr.bf16.mxu1 %v2346_v42  ;;  %v2356_v49 = vld [vmem:[%s3058_s30 + $0x64] ss:$16 sps:$4 sm:$0xff]   ;;  %v2360_v51 = vld [vmem:[%s3058_s30 + $0x60] ss:$16 sps:$4 sm:$0xff]  }
  0x83   : > { %v2358_v50 = vld [vmem:[%s3058_s30 + $0x264] ss:$16 sps:$4 sm:$0xff]   ;;  %v2361_v52 = vld [vmem:[%s3058_s30 + $0x260] ss:$16 sps:$4 sm:$0xff]   ;;  %v780_v27 = vcombine.high %v772_v23, %v772_v23 }
  0x84   : > { %1614 = vmatpush1.bf16.msra.mxu0 %v2348_v43  ;;  %v2362_v53 = vld [vmem:[%s3058_s30 + $0x44] ss:$16 sps:$4 sm:$0xff]   ;;  %v2366_v55 = vld [vmem:[%s3058_s30 + $0x40] ss:$16 sps:$4 sm:$0xff]   ;;  %v3143_v43 = vrot.slane %v772_v23, %v3108_v18  ;;  %v2480_v23 = vld [vmem:[%s3058_s30 + $0x2e8] ss:$16 sps:$4 sm:$0xff]  }
  0x85   : > { %1655 = vmatpush1.bf16.msra.mxu1 %v2349_v44  ;;  %1615 = vmatprep.subr.bf16.mxu0 %v2350_v45  ;;  %v2364_v54 = vld [vmem:[%s3058_s30 + $0x244] ss:$16 sps:$4 sm:$0xff]   ;;  %v2367_v56 = vld [vmem:[%s3058_s30 + $0x240] ss:$16 sps:$4 sm:$0xff]   ;;  %v801_v29 = vrot.slane %v780_v27, %v3108_v18  ;;  %v2486_v27 = vld [vmem:[%s3058_s30 + $0x2c8] ss:$16 sps:$4 sm:$0xff]  }
  0x86   : > { %1656 = vmatprep.subr.bf16.mxu1 %v2352_v46  ;;  %v2368_v57 = vld [vmem:[%s3058_s30 + $0x24] ss:$16 sps:$4 sm:$0xff]   ;;  %v2372_v59 = vld [vmem:[%s3058_s30 + $0x20] ss:$16 sps:$4 sm:$0xff]   ;;  %v2434_v46 = vld [vmem:[%s3058_s30 + $0xec] ss:$16 sps:$4 sm:$0xff]  }
  0x87   : > { %v2370_v58 = vld [vmem:[%s3058_s30 + $0x224] ss:$16 sps:$4 sm:$0xff]   ;;  %v2373_v60 = vld [vmem:[%s3058_s30 + $0x220] ss:$16 sps:$4 sm:$0xff]   ;;  %v3130_v33 = vcombine.high %v801_v29, %v801_v29  ;;  %1641 = vmatprep.mubr.bf16.mxu0 %v801_v29 }
  0x88   : > { %1616 = vmatpush1.bf16.msra.mxu0 %v2354_v47  ;;  %v2374_v61 = vld [vmem:[%s3058_s30 + $0x4] ss:$16 sps:$4 sm:$0xff]   ;;  %v2378_v63 = vld [vmem:[%s3058_s30] ss:$16 sps:$4 sm:$0xff]   ;;  %v3150_v47 = vcombine.high %v3143_v43, %v3143_v43 }
  0x89   : > { %1657 = vmatpush1.bf16.msra.mxu1 %v2355_v48  ;;  %1617 = vmatprep.subr.bf16.mxu0 %v2356_v49  ;;  %v2376_v62 = vld [vmem:[%s3058_s30 + $0x204] ss:$16 sps:$4 sm:$0xff]   ;;  %v2379_v0 = vld [vmem:[%s3058_s30 + $0x200] ss:$16 sps:$4 sm:$0xff]   ;;  %v2432_v49 = vld [vmem:[%s3058_s30 + $0xe8] ss:$16 sps:$4 sm:$0xff]  }
  0x8a   : > { %1658 = vmatprep.subr.bf16.mxu1 %v2358_v50  ;;  %v2380_v1 = vld [vmem:[%s3058_s30 + $0x1e4] ss:$16 sps:$4 sm:$0xff]   ;;  %v2384_v3 = vld [vmem:[%s3058_s30 + $0x1e0] ss:$16 sps:$4 sm:$0xff]   ;;  %1682 = vmatprep.mubr.bf16.mxu1 %v3130_v33 }
  0x8b   : > { %v2382_v2 = vld [vmem:[%s3058_s30 + $0x3e4] ss:$16 sps:$4 sm:$0xff]   ;;  %v2385_v4 = vld [vmem:[%s3058_s30 + $0x3e0] ss:$16 sps:$4 sm:$0xff]  }
  0x8c   : > { %1618 = vmatpush1.bf16.msra.mxu0 %v2360_v51  ;;  %v2386_v8 = vld [vmem:[%s3058_s30 + $0x1c4] ss:$16 sps:$4 sm:$0xff]   ;;  %v2390_v10 = vld [vmem:[%s3058_s30 + $0x1c0] ss:$16 sps:$4 sm:$0xff]   ;;  %v2440_v51 = vld [vmem:[%s3058_s30 + $0xcc] ss:$16 sps:$4 sm:$0xff]  }
  0x8d   : > { %1659 = vmatpush1.bf16.msra.mxu1 %v2361_v52  ;;  %1619 = vmatprep.subr.bf16.mxu0 %v2362_v53  ;;  %v2388_v9 = vld [vmem:[%s3058_s30 + $0x3c4] ss:$16 sps:$4 sm:$0xff]   ;;  %v2391_v13 = vld [vmem:[%s3058_s30 + $0x3c0] ss:$16 sps:$4 sm:$0xff]   ;;  %v2438_v53 = vld [vmem:[%s3058_s30 + $0xc8] ss:$16 sps:$4 sm:$0xff]  }
  0x8e   : > { %1660 = vmatprep.subr.bf16.mxu1 %v2364_v54  ;;  %v2392_v14 = vld [vmem:[%s3058_s30 + $0x1a4] ss:$16 sps:$4 sm:$0xff]   ;;  %v2396_v16 = vld [vmem:[%s3058_s30 + $0x1a0] ss:$16 sps:$4 sm:$0xff]  }
  0x8f   : > { %v2394_v15 = vld [vmem:[%s3058_s30 + $0x3a4] ss:$16 sps:$4 sm:$0xff]   ;;  %v2397_v17 = vld [vmem:[%s3058_s30 + $0x3a0] ss:$16 sps:$4 sm:$0xff]  }
  0x90   : > { %1620 = vmatpush1.bf16.msra.mxu0 %v2366_v55  ;;  %v2398_v19 = vld [vmem:[%s3058_s30 + $0x184] ss:$16 sps:$4 sm:$0xff]   ;;  %v2402_v22 = vld [vmem:[%s3058_s30 + $0x180] ss:$16 sps:$4 sm:$0xff]   ;;  %v2446_v55 = vld [vmem:[%s3058_s30 + $0xac] ss:$16 sps:$4 sm:$0xff]  }
  0x91   : > { %1661 = vmatpush1.bf16.msra.mxu1 %v2367_v56  ;;  %1621 = vmatprep.subr.bf16.mxu0 %v2368_v57  ;;  %v2400_v20 = vld [vmem:[%s3058_s30 + $0x384] ss:$16 sps:$4 sm:$0xff]   ;;  %v2403_v24 = vld [vmem:[%s3058_s30 + $0x380] ss:$16 sps:$4 sm:$0xff]   ;;  %v2631_v56 = vmov 0  }
  0x92   : > { %1662 = vmatprep.subr.bf16.mxu1 %v2370_v58  ;;  %v2404_v25 = vld [vmem:[%s3058_s30 + $0x164] ss:$16 sps:$4 sm:$0xff]   ;;  %v2408_v28 = vld [vmem:[%s3058_s30 + $0x160] ss:$16 sps:$4 sm:$0xff]   ;;  %v2444_v58 = vld [vmem:[%s3058_s30 + $0xa8] ss:$16 sps:$4 sm:$0xff]  }
  0x93   : > { %v2406_v26 = vld [vmem:[%s3058_s30 + $0x364] ss:$16 sps:$4 sm:$0xff]   ;;  %v2409_v30 = vld [vmem:[%s3058_s30 + $0x360] ss:$16 sps:$4 sm:$0xff]  }
  0x94   : > { %1622 = vmatpush1.bf16.msra.mxu0 %v2372_v59  ;;  %v2410_v31 = vld [vmem:[%s3058_s30 + $0x144] ss:$16 sps:$4 sm:$0xff]   ;;  %v2414_v34 = vld [vmem:[%s3058_s30 + $0x140] ss:$16 sps:$4 sm:$0xff]  }
  0x95   : > { %1663 = vmatpush1.bf16.msra.mxu1 %v2373_v60  ;;  %1623 = vmatprep.subr.bf16.mxu0 %v2374_v61  ;;  %v2412_v32 = vld [vmem:[%s3058_s30 + $0x344] ss:$16 sps:$4 sm:$0xff]   ;;  %v2415_v35 = vld [vmem:[%s3058_s30 + $0x340] ss:$16 sps:$4 sm:$0xff]   ;;  %v2452_v60 = vld [vmem:[%s3058_s30 + $0x8c] ss:$16 sps:$4 sm:$0xff]  }
  0x96   : > { %1664 = vmatprep.subr.bf16.mxu1 %v2376_v62  ;;  %v2416_v36 = vld [vmem:[%s3058_s30 + $0x124] ss:$16 sps:$4 sm:$0xff]   ;;  %v2420_v38 = vld [vmem:[%s3058_s30 + $0x120] ss:$16 sps:$4 sm:$0xff]   ;;  %v2450_v62 = vld [vmem:[%s3058_s30 + $0x88] ss:$16 sps:$4 sm:$0xff]  }
  0x97   : > { %v2418_v37 = vld [vmem:[%s3058_s30 + $0x324] ss:$16 sps:$4 sm:$0xff]   ;;  %v2421_v39 = vld [vmem:[%s3058_s30 + $0x320] ss:$16 sps:$4 sm:$0xff]  }
  0x98   : > { %1624 = vmatpush1.bf16.msra.mxu0 %v2378_v63  ;;  %v2422_v40 = vld [vmem:[%s3058_s30 + $0x104] ss:$16 sps:$4 sm:$0xff]   ;;  %v2426_v42 = vld [vmem:[%s3058_s30 + $0x100] ss:$16 sps:$4 sm:$0xff]  }
  0x99   : > { %1665 = vmatpush1.bf16.msra.mxu1 %v2379_v0  ;;  %1625 = vmatprep.subr.bf16.mxu0 %v2380_v1  ;;  %v2424_v41 = vld [vmem:[%s3058_s30 + $0x304] ss:$16 sps:$4 sm:$0xff]   ;;  %v2427_v44 = vld [vmem:[%s3058_s30 + $0x300] ss:$16 sps:$4 sm:$0xff]   ;;  %v2458_v0 = vld [vmem:[%s3058_s30 + $0x6c] ss:$16 sps:$4 sm:$0xff]  }
  0x9a   : > { %1666 = vmatprep.subr.bf16.mxu1 %v2382_v2  ;;  %v2431_v45 = vld [vmem:[%s3058_s30 + $0x4e4] ss:$16 sps:$4 sm:$0xff]   ;;  %v2429_v48 = vld [vmem:[%s3058_s30 + $0x4e0] ss:$16 sps:$4 sm:$0xff]   ;;  %v2456_v2 = vld [vmem:[%s3058_s30 + $0x68] ss:$16 sps:$4 sm:$0xff]  }
  0x9b   : > { %v2437_v50 = vld [vmem:[%s3058_s30 + $0x4c4] ss:$16 sps:$4 sm:$0xff]   ;;  %v2435_v52 = vld [vmem:[%s3058_s30 + $0x4c0] ss:$16 sps:$4 sm:$0xff]  }
  0x9c   : > { %1626 = vmatpush2.bf16.msra.mxu0 %v2384_v3  ;;  %v2443_v54 = vld [vmem:[%s3058_s30 + $0x4a4] ss:$16 sps:$4 sm:$0xff]   ;;  %v2441_v57 = vld [vmem:[%s3058_s30 + $0x4a0] ss:$16 sps:$4 sm:$0xff]  }
  0x9d   : > { %1667 = vmatpush2.bf16.msra.mxu1 %v2385_v4  ;;  %1627 = vmatprep.subr.bf16.mxu0 %v2386_v8  ;;  %v2449_v59 = vld [vmem:[%s3058_s30 + $0x484] ss:$16 sps:$4 sm:$0xff]   ;;  %v2447_v61 = vld [vmem:[%s3058_s30 + $0x480] ss:$16 sps:$4 sm:$0xff]   ;;  %v2464_v4 = vld [vmem:[%s3058_s30 + $0x4c] ss:$16 sps:$4 sm:$0xff]  }
  0x9e   : > { %1668 = vmatprep.subr.bf16.mxu1 %v2388_v9  ;;  %v2455_v63 = vld [vmem:[%s3058_s30 + $0x464] ss:$16 sps:$4 sm:$0xff]   ;;  %v2453_v1 = vld [vmem:[%s3058_s30 + $0x460] ss:$16 sps:$4 sm:$0xff]   ;;  %v2470_v8 = vld [vmem:[%s3058_s30 + $0x2c] ss:$16 sps:$4 sm:$0xff]   ;;  %v765_v9 = vcombine.high %v3117_v21, %v3117_v21 }
  0x9f   : > { %v2461_v3 = vld [vmem:[%s3058_s30 + $0x444] ss:$16 sps:$4 sm:$0xff]   ;;  %v2459_v5 = vld [vmem:[%s3058_s30 + $0x440] ss:$16 sps:$4 sm:$0xff]  }
  0xa0   : > { %1628 = vmatpush2.bf16.msra.mxu0 %v2390_v10  ;;  %v2467_v7 = vld [vmem:[%s3058_s30 + $0x424] ss:$16 sps:$4 sm:$0xff]   ;;  %v2465_v10 = vld [vmem:[%s3058_s30 + $0x420] ss:$16 sps:$4 sm:$0xff]  }
  0xa1   : > { %1669 = vmatpush2.bf16.msra.mxu1 %v2391_v13  ;;  %1629 = vmatprep.subr.bf16.mxu0 %v2392_v14  ;;  %v2473_v13 = vld [vmem:[%s3058_s30 + $0x404] ss:$16 sps:$4 sm:$0xff]   ;;  %v2476_v14 = vld [vmem:[%s3058_s30 + $0xc] ss:$16 sps:$4 sm:$0xff]  }
  0xa2   : > { %1670 = vmatprep.subr.bf16.mxu1 %v2394_v15  ;;  %v2471_v15 = vld [vmem:[%s3058_s30 + $0x400] ss:$16 sps:$4 sm:$0xff]  }
  0xa4   : > { %1630 = vmatpush2.bf16.msra.mxu0 %v2396_v16  ;;  %v779_v16 = vrot.slane %v765_v9, %v3108_v18  ;;  %v2557_v9 = vld [vmem:[%s3058_s30 + $0x34c] ss:$16 sps:$4 sm:$0xff]  }
  0xa5   : > { %1671 = vmatpush2.bf16.msra.mxu1 %v2397_v17  ;;  %1631 = vmatprep.subr.bf16.mxu0 %v2398_v19  ;;  %v2474_v17 = vld [vmem:[%s3058_s30 + $0x8] ss:$16 sps:$4 sm:$0xff]   ;;  %v2479_v19 = vld [vmem:[%s3058_s30 + $0x1ec] ss:$16 sps:$4 sm:$0xff]  }
  0xa6   : > { %1672 = vmatprep.subr.bf16.mxu1 %v2400_v20  ;;  %v2482_v20 = vld [vmem:[%s3058_s30 + $0x2ec] ss:$16 sps:$4 sm:$0xff]   ;;  %v3191_v21 = vrot.slane %v779_v16, %v3108_v18  ;;  %v2561_v16 = vld [vmem:[%s3058_s30 + $0x328] ss:$16 sps:$4 sm:$0xff]  }
  0xa8   : > { %1632 = vmatpush2.bf16.msra.mxu0 %v2402_v22  ;;  %v2477_v22 = vld [vmem:[%s3058_s30 + $0x1e8] ss:$16 sps:$4 sm:$0xff]  }
  0xa9   : > { %1673 = vmatpush2.bf16.msra.mxu1 %v2403_v24  ;;  %1633 = vmatprep.subr.bf16.mxu0 %v2404_v25  ;;  %v2485_v24 = vld [vmem:[%s3058_s30 + $0x1cc] ss:$16 sps:$4 sm:$0xff]  }
  0xaa   : > { %1674 = vmatprep.subr.bf16.mxu1 %v2406_v26  ;;  %v2488_v25 = vld [vmem:[%s3058_s30 + $0x2cc] ss:$16 sps:$4 sm:$0xff]   ;;  %v2483_v26 = vld [vmem:[%s3058_s30 + $0x1c8] ss:$16 sps:$4 sm:$0xff]  }
  0xac   : > { %1634 = vmatpush2.bf16.msra.mxu0 %v2408_v28  ;;  %v2491_v28 = vld [vmem:[%s3058_s30 + $0x1ac] ss:$16 sps:$4 sm:$0xff]  }
  0xad   : > { %1675 = vmatpush2.bf16.msra.mxu1 %v2409_v30  ;;  %1635 = vmatprep.subr.bf16.mxu0 %v2410_v31  ;;  %v2489_v30 = vld [vmem:[%s3058_s30 + $0x1a8] ss:$16 sps:$4 sm:$0xff]  }
  0xae   : > { %1676 = vmatprep.subr.bf16.mxu1 %v2412_v32  ;;  %v2492_v31 = vld [vmem:[%s3058_s30 + $0x2a8] ss:$16 sps:$4 sm:$0xff]   ;;  %v2497_v32 = vld [vmem:[%s3058_s30 + $0x18c] ss:$16 sps:$4 sm:$0xff]  }
  0xb0   : > { %1636 = vmatpush2.bf16.msra.mxu0 %v2414_v34  ;;  %v2500_v34 = vld [vmem:[%s3058_s30 + $0x28c] ss:$16 sps:$4 sm:$0xff]  }
  0xb1   : > { %1677 = vmatpush2.bf16.msra.mxu1 %v2415_v35  ;;  %1637 = vmatprep.subr.bf16.mxu0 %v2416_v36  ;;  %v2495_v35 = vld [vmem:[%s3058_s30 + $0x188] ss:$16 sps:$4 sm:$0xff]  }
  0xb2   : > { %1678 = vmatprep.subr.bf16.mxu1 %v2418_v37  ;;  %v2498_v36 = vld [vmem:[%s3058_s30 + $0x288] ss:$16 sps:$4 sm:$0xff]   ;;  %v2506_v37 = vld [vmem:[%s3058_s30 + $0x26c] ss:$16 sps:$4 sm:$0xff]  }
  0xb4   : > { %1638 = vmatpush2.bf16.msra.mxu0 %v2420_v38  ;;  %v2501_v38 = vld [vmem:[%s3058_s30 + $0x168] ss:$16 sps:$4 sm:$0xff]  }
  0xb5   : > { %1679 = vmatpush2.bf16.msra.mxu1 %v2421_v39  ;;  %1639 = vmatprep.subr.bf16.mxu0 %v2422_v40  ;;  %v2504_v39 = vld [vmem:[%s3058_s30 + $0x268] ss:$16 sps:$4 sm:$0xff]   ;;  %v2509_v40 = vld [vmem:[%s3058_s30 + $0x14c] ss:$16 sps:$4 sm:$0xff]  }
  0xb6   : > { %1680 = vmatprep.subr.bf16.mxu1 %v2424_v41  ;;  %v2512_v41 = vld [vmem:[%s3058_s30 + $0x24c] ss:$16 sps:$4 sm:$0xff]  }
  0xb8   : > { %1640 = vmatpush2.bf16.msra.mxu0 %v2426_v42  ;;  %v2507_v42 = vld [vmem:[%s3058_s30 + $0x148] ss:$16 sps:$4 sm:$0xff]  }
  0xb9   : > { %1681 = vmatpush2.bf16.msra.mxu1 %v2427_v44  ;;  %1691 = vmatprep.subr.bf16.mxu0 %v2431_v45  ;;  %v2510_v44 = vld [vmem:[%s3058_s30 + $0x248] ss:$16 sps:$4 sm:$0xff]   ;;  %v2515_v45 = vld [vmem:[%s3058_s30 + $0x12c] ss:$16 sps:$4 sm:$0xff]  }
  0xba   : > { %1732 = vmatprep.subr.bf16.mxu1 %v2434_v46  ;;  %v2518_v46 = vld [vmem:[%s3058_s30 + $0x22c] ss:$16 sps:$4 sm:$0xff]  }
  0xbb   : > { %1642 = vmatmul.mubr.bf16.vlgmr.msra.gmra.mxu0 %v3143_v43 }
  0xbc   : > { %1683 = vmatmul.mubr.bf16.vlgmr.msra.gmra.mxu1 %v3150_v47  ;;  %1692 = vmatpush1.bf16.msra.mxu0 %v2429_v48  ;;  %v2513_v48 = vld [vmem:[%s3058_s30 + $0x128] ss:$16 sps:$4 sm:$0xff]  }
  0xbd   : > { %1733 = vmatpush1.bf16.msra.mxu1 %v2432_v49  ;;  %1693 = vmatprep.subr.bf16.mxu0 %v2437_v50  ;;  %v2516_v49 = vld [vmem:[%s3058_s30 + $0x228] ss:$16 sps:$4 sm:$0xff]   ;;  %v2521_v50 = vld [vmem:[%s3058_s30 + $0x10c] ss:$16 sps:$4 sm:$0xff]  }
  0xbe   : > { %1734 = vmatprep.subr.bf16.mxu1 %v2440_v51  ;;  %1723 = vmatprep.mubr.bf16.mxu0 %v2631_v56  ;;  %v2524_v51 = vld [vmem:[%s3058_s30 + $0x20c] ss:$16 sps:$4 sm:$0xff]  }
  0xbf   : > { %1764 = vmatprep.mubr.bf16.mxu1 %v801_v29  ;;  %v2494_v29 = vld [vmem:[%s3058_s30 + $0x2ac] ss:$16 sps:$4 sm:$0xff]  }
  0xc0   : > { %1694 = vmatpush1.bf16.msra.mxu0 %v2435_v52  ;;  %v2519_v52 = vld [vmem:[%s3058_s30 + $0x108] ss:$16 sps:$4 sm:$0xff]  }
  0xc1   : > { %1735 = vmatpush1.bf16.msra.mxu1 %v2438_v53  ;;  %1695 = vmatprep.subr.bf16.mxu0 %v2443_v54  ;;  %v2522_v53 = vld [vmem:[%s3058_s30 + $0x208] ss:$16 sps:$4 sm:$0xff]   ;;  %v2527_v54 = vld [vmem:[%s3058_s30 + $0x3ec] ss:$16 sps:$4 sm:$0xff]  }
  0xc2   : > { %1736 = vmatprep.subr.bf16.mxu1 %v2446_v55  ;;  %v2530_v55 = vld [vmem:[%s3058_s30 + $0x4ec] ss:$16 sps:$4 sm:$0xff]  }
  0xc4   : > { %1696 = vmatpush1.bf16.msra.mxu0 %v2441_v57  ;;  %v2525_v57 = vld [vmem:[%s3058_s30 + $0x3e8] ss:$16 sps:$4 sm:$0xff]  }
  0xc5   : > { %1737 = vmatpush1.bf16.msra.mxu1 %v2444_v58  ;;  %1697 = vmatprep.subr.bf16.mxu0 %v2449_v59  ;;  %v2528_v58 = vld [vmem:[%s3058_s30 + $0x4e8] ss:$16 sps:$4 sm:$0xff]   ;;  %v2533_v59 = vld [vmem:[%s3058_s30 + $0x3cc] ss:$16 sps:$4 sm:$0xff]  }
  0xc6   : > { %1738 = vmatprep.subr.bf16.mxu1 %v2452_v60  ;;  %v2536_v60 = vld [vmem:[%s3058_s30 + $0x4cc] ss:$16 sps:$4 sm:$0xff]  }
  0xc8   : > { %1698 = vmatpush1.bf16.msra.mxu0 %v2447_v61  ;;  %v2531_v61 = vld [vmem:[%s3058_s30 + $0x3c8] ss:$16 sps:$4 sm:$0xff]  }
  0xc9   : > { %1739 = vmatpush1.bf16.msra.mxu1 %v2450_v62  ;;  %1699 = vmatprep.subr.bf16.mxu0 %v2455_v63  ;;  %v2534_v62 = vld [vmem:[%s3058_s30 + $0x4c8] ss:$16 sps:$4 sm:$0xff]   ;;  %v2539_v63 = vld [vmem:[%s3058_s30 + $0x3ac] ss:$16 sps:$4 sm:$0xff]  }
  0xca   : > { %1740 = vmatprep.subr.bf16.mxu1 %v2458_v0  ;;  %v2542_v0 = vld [vmem:[%s3058_s30 + $0x4ac] ss:$16 sps:$4 sm:$0xff]  }
  0xcc   : > { %1700 = vmatpush1.bf16.msra.mxu0 %v2453_v1  ;;  %v2537_v1 = vld [vmem:[%s3058_s30 + $0x3a8] ss:$16 sps:$4 sm:$0xff]  }
  0xcd   : > { %1741 = vmatpush1.bf16.msra.mxu1 %v2456_v2  ;;  %1701 = vmatprep.subr.bf16.mxu0 %v2461_v3  ;;  %v2545_v2 = vld [vmem:[%s3058_s30 + $0x38c] ss:$16 sps:$4 sm:$0xff]  }
  0xce   : > { %1742 = vmatprep.subr.bf16.mxu1 %v2464_v4  ;;  %v2548_v3 = vld [vmem:[%s3058_s30 + $0x48c] ss:$16 sps:$4 sm:$0xff]   ;;  %v2543_v4 = vld [vmem:[%s3058_s30 + $0x388] ss:$16 sps:$4 sm:$0xff]  }
  0xd0   : > { %1702 = vmatpush1.bf16.msra.mxu0 %v2459_v5  ;;  %v2546_v5 = vld [vmem:[%s3058_s30 + $0x488] ss:$16 sps:$4 sm:$0xff]  }
  0xd1   : > { %1743 = vmatpush1.bf16.msra.mxu1 %v2462_v6  ;;  %1703 = vmatprep.subr.bf16.mxu0 %v2467_v7  ;;  %v2554_v6 = vld [vmem:[%s3058_s30 + $0x46c] ss:$16 sps:$4 sm:$0xff]   ;;  %v2549_v7 = vld [vmem:[%s3058_s30 + $0x368] ss:$16 sps:$4 sm:$0xff]  }
  0xd2   : > { %1744 = vmatprep.subr.bf16.mxu1 %v2470_v8  ;;  %v2552_v8 = vld [vmem:[%s3058_s30 + $0x468] ss:$16 sps:$4 sm:$0xff]  }
  0xd4   : > { %1704 = vmatpush1.bf16.msra.mxu0 %v2465_v10  ;;  %v2560_v10 = vld [vmem:[%s3058_s30 + $0x44c] ss:$16 sps:$4 sm:$0xff]  }
  0xd5   : > { %1745 = vmatpush1.bf16.msra.mxu1 %v2468_v11  ;;  %1705 = vmatprep.subr.bf16.mxu0 %v2473_v13  ;;  %v2555_v11 = vld [vmem:[%s3058_s30 + $0x348] ss:$16 sps:$4 sm:$0xff]  }
  0xd6   : > { %1746 = vmatprep.subr.bf16.mxu1 %v2476_v14  ;;  %v2558_v13 = vld [vmem:[%s3058_s30 + $0x448] ss:$16 sps:$4 sm:$0xff]   ;;  %v2563_v14 = vld [vmem:[%s3058_s30 + $0x32c] ss:$16 sps:$4 sm:$0xff]  }
  0xd8   : > { %1706 = vmatpush1.bf16.msra.mxu0 %v2471_v15  ;;  %v2566_v15 = vld [vmem:[%s3058_s30 + $0x42c] ss:$16 sps:$4 sm:$0xff]  }
  0xd9   : > { %1747 = vmatpush1.bf16.msra.mxu1 %v2474_v17  ;;  %1773 = vmatprep.subr.bf16.mxu0 %v2482_v20  ;;  %v2564_v17 = vld [vmem:[%s3058_s30 + $0x428] ss:$16 sps:$4 sm:$0xff]   ;;  %v2572_v20 = vld [vmem:[%s3058_s30 + $0x40c] ss:$16 sps:$4 sm:$0xff]  }
  0xda   : > { %1748 = vmatprep.subr.bf16.mxu1 %v2479_v19  ;;  %v2569_v19 = vld [vmem:[%s3058_s30 + $0x30c] ss:$16 sps:$4 sm:$0xff]  }
  0xdb   : > { %1724 = vmatmul.mubr.bf16.vlgmr.msra.gmra.mxu0 %v3191_v21 }
  0xdc   : > { %1774 = vmatpush1.bf16.msra.mxu0 %v2480_v23  ;;  %1805 = vmatprep.mubr.bf16.mxu0 %v3130_v33  ;;  %v2503_v33 = vld [vmem:[%s3058_s30 + $0x16c] ss:$16 sps:$4 sm:$0xff]   ;;  %v2570_v23 = vld [vmem:[%s3058_s30 + $0x408] ss:$16 sps:$4 sm:$0xff]  }
  0xdd   : > { %1749 = vmatpush2.bf16.msra.mxu1 %v2477_v22  ;;  %1775 = vmatprep.subr.bf16.mxu0 %v2488_v25  ;;  %v2567_v22 = vld [vmem:[%s3058_s30 + $0x308] ss:$16 sps:$4 sm:$0xff]  }
  0xde   : > { %1750 = vmatprep.subr.bf16.mxu1 %v2485_v24 }
  0xe0   : > { %1776 = vmatpush1.bf16.msra.mxu0 %v2486_v27 }
  0xe1   : > { %1751 = vmatpush2.bf16.msra.mxu1 %v2483_v26  ;;  %1777 = vmatprep.subr.bf16.mxu0 %v2494_v29 }
  0xe2   : > { %1752 = vmatprep.subr.bf16.mxu1 %v2491_v28 }
  0xe4   : > { %1778 = vmatpush1.bf16.msra.mxu0 %v2492_v31 }
  0xe5   : > { %1753 = vmatpush2.bf16.msra.mxu1 %v2489_v30  ;;  %1779 = vmatprep.subr.bf16.mxu0 %v2500_v34 }
  0xe6   : > { %1754 = vmatprep.subr.bf16.mxu1 %v2497_v32 }
  0xe8   : > { %1780 = vmatpush1.bf16.msra.mxu0 %v2498_v36 }
  0xe9   : > { %1755 = vmatpush2.bf16.msra.mxu1 %v2495_v35  ;;  %1781 = vmatprep.subr.bf16.mxu0 %v2506_v37 }
  0xea   : > { %1756 = vmatprep.subr.bf16.mxu1 %v2503_v33 }
  0xec   : > { %1782 = vmatpush1.bf16.msra.mxu0 %v2504_v39 }
  0xed   : > { %1757 = vmatpush2.bf16.msra.mxu1 %v2501_v38  ;;  %1783 = vmatprep.subr.bf16.mxu0 %v2512_v41 }
  0xee   : > { %1758 = vmatprep.subr.bf16.mxu1 %v2509_v40 }
  0xf0   : > { %1784 = vmatpush1.bf16.msra.mxu0 %v2510_v44  ;;  %v2632_v44 = vmov 1983009808  }
  0xf1   : > { %1759 = vmatpush2.bf16.msra.mxu1 %v2507_v42  ;;  %1785 = vmatprep.subr.bf16.mxu0 %v2518_v46 }
  0xf2   : > { %1760 = vmatprep.subr.bf16.mxu1 %v2515_v45  ;;  %v1862_v45 = vunpack.c.l.s4 %v2632_v44 }
  0xf4   : > { %1786 = vmatpush1.bf16.msra.mxu0 %v2516_v49  ;;  %v1863_v49 = vunpack.c.0.s8 %v1862_v45 }
  0xf5   : > { %1761 = vmatpush2.bf16.msra.mxu1 %v2513_v48  ;;  %1787 = vmatprep.subr.bf16.mxu0 %v2524_v51 }
  0xf6   : > { %1762 = vmatprep.subr.bf16.mxu1 %v2521_v50 }
  0xf8   : > { %1788 = vmatpush1.bf16.msra.mxu0 %v2522_v53 }
  0xf9   : > { %1763 = vmatpush2.bf16.msra.mxu1 %v2519_v52  ;;  %1789 = vmatprep.subr.bf16.mxu0 %v2527_v54 }
  0xfa   : > { %1814 = vmatprep.subr.bf16.mxu1 %v2530_v55 }
  0xfc   : > { %1765 = vmatmul.mubr.bf16.vlgmr.msra.gmra.mxu1 %v3143_v43  ;;  %1790 = vmatpush2.bf16.msra.mxu0 %v2525_v57  ;;  %v2540_v43 = vld [vmem:[%s3058_s30 + $0x4a8] ss:$16 sps:$4 sm:$0xff]   ;;  %v1866_v57 = vsub.s32 %v1863_v49, %v3100_v12 }
  0xfd   : > { %1815 = vmatpush1.bf16.msra.mxu1 %v2528_v58  ;;  %1791 = vmatprep.subr.bf16.mxu0 %v2533_v59 }
  0xfe   : > { %1816 = vmatprep.subr.bf16.mxu1 %v2536_v60  ;;  %1846 = vmatprep.mubr.bf16.mxu1 %v2631_v56  ;;  %v2551_v56 = vld [vmem:[%s3058_s30 + $0x36c] ss:$16 sps:$4 sm:$0xff]  }
 0x100   : > { %1792 = vmatpush2.bf16.msra.mxu0 %v2531_v61 }
 0x101   : > { %1817 = vmatpush1.bf16.msra.mxu1 %v2534_v62  ;;  %1793 = vmatprep.subr.bf16.mxu0 %v2539_v63 }
 0x102   : > { %1818 = vmatprep.subr.bf16.mxu1 %v2542_v0 }
 0x104   : > { %1794 = vmatpush2.bf16.msra.mxu0 %v2537_v1  ;;  %v603_v1 = vld [vmem:[#allocation2] sm:$0xff] }
 0x105   : > { %1819 = vmatpush1.bf16.msra.mxu1 %v2540_v43  ;;  %1795 = vmatprep.subr.bf16.mxu0 %v2545_v2 }
 0x106   : > { %1820 = vmatprep.subr.bf16.mxu1 %v2548_v3 }
 0x108   : > { %1796 = vmatpush2.bf16.msra.mxu0 %v2543_v4 }
 0x109   : > { %1821 = vmatpush1.bf16.msra.mxu1 %v2546_v5  ;;  %1797 = vmatprep.subr.bf16.mxu0 %v2551_v56 }
 0x10a   : > { %1822 = vmatprep.subr.bf16.mxu1 %v2554_v6 }
 0x10c   : > { %1798 = vmatpush2.bf16.msra.mxu0 %v2549_v7 }
 0x10d   : > { %1823 = vmatpush1.bf16.msra.mxu1 %v2552_v8  ;;  %1799 = vmatprep.subr.bf16.mxu0 %v2557_v9 }
 0x10e   : > { %1824 = vmatprep.subr.bf16.mxu1 %v2560_v10 }
 0x110   : > { %1800 = vmatpush2.bf16.msra.mxu0 %v2555_v11 }
 0x111   : > { %1825 = vmatpush1.bf16.msra.mxu1 %v2558_v13  ;;  %1801 = vmatprep.subr.bf16.mxu0 %v2563_v14 }
 0x112   : > { %1826 = vmatprep.subr.bf16.mxu1 %v2566_v15 }
 0x114   : > { %1802 = vmatpush2.bf16.msra.mxu0 %v2561_v16 }
 0x115   : > { %1827 = vmatpush1.bf16.msra.mxu1 %v2564_v17  ;;  %1803 = vmatprep.subr.bf16.mxu0 %v2569_v19 }
 0x116   : > { %1828 = vmatprep.subr.bf16.mxu1 %v2572_v20 }
 0x118   : > { %1804 = vmatpush2.bf16.msra.mxu0 %v2567_v22 }
 0x119   : > { %1829 = vmatpush1.bf16.msra.mxu1 %v2570_v23 }
 0x11b   : > { %1806 = vmatmul.mubr.bf16.vlgmr.msra.gmra.mxu0 %v3150_v47 }
 0x11c   : > { %1847 = vmatmul.mubr.bf16.vlgmr.msra.gmra.mxu1 %v3191_v21 }
 0x17b   : > { %v1643_v24 = vpop.f32.mrf.mxu0 }
 0x17c   : > { %v1684_v25 = vpop.f32.mrf.mxu1 }
 0x17d   : > { %v1685_v26 = vadd.f32 %v1684_v25, %v1643_v24  ;;  %v1645_v27 = vpop.f32.mrf.mxu0 }
 0x17e   : > { %v1686_v28 = vpop.f32.mrf.mxu1 }
 0x17f   : > { %v1687_v29 = vadd.f32 %v1686_v28, %v1645_v27  ;;  %v1647_v30 = vpop.f32.mrf.mxu0 }
 0x180   : > { %v1688_v31 = vpop.f32.mrf.mxu1 }
 0x181   : > { %v1648_v32 = vpop.f32.mrf.mxu0 }
 0x182   : > { %v1689_v34 = vpop.f32.mrf.mxu1 }
 0x19b   : > { %v1725_v35 = vpop.f32.mrf.mxu0 }
 0x19c   : > { %v1726_v36 = vadd.f32 %v1725_v35, %v1685_v26 }
 0x19d   : > { %v1727_v33 = vpop.f32.mrf.mxu0 }
 0x19e   : > { %v1728_v37 = vadd.f32 %v1727_v33, %v1687_v29 }
 0x19f   : > { %v1729_v38 = vpop.f32.mrf.mxu0 }
 0x1a0   : > { %v1859_v39 = vcombine.low %v1726_v36, %v1728_v37 }
 0x1a1   : > { %v1730_v40 = vpop.f32.mrf.mxu0 }
 0x1a2   : > { %v1867_v63 = vrot.slane %v1859_v39, %v1866_v57 }
 0x1bc   : > { %v1766_v47 = vpop.f32.mrf.mxu1 }
 0x1be   : > { %v1768_v41 = vpop.f32.mrf.mxu1 }
 0x1c0   : > { %v1770_v21 = vpop.f32.mrf.mxu1 }
 0x1c2   : > { %v1771_v42 = vpop.f32.mrf.mxu1 }
 0x1db   : > { %v1807_v46 = vpop.f32.mrf.mxu0 }
 0x1dc   : > { %v1848_v48 = vpop.f32.mrf.mxu1  ;;  %v1808_v50 = vadd.f32 %v1807_v46, %v1766_v47 }
 0x1dd   : > { %v1809_v51 = vpop.f32.mrf.mxu0 }
 0x1de   : > { %v1850_v52 = vpop.f32.mrf.mxu1  ;;  %v1810_v53 = vadd.f32 %v1809_v51, %v1768_v41  ;;  %v1849_v58 = vadd.f32 %v1848_v48, %v1808_v50 }
 0x1df   : > { %v1811_v54 = vpop.f32.mrf.mxu0 }
 0x1e0   : > { %v1852_v55 = vpop.f32.mrf.mxu1  ;;  %v1851_v59 = vadd.f32 %v1850_v52, %v1810_v53 }
 0x1e1   : > { %v1812_v60 = vpop.f32.mrf.mxu0 }
 0x1e2   : > { %v1853_v61 = vpop.f32.mrf.mxu1  ;;  %v1860_v62 = vcombine.low %v1849_v58, %v1851_v59 }
 0x1e4   : > { %v1874_v0 = vrot.slane %v1860_v62, %v1866_v57 }
 0x1e6   : > { %v1875_v43 = vcombine.low %v1867_v63, %v1874_v0  ;;  %1882 = sbr.rel (%p2263_p13) target bundleno = 518 (0x206), region = 63 }
 0x1e8   : > { %v1877_v2 = vadd.f32 %v1875_v43, %v603_v1 }
 0x1ea   : > { %1878 = vst [vmem:[#allocation2] sm:$0xff] %v1877_v2 }
 0x1eb   : > { %v1884_v3 = vld [vmem:[%s585_s12] sm:$0xf]  ;;  %v1888_v4 = vsub.s32 0, %v3100_v12  ;;  %v1892_v5 = vsub.s32 1, %v3100_v12  ;;  %v1896_v56 = vsub.s32 2, %v3100_v12  ;;  %v1900_v6 = vsub.s32 3, %v3100_v12 }
 0x1ed   : > { %v1889_v7 = vrot.slane %v1884_v3, %v1888_v4  ;;  %v1893_v8 = vrot.slane %v1884_v3, %v1892_v5  ;;  %v1897_v9 = vrot.slane %v1884_v3, %v1896_v56  ;;  %v1901_v10 = vrot.slane %v1884_v3, %v1900_v6 }
 0x1ef   : > { %v1902_v11 = vcombine.low %v1889_v7, %v1893_v8  ;;  %v1903_v13 = vcombine.low %v1897_v9, %v1901_v10 }
 0x1f1   : > { %v1910_v14 = vrot.slane %v1902_v11, %v1866_v57  ;;  %v1917_v15 = vrot.slane %v1903_v13, %v1866_v57  ;;  %v1883_v16 = vld [vmem:[#allocation2] sm:$0xff] }
 0x1f3   : > { %v1918_v17 = vcombine.low %v1910_v14, %v1917_v15 }
 0x1f5   : > { %v1920_v19 = vadd.f32 %v1918_v17, %v1883_v16 }
 0x1f7   : > { %v1921_v20 = vmax.f32 %v1920_v19, 0.0 }
 0x1f9   : > { %v1923_v22 = vcombine.high %v1921_v20, %v1921_v20  ;;  %v1930_v23 = vrot.slane %v1921_v20, %v1866_v57 }
 0x1fb   : > { %v1937_v24 = vrot.slane %v1923_v22, %v1866_v57  ;;  %v1938_v25 = vcombine.high %v1930_v23, %v1930_v23 }
 0x1fd   : > { %v1939_v26 = vcombine.high %v1937_v24, %v1937_v24  ;;  %v2264_v27 = vpack.c.bf16 %v1938_v25, %v1930_v23 }
 0x1ff   : > { %v2265_v12 = vpack.c.bf16 %v1939_v26, %v1937_v24  ;;  %v1960_v28 = vrot.slane %v2264_v27, %v3108_v18 }
 0x201   : > { %v1967_v29 = vrot.slane %v2265_v12, %v3108_v18 }
 0x203   : > { %v1968_v30 = vcombine.low %v1960_v28, %v1967_v29 }
 0x205   : > { %2266 = vst.sshfl [vmem:[%s594_s15] sm:$0x55 pattern:$0x73625140] %v1968_v30 }
 0x206 PF: > { %s13_s18 = sadd.s32 1, %s2627_s18   ;;  %s3304_s12 = smov %s2607_s13 }
 0x207   : > { %p10_p0 = scmp.ge.s32.totalorder %s13_s18, 12   ;;  %s3305_s13 = smov %s2704_s25 }
 0x208   : > { %s3306_s14 = smov %s2619_s16  ;;  %s3307_s15 = smov %s2623_s17 }
 0x209   : > { %s3308_s16 = smov %s3311_s19  ;;  %s3309_s17 = smov %s3315_s20 }
 0x20a   :  { %12 = sbr.rel (!%p10_p0) target bundleno = 4 (0x4), region = 104 }

// kernel: dqn_forward.7
= control target key start
LH: loop header
LB: loop body
LE: loop exit
PB: predicated region body
PF: predicated region fallthrough
CT: control target
= control target key end

     0   :  { %vm19_vm0 = vcmask 523264   ;;  %v1336_v1 = vmov 0.0   ;;  %vm1337_vm1 = vmmov 0   ;;  %vm32_vm2 = vcmask 517120   ;;  %s1786_s1 = inlined_call_operand.vmem [shape: bf16[576,64], index: 1, kind: input, shape index: {}]   ;;  %s1787_s0 = inlined_call_operand.vmem [shape: bf16[98,576], index: 0, kind: input, shape index: {}]   ;;  %s1788_s2 = inlined_call_operand.vmem [shape: f32[1,64], index: 2, kind: input, shape index: {}]   ;;  %s1789_s3 = inlined_call_operand.vmem [shape: bf16[98,64], index: 3, kind: output, shape index: {}]  }
   0x1   :  { %v1253_v0 = vld [vmem:[%s1786_s1 + $0x78] sm:$0xff]   ;;  %20 = vst.msk [vmem:[#allocation2] sm:$0xff] %vm19_vm0, %v1336_v1  ;;  %21 = vst.msk [vmem:[#allocation2 + $0x8] sm:$0xff] %vm19_vm0, %v1336_v1  ;;  %v1257_v5 = vld [vmem:[%s1786_s1 + $0x70] sm:$0xff]   ;;  %vm956_vm3 = vcmask 519168   ;;  %vm969_vm4 = vcmask 516096  }
   0x2   :  { %22 = vst.msk [vmem:[#allocation2 + $0x10] sm:$0xff] %vm19_vm0, %v1336_v1  ;;  %23 = vst.msk [vmem:[#allocation2 + $0x18] sm:$0xff] %vm19_vm0, %v1336_v1  ;;  %v1254_v2 = vld [vmem:[%s1786_s1 + $0xf8] sm:$0xff]   ;;  %1080 = vmatprep.subr.bf16.mxu0 %v1253_v0  ;;  %v1258_v6 = vld [vmem:[%s1786_s1 + $0xf0] sm:$0xff]  }
   0x3   :  { %24 = vst.msk [vmem:[#allocation2 + $0x20] sm:$0xff] %vm19_vm0, %v1336_v1  ;;  %25 = vst.msk [vmem:[#allocation2 + $0x28] sm:$0xff] %vm19_vm0, %v1336_v1  ;;  %v1255_v3 = vld [vmem:[%s1786_s1 + $0x38] sm:$0xff]   ;;  %1138 = vmatprep.subr.bf16.mxu1 %v1254_v2  ;;  %v1259_v7 = vld [vmem:[%s1786_s1 + $0x30] sm:$0xff]  }
   0x4   :  { %26 = vst.msk [vmem:[#allocation2 + $0x30] sm:$0xff] %vm19_vm0, %v1336_v1  ;;  %27 = vst.msk [vmem:[#allocation2 + $0x38] sm:$0xff] %vm19_vm0, %v1336_v1  ;;  %v1256_v4 = vld [vmem:[%s1786_s1 + $0xb8] sm:$0xff]   ;;  %1081 = vmatpush3.bf16.msra.mxu0 %v1255_v3  ;;  %v1260_v8 = vld [vmem:[%s1786_s1 + $0xb0] sm:$0xff]  }
   0x5   :  { %28 = vst.msk [vmem:[#allocation2 + $0x40] sm:$0xff] %vm19_vm0, %v1336_v1  ;;  %29 = vst.msk [vmem:[#allocation2 + $0x48] sm:$0xff] %vm19_vm0, %v1336_v1  ;;  %1139 = vmatpush3.bf16.msra.mxu1 %v1256_v4  ;;  %1082 = vmatprep.subr.bf16.mxu0 %v1257_v5  ;;  %v1261_v9 = vld [vmem:[%s1786_s1 + $0x68] sm:$0xff]   ;;  %v1265_v13 = vld [vmem:[%s1786_s1 + $0x60] sm:$0xff]  }
   0x6   :  { %30 = vst.msk [vmem:[#allocation2 + $0x50] sm:$0xff] %vm19_vm0, %v1336_v1  ;;  %31 = vst.msk [vmem:[#allocation2 + $0x58] sm:$0xff] %vm19_vm0, %v1336_v1  ;;  %1140 = vmatprep.subr.bf16.mxu1 %v1258_v6  ;;  %v1262_v10 = vld [vmem:[%s1786_s1 + $0xe8] sm:$0xff]   ;;  %v1266_v14 = vld [vmem:[%s1786_s1 + $0xe0] sm:$0xff]  }
   0x7   :  { %v1263_v11 = vld [vmem:[%s1786_s1 + $0x28] sm:$0xff]   ;;  %v1267_v15 = vld [vmem:[%s1786_s1 + $0x20] sm:$0xff]   ;;  %v1269_v17 = vld [vmem:[%s1786_s1 + $0x58] sm:$0xff]   ;;  %33 = vst.msk [vmem:[#allocation2 + $0x60] sm:$0x3] %vm32_vm2, %v1336_v1 }
   0x8   :  { %1083 = vmatpush3.bf16.msra.mxu0 %v1259_v7  ;;  %v1264_v12 = vld [vmem:[%s1786_s1 + $0xa8] sm:$0xff]   ;;  %v1268_v16 = vld [vmem:[%s1786_s1 + $0xa0] sm:$0xff]   ;;  %v1270_v18 = vld [vmem:[%s1786_s1 + $0xd8] sm:$0xff]  }
   0x9   :  { %1141 = vmatpush3.bf16.msra.mxu1 %v1260_v8  ;;  %1084 = vmatprep.subr.bf16.mxu0 %v1261_v9  ;;  %v1271_v19 = vld [vmem:[%s1786_s1 + $0x18] sm:$0xff]   ;;  %v1273_v21 = vld [vmem:[%s1786_s1 + $0x50] sm:$0xff]   ;;  %v1277_v25 = vld [vmem:[%s1786_s1 + $0x48] sm:$0xff]  }
   0xa   :  { %1142 = vmatprep.subr.bf16.mxu1 %v1262_v10  ;;  %v1272_v20 = vld [vmem:[%s1786_s1 + $0x98] sm:$0xff]   ;;  %v1274_v22 = vld [vmem:[%s1786_s1 + $0xd0] sm:$0xff]   ;;  %v1278_v26 = vld [vmem:[%s1786_s1 + $0xc8] sm:$0xff]  }
   0xb   :  { %v1275_v23 = vld [vmem:[%s1786_s1 + $0x10] sm:$0xff]   ;;  %v1279_v27 = vld [vmem:[%s1786_s1 + $0x8] sm:$0xff]   ;;  %v1281_v29 = vld [vmem:[%s1786_s1 + $0x40] sm:$0xff]  }
   0xc   :  { %1085 = vmatpush3.bf16.msra.mxu0 %v1263_v11  ;;  %v1276_v24 = vld [vmem:[%s1786_s1 + $0x90] sm:$0xff]   ;;  %v1280_v28 = vld [vmem:[%s1786_s1 + $0x88] sm:$0xff]   ;;  %v1282_v30 = vld [vmem:[%s1786_s1 + $0xc0] sm:$0xff]  }
   0xd   :  { %1143 = vmatpush3.bf16.msra.mxu1 %v1264_v12  ;;  %1086 = vmatprep.subr.bf16.mxu0 %v1265_v13  ;;  %v1283_v31 = vld [vmem:[%s1786_s1] sm:$0xff]   ;;  %v1288_v35 = vld [vmem:[%s1787_s0 + $0x8] ss:$20 sps:$4 sm:$0xff]   ;;  %v1302_v43 = vld [vmem:[%s1786_s1 + $0x110] sm:$0xff]  }
   0xe   :  { %1144 = vmatprep.subr.bf16.mxu1 %v1266_v14  ;;  %v1284_v32 = vld [vmem:[%s1786_s1 + $0x80] sm:$0xff]   ;;  %v1291_v37 = vld [vmem:[%s1786_s1 + $0x118] sm:$0xff]   ;;  %v1294_v39 = vld [vmem:[%s1787_s0 + $0x34] ss:$20 sps:$4 sm:$0xff]  }
   0xf   :  { %v1285_v33 = vld [vmem:[%s1787_s0] ss:$20 sps:$4 sm:$0xff]   ;;  %v1287_v34 = vld [vmem:[%s1787_s0 + $0x4] ss:$20 sps:$4 sm:$0xff]   ;;  %v1296_v40 = vld [vmem:[%s1787_s0 + $0x28] ss:$20 sps:$4 sm:$0xff]  }
  0x10   :  { %1087 = vmatpush3.bf16.msra.mxu0 %v1267_v15  ;;  %v1290_v36 = vld [vmem:[%s1787_s0 + $0xc] ss:$20 sps:$4 sm:$0xff]   ;;  %595 = vmatprep.mubr.bf16.mxu0 %v1287_v34  ;;  %v1297_v41 = vld [vmem:[%s1787_s0 + $0x30] ss:$20 sps:$4 sm:$0xff]   ;;  %v1298_v42 = vld [vmem:[%s1787_s0 + $0x54] ss:$20 sps:$4 sm:$0xff]  }
  0x11   :  { %1145 = vmatpush3.bf16.msra.mxu1 %v1268_v16  ;;  %1088 = vmatprep.subr.bf16.mxu0 %v1269_v17  ;;  %v1292_v38 = vld [vmem:[%s1787_s0 + $0x2c] ss:$20 sps:$4 sm:$0xff]   ;;  %v1300_v44 = vld [vmem:[%s1787_s0 + $0x5c] ss:$20 sps:$4 sm:$0xff]   ;;  %v1307_v49 = vld [vmem:[%s1787_s0 + $0x84] ss:$20 sps:$4 sm:$0xff]  }
  0x12   :  { %1146 = vmatprep.subr.bf16.mxu1 %v1270_v18  ;;  %683 = vmatprep.mubr.bf16.mxu1 %v1290_v36  ;;  %v1311_v45 = vld [vmem:[%s1786_s1 + $0x108] sm:$0xff]   ;;  %v1303_v46 = vld [vmem:[%s1787_s0 + $0x50] ss:$20 sps:$4 sm:$0xff]   ;;  %v1310_v52 = vld [vmem:[%s1787_s0 + $0x80] ss:$20 sps:$4 sm:$0xff]  }
  0x13   :  { %v1304_v47 = vld [vmem:[%s1787_s0 + $0x58] ss:$20 sps:$4 sm:$0xff]   ;;  %v1305_v48 = vld [vmem:[%s1787_s0 + $0x7c] ss:$20 sps:$4 sm:$0xff]   ;;  %v1324_v50 = vld [vmem:[%s1786_s1 + $0x100] sm:$0xff]  }
  0x14   :  { %1089 = vmatpush3.bf16.msra.mxu0 %v1271_v19  ;;  %v1309_v51 = vld [vmem:[%s1787_s0 + $0x78] ss:$20 sps:$4 sm:$0xff]   ;;  %v1316_v55 = vld [vmem:[%s1787_s0 + $0xa0] ss:$20 sps:$4 sm:$0xff]   ;;  %v1317_v56 = vld [vmem:[%s1787_s0 + $0xa8] ss:$20 sps:$4 sm:$0xff]  }
  0x15   :  { %1147 = vmatpush3.bf16.msra.mxu1 %v1272_v20  ;;  %1090 = vmatprep.subr.bf16.mxu0 %v1273_v21  ;;  %v1312_v53 = vld [vmem:[%s1787_s0 + $0xa4] ss:$20 sps:$4 sm:$0xff]   ;;  %v1314_v54 = vld [vmem:[%s1787_s0 + $0xac] ss:$20 sps:$4 sm:$0xff]   ;;  %v1320_v58 = vld [vmem:[%s1787_s0 + $0xd4] ss:$20 sps:$4 sm:$0xff]  }
  0x16   :  { %1148 = vmatprep.subr.bf16.mxu1 %v1274_v22  ;;  %v1318_v57 = vld [vmem:[%s1787_s0 + $0xcc] ss:$20 sps:$4 sm:$0xff]   ;;  %v70_v59 = vld [vmem:[%s1787_s0 + $0xf0] sm:$0x11]  ;;  %v71_v60 = vld [vmem:[%s1787_s0 + $0xf8] sm:$0x11] }
  0x17   :  { %v1322_v61 = vld [vmem:[%s1787_s0 + $0xc8] ss:$20 sps:$4 sm:$0xff]   ;;  %v1323_v62 = vld [vmem:[%s1787_s0 + $0xd0] ss:$20 sps:$4 sm:$0xff]   ;;  %v1006_v63 = vcombine.high %v70_v59, %v70_v59  ;;  %v1008_v0 = vcombine.high %v71_v60, %v71_v60  ;;  %v1005_v2 = vcombine.low %v70_v59, %v70_v59  ;;  %v1007_v3 = vcombine.low %v71_v60, %v71_v60  ;;  %v1331_v6 = vld [vmem:[%s1787_s0 + $0x38] ss:$20 sps:$4 sm:$0xff]  }
  0x18   :  { %1091 = vmatpush3.bf16.msra.mxu0 %v1275_v23  ;;  %v1329_v4 = vld [vmem:[%s1787_s0 + $0x10] ss:$20 sps:$4 sm:$0xff]   ;;  %v1332_v7 = vld [vmem:[%s1787_s0 + $0xd8] ss:$20 sps:$4 sm:$0xff]   ;;  %v1333_v8 = vld [vmem:[%s1787_s0 + $0x60] ss:$20 sps:$4 sm:$0xff]  }
  0x19   :  { %1149 = vmatpush3.bf16.msra.mxu1 %v1276_v24  ;;  %1092 = vmatprep.subr.bf16.mxu0 %v1277_v25  ;;  %v1330_v5 = vld [vmem:[%s1787_s0 + $0xb0] ss:$20 sps:$4 sm:$0xff]   ;;  %v1334_v9 = vld [vmem:[%s1787_s0 + $0x100] ss:$0 sps:$4 sm:$0x11]  }
  0x1a   :  { %1150 = vmatprep.subr.bf16.mxu1 %v1278_v26  ;;  %v1335_v10 = vld [vmem:[%s1787_s0 + $0x88] ss:$20 sps:$4 sm:$0xff]  }
  0x1c   :  { %1093 = vmatpush3.bf16.msra.mxu0 %v1279_v27 }
  0x1d   :  { %1151 = vmatpush3.bf16.msra.mxu1 %v1280_v28  ;;  %1094 = vmatprep.subr.bf16.mxu0 %v1281_v29 }
  0x1e   :  { %1152 = vmatprep.subr.bf16.mxu1 %v1282_v30 }
  0x20   :  { %1095 = vmatpush3.bf16.msra.mxu0 %v1283_v31 }
  0x21   :  { %1153 = vmatpush3.bf16.msra.mxu1 %v1284_v32  ;;  %1207 = vmatprep.subr.bf16.mxu0 %v1336_v1 }
  0x22   :  { %1243 = vmatprep.subr.bf16.mxu1 %v1336_v1 }
  0x23   :  { %596 = vmatmul.mubr.bf16.vlgmr.msra.gmra.mxu0 %v1285_v33 }
  0x24   :  { %684 = vmatmul.mubr.bf16.vlgmr.msra.gmra.mxu1 %v1288_v35  ;;  %1208 = vmatpush3.bf16.msra.mxu0 %v1291_v37 }
  0x25   :  { %603 = vmatprep.mubr.bf16.mxu0 %v1292_v38  ;;  %1247 = vmatpush3.bf16.msra.mxu1 %v1291_v37 }
  0x26   :  { %691 = vmatprep.mubr.bf16.mxu1 %v1294_v39  ;;  %1209 = vmatprep.subr.bf16.mxu0 %v1336_v1 }
  0x27   :  { %1244 = vmatprep.subr.bf16.mxu1 %v1336_v1 }
  0x28   :  { %1210 = vmatpush3.bf16.msra.mxu0 %v1302_v43 }
  0x29   :  { %1248 = vmatpush3.bf16.msra.mxu1 %v1302_v43  ;;  %1211 = vmatprep.subr.bf16.mxu0 %v1336_v1 }
  0x2a   :  { %1245 = vmatprep.subr.bf16.mxu1 %v1336_v1 }
  0x2b   :  { %604 = vmatmul.mubr.bf16.gmra.mxu0 %v1296_v40 }
  0x2c   :  { %692 = vmatmul.mubr.bf16.gmra.mxu1 %v1297_v41  ;;  %611 = vmatprep.mubr.bf16.mxu0 %v1298_v42 }
  0x2d   :  { %699 = vmatprep.mubr.bf16.mxu1 %v1300_v44  ;;  %1212 = vmatpush3.bf16.msra.mxu0 %v1311_v45 }
  0x2e   :  { %1249 = vmatpush3.bf16.msra.mxu1 %v1311_v45  ;;  %1213 = vmatprep.subr.bf16.mxu0 %v1336_v1 }
  0x2f   :  { %1246 = vmatprep.subr.bf16.mxu1 %v1336_v1 }
  0x31   :  { %1214 = vmatpush3.bf16.msra.mxu0 %v1324_v50 }
  0x32   :  { %1250 = vmatpush3.bf16.msra.mxu1 %v1324_v50 }
  0x33   :  { %612 = vmatmul.mubr.bf16.gmra.mxu0 %v1303_v46 }
  0x34   :  { %700 = vmatmul.mubr.bf16.gmra.mxu1 %v1304_v47  ;;  %619 = vmatprep.mubr.bf16.mxu0 %v1305_v48 }
  0x35   :  { %707 = vmatprep.mubr.bf16.mxu1 %v1307_v49 }
  0x3b   :  { %620 = vmatmul.mubr.bf16.gmra.mxu0 %v1309_v51 }
  0x3c   :  { %708 = vmatmul.mubr.bf16.gmra.mxu1 %v1310_v52  ;;  %627 = vmatprep.mubr.bf16.mxu0 %v1312_v53 }
  0x3d   :  { %715 = vmatprep.mubr.bf16.mxu1 %v1314_v54 }
  0x43   :  { %628 = vmatmul.mubr.bf16.gmra.mxu0 %v1316_v55 }
  0x44   :  { %716 = vmatmul.mubr.bf16.gmra.mxu1 %v1317_v56  ;;  %635 = vmatprep.mubr.bf16.mxu0 %v1318_v57 }
  0x45   :  { %723 = vmatprep.mubr.bf16.mxu1 %v1320_v58 }
  0x4b   :  { %636 = vmatmul.mubr.bf16.gmra.mxu0 %v1322_v61 }
  0x4c   :  { %724 = vmatmul.mubr.bf16.gmra.mxu1 %v1323_v62  ;;  %643 = vmatprep.mubr.bf16.mxu0 %v1006_v63 }
  0x4d   :  { %731 = vmatprep.mubr.bf16.mxu1 %v1008_v0 }
  0x53   :  { %644 = vmatmul.mubr.bf16.gmra.mxu0 %v1005_v2 }
  0x54   :  { %732 = vmatmul.mubr.bf16.gmra.mxu1 %v1007_v3  ;;  %1215 = vmatprep.mubr.msk.bf16.mxu0 %vm1337_vm1, %v1336_v1 }
  0x55   :  { %1231 = vmatprep.mubr.msk.bf16.mxu1 %vm1337_vm1, %v1336_v1 }
  0x5b   :  { %1216 = vmatmul.mubr.msk.bf16.vlgmr.msra.gmra.mxu0 %vm19_vm0, %v1329_v4 }
  0x5c   :  { %1232 = vmatmul.mubr.msk.bf16.vlgmr.msra.gmra.mxu1 %vm19_vm0, %v1330_v5  ;;  %1219 = vmatprep.mubr.msk.bf16.mxu0 %vm1337_vm1, %v1336_v1 }
  0x5d   :  { %1235 = vmatprep.mubr.msk.bf16.mxu1 %vm1337_vm1, %v1336_v1 }
  0x63   :  { %1220 = vmatmul.mubr.msk.bf16.gmra.mxu0 %vm19_vm0, %v1331_v6 }
  0x64   :  { %1236 = vmatmul.mubr.msk.bf16.gmra.mxu1 %vm19_vm0, %v1332_v7  ;;  %1223 = vmatprep.mubr.msk.bf16.mxu0 %vm1337_vm1, %v1336_v1 }
  0x65   :  { %1239 = vmatprep.mubr.msk.bf16.mxu1 %vm1337_vm1, %v1336_v1 }
  0x6b   :  { %1224 = vmatmul.mubr.msk.bf16.gmra.mxu0 %vm19_vm0, %v1333_v8 }
  0x6c   :  { %1240 = vmatmul.mubr.msk.bf16.gmra.mxu1 %vm19_vm0, %v1334_v9  ;;  %1227 = vmatprep.mubr.msk.bf16.mxu0 %vm1337_vm1, %v1336_v1 }
  0x73   :  { %1228 = vmatmul.mubr.msk.bf16.gmra.mxu0 %vm19_vm0, %v1335_v10 }
  0xe3   :  { %v1096_v11 = vpop.f32.mrf.mxu0 }
  0xe4   :  { %v1154_v12 = vpop.f32.mrf.mxu1 }
  0xe5   :  { %v1097_v13 = vpop.f32.mrf.mxu0 }
  0xe6   :  { %v1155_v14 = vpop.f32.mrf.mxu1  ;;  %v1098_v61 = vadd.f32 %v1097_v13, %v1096_v11 }
  0xe7   :  { %v1099_v15 = vpop.f32.mrf.mxu0  ;;  %v1156_v62 = vadd.f32 %v1155_v14, %v1154_v12 }
  0xe8   :  { %v1157_v16 = vpop.f32.mrf.mxu1 }
  0xe9   :  { %v1100_v17 = vpop.f32.mrf.mxu0  ;;  %v686_v9 = vadd.f32 %v1156_v62, %v1098_v61  ;;  %v83_v62 = vld [vmem:[#allocation2 + $0x50] sm:$0xff] }
  0xea   :  { %v1158_v18 = vpop.f32.mrf.mxu1  ;;  %v1101_v6 = vadd.f32 %v1100_v17, %v1099_v15 }
  0xeb   :  { %v1620_v19 = vpop.f32.mrf.mxu0  ;;  %v1159_v7 = vadd.f32 %v1158_v18, %v1157_v16 }
  0xec   :  { %v1622_v20 = vpop.f32.mrf.mxu1 }
  0xed   :  { %v1624_v21 = vpop.f32.mrf.mxu0  ;;  %v689_v17 = vadd.f32 %v1159_v7, %v1101_v6 }
  0xee   :  { %v1626_v22 = vpop.f32.mrf.mxu1  ;;  %v1104_v14 = vadd.f32 %v1624_v21, %v1620_v19 }
  0xef   :  { %v1628_v23 = vpop.f32.mrf.mxu0 }
  0xf0   :  { %v1630_v24 = vpop.f32.mrf.mxu1 }
  0xf1   :  { %v1632_v1 = vpop.f32.mrf.mxu0 }
  0xf2   :  { %v1634_v25 = vpop.f32.mrf.mxu1 }
  0xf3   :  { %v1636_v26 = vpop.f32.mrf.mxu0 }
  0xf4   :  { %v1638_v27 = vpop.f32.mrf.mxu1 }
  0xf5   :  { %v1640_v28 = vpop.f32.mrf.mxu0 }
  0xf6   :  { %v1642_v29 = vpop.f32.mrf.mxu1 }
  0xf7   :  { %v1644_v30 = vpop.f32.mrf.mxu0 }
  0xf8   :  { %v1646_v31 = vpop.f32.mrf.mxu1 }
  0xf9   :  { %v1648_v32 = vpop.f32.mrf.mxu0 }
  0xfa   :  { %v1650_v33 = vpop.f32.mrf.mxu1 }
  0xfb   :  { %v1652_v34 = vpop.f32.mrf.mxu0 }
  0xfc   :  { %v1654_v35 = vpop.f32.mrf.mxu1 }
  0xfd   :  { %1790 = vst [vmem:[#allocation3_spill] sm:$0xff] %v1654_v35  ;;  %v1656_v36 = vpop.f32.mrf.mxu0  ;;  %v81_v35 = vld [vmem:[#allocation2 + $0x40] sm:$0xff] }
  0xfe   :  { %v1658_v37 = vpop.f32.mrf.mxu1 }
  0xff   :  { %1791 = vst [vmem:[#allocation4_spill] sm:$0xff] %v1658_v37  ;;  %v1660_v38 = vpop.f32.mrf.mxu0 }
 0x100   :  { %1792 = vst [vmem:[#allocation5_spill] sm:$0xff] %v1660_v38  ;;  %v1662_v39 = vpop.f32.mrf.mxu1 }
 0x101   :  { %1793 = vst [vmem:[#allocation6_spill] sm:$0xff] %v1662_v39  ;;  %v1664_v40 = vpop.f32.mrf.mxu0  ;;  %v73_v39 = vld [vmem:[#allocation2] sm:$0xff] }
 0x102   :  { %1794 = vst [vmem:[#allocation7_spill] sm:$0xff] %v1664_v40  ;;  %v1666_v41 = vpop.f32.mrf.mxu1 }
 0x103   :  { %1795 = vst [vmem:[#allocation8_spill] sm:$0xff] %v1666_v41  ;;  %v1120_v42 = vpop.f32.mrf.mxu0 }
 0x104   :  { %v1178_v43 = vpop.f32.mrf.mxu1 }
 0x105   :  { %v1121_v44 = vpop.f32.mrf.mxu0 }
 0x106   :  { %v1179_v45 = vpop.f32.mrf.mxu1  ;;  %v1122_v0 = vadd.f32 %v1121_v44, %v1120_v42  ;;  %v1162_v42 = vadd.f32 %v1626_v22, %v1622_v20  ;;  %v1107_v20 = vadd.f32 %v1632_v1, %v1628_v23  ;;  %v1165_v22 = vadd.f32 %v1634_v25, %v1630_v24  ;;  %v1694_v1 = vld [vmem:[%s1788_s2] ss:$0 sm:$0xff] }
 0x107   :  { %v1123_v46 = vpop.f32.mrf.mxu0  ;;  %v1180_v2 = vadd.f32 %v1179_v45, %v1178_v43  ;;  %v74_v45 = vld [vmem:[#allocation2 + $0x8] sm:$0xff]  ;;  %v1110_v23 = vadd.f32 %v1640_v28, %v1636_v26  ;;  %v1168_v24 = vadd.f32 %v1642_v29, %v1638_v27  ;;  %v76_v29 = vld [vmem:[#allocation2 + $0x18] sm:$0xff] }
 0x108   :  { %v1181_v47 = vpop.f32.mrf.mxu1 }
 0x109   :  { %v1124_v48 = vpop.f32.mrf.mxu0  ;;  %v718_v38 = vadd.f32 %v1180_v2, %v1122_v0 }
 0x10a   :  { %v1182_v49 = vpop.f32.mrf.mxu1  ;;  %v1125_v10 = vadd.f32 %v1124_v48, %v1123_v46 }
 0x10b   :  { %v1126_v50 = vpop.f32.mrf.mxu0  ;;  %v1183_v41 = vadd.f32 %v1182_v49, %v1181_v47 }
 0x10c   :  { %v1184_v51 = vpop.f32.mrf.mxu1 }
 0x10d   :  { %v1127_v52 = vpop.f32.mrf.mxu0  ;;  %v721_v47 = vadd.f32 %v1183_v41, %v1125_v10 }
 0x10e   :  { %v1185_v53 = vpop.f32.mrf.mxu1  ;;  %v1128_v18 = vadd.f32 %v1127_v52, %v1126_v50 }
 0x10f   :  { %v1129_v54 = vpop.f32.mrf.mxu0  ;;  %v1186_v43 = vadd.f32 %v1185_v53, %v1184_v51  ;;  %v75_v51 = vld [vmem:[#allocation2 + $0x10] sm:$0xff] }
 0x110   :  { %v1187_v55 = vpop.f32.mrf.mxu1 }
 0x111   :  { %v1130_v56 = vpop.f32.mrf.mxu0  ;;  %v726_v53 = vadd.f32 %v1186_v43, %v1128_v18 }
 0x112   :  { %v1188_v57 = vpop.f32.mrf.mxu1  ;;  %v1131_v49 = vadd.f32 %v1130_v56, %v1129_v54 }
 0x113   :  { %v1668_v58 = vpop.f32.mrf.mxu0  ;;  %v1189_v41 = vadd.f32 %v1188_v57, %v1187_v55  ;;  %v697_v57 = vadd.f32 %v1165_v22, %v1107_v20 }
 0x114   :  { %v1670_v59 = vpop.f32.mrf.mxu1 }
 0x115   :  { %v1672_v60 = vpop.f32.mrf.mxu0 }
 0x116   :  { %v1674_v63 = vpop.f32.mrf.mxu1  ;;  %v1134_v2 = vadd.f32 %v1672_v60, %v1668_v58 }
 0x117   :  { %v1135_v3 = vpop.f32.mrf.mxu0  ;;  %v1192_v26 = vadd.f32 %v1674_v63, %v1670_v59  ;;  %v702_v59 = vadd.f32 %v1168_v24, %v1110_v23  ;;  %v1113_v63 = vadd.f32 %v1648_v32, %v1644_v30  ;;  %v85_v32 = vld [vmem:[#allocation2 + $0x60] sm:$0x3] }
 0x118   :  { %v1193_v4 = vpop.f32.mrf.mxu1 }
 0x119   :  { %v1136_v5 = vpop.f32.mrf.mxu0  ;;  %v729_v4 = vadd.f32 %v1189_v41, %v1131_v49  ;;  %v734_v43 = vadd.f32 %v1192_v26, %v1134_v2  ;;  %v78_v41 = vld [vmem:[#allocation2 + $0x28] sm:$0xff]  ;;  %v1801_v2 = vld [vmem:[#allocation8_spill] sm:$0xff] }
 0x11a   :  { %v1194_v8 = vpop.f32.mrf.mxu1 }
 0x11b   :  { %v773_v40 = vpop.f32.mrf.mxu0  ;;  %v84_v8 = vld [vmem:[#allocation2 + $0x58] sm:$0xff] }
 0x11c   :  { %v774_v37 = vadd.f32 %v773_v40, %v686_v9  ;;  %v805_v11 = vpop.f32.mrf.mxu1 }
 0x11d   :  { %v806_v12 = vadd.f32 %v805_v11, %v718_v38  ;;  %v1217_v13 = vpop.f32.mrf.mxu0  ;;  %v82_v38 = vld [vmem:[#allocation2 + $0x48] sm:$0xff]  ;;  %v1171_v11 = vadd.f32 %v1650_v33, %v1646_v31 }
 0x11e   :  { %v827_v15 = vadd.f32 %v774_v37, %v73_v39  ;;  %v1233_v16 = vpop.f32.mrf.mxu1  ;;  %v694_v39 = vadd.f32 %v1162_v42, %v1104_v14 }
 0x11f   :  { %v835_v44 = vadd.f32 %v806_v12, %v81_v35  ;;  %v776_v46 = vpop.f32.mrf.mxu0  ;;  %v705_v22 = vadd.f32 %v1171_v11, %v1113_v63 }
 0x120   :  { %840 = vst.msk [vmem:[#allocation2] sm:$0xff] %vm19_vm0, %v827_v15  ;;  %v777_v40 = vadd.f32 %v776_v46, %v689_v17  ;;  %v808_v48 = vpop.f32.mrf.mxu1  ;;  %v77_v17 = vld [vmem:[#allocation2 + $0x20] sm:$0xff] }
 0x121   :  { %848 = vst.msk [vmem:[#allocation2 + $0x40] sm:$0xff] %vm19_vm0, %v835_v44  ;;  %v809_v19 = vadd.f32 %v808_v48, %v721_v47  ;;  %v1218_v21 = vpop.f32.mrf.mxu0  ;;  %v1116_v44 = vadd.f32 %v1656_v36, %v1652_v34  ;;  %v1796_v47 = vld [vmem:[#allocation3_spill] sm:$0xff] }
 0x122   :  { %v828_v37 = vadd.f32 %v777_v40, %v74_v45  ;;  %v1234_v35 = vpop.f32.mrf.mxu1  ;;  %v1797_v40 = vld [vmem:[#allocation4_spill] sm:$0xff] }
 0x123   :  { %v836_v50 = vadd.f32 %v809_v19, %v82_v38  ;;  %v781_v52 = vpop.f32.mrf.mxu0  ;;  %v1174_v38 = vadd.f32 %v1797_v40, %v1796_v47 }
 0x124   :  { %841 = vst.msk [vmem:[#allocation2 + $0x8] sm:$0xff] %vm19_vm0, %v828_v37  ;;  %v782_v61 = vadd.f32 %v781_v52, %v694_v39  ;;  %v813_v0 = vpop.f32.mrf.mxu1 }
 0x125   :  { %849 = vst.msk [vmem:[#allocation2 + $0x48] sm:$0xff] %vm19_vm0, %v836_v50  ;;  %v814_v25 = vadd.f32 %v813_v0, %v726_v53  ;;  %v1221_v54 = vpop.f32.mrf.mxu0 }
 0x126   :  { %v829_v55 = vadd.f32 %v782_v61, %v75_v51  ;;  %v1237_v56 = vpop.f32.mrf.mxu1  ;;  %v1798_v54 = vld [vmem:[#allocation5_spill] sm:$0xff] }
 0x127   :  { %v857_v28 = vld [vmem:[#allocation2] sm:$0xff]  ;;  %v837_v27 = vadd.f32 %v814_v25, %v83_v62  ;;  %v784_v3 = vpop.f32.mrf.mxu0  ;;  %v710_v25 = vadd.f32 %v1174_v38, %v1116_v44 }
 0x128   :  { %v877_v5 = vadd.f32 %v1694_v1, %v857_v28  ;;  %v865_v6 = vld [vmem:[#allocation2 + $0x40] sm:$0xff]  ;;  %842 = vst.msk [vmem:[#allocation2 + $0x10] sm:$0xff] %vm19_vm0, %v829_v55  ;;  %v785_v7 = vadd.f32 %v784_v3, %v697_v57  ;;  %v816_v9 = vpop.f32.mrf.mxu1  ;;  %v1799_v55 = vld [vmem:[#allocation7_spill] sm:$0xff] }
 0x129   :  { %v885_v10 = vadd.f32 %v1694_v1, %v865_v6  ;;  %850 = vst.msk [vmem:[#allocation2 + $0x50] sm:$0xff] %vm19_vm0, %v837_v27  ;;  %v817_v58 = vadd.f32 %v816_v9, %v729_v4  ;;  %v1222_v60 = vpop.f32.mrf.mxu0  ;;  %v1119_v56 = vadd.f32 %v1799_v55, %v1798_v54  ;;  %v1800_v57 = vld [vmem:[#allocation6_spill] sm:$0xff] }
 0x12a   :  { %v890_v12 = vmax.f32 %v877_v5, 0.0  ;;  %v830_v13 = vadd.f32 %v785_v7, %v76_v29  ;;  %v1238_v14 = vpop.f32.mrf.mxu1  ;;  %v1177_v26 = vadd.f32 %v1801_v2, %v1800_v57  ;;  %v79_v5 = vld [vmem:[#allocation2 + $0x30] sm:$0xff] }
 0x12b   :  { %v898_v42 = vmax.f32 %v885_v10, 0.0  ;;  %v858_v15 = vld [vmem:[#allocation2 + $0x8] sm:$0xff]  ;;  %v838_v16 = vadd.f32 %v817_v58, %v84_v8  ;;  %v789_v18 = vpop.f32.mrf.mxu0 }
 0x12c   :  { %v1067_v45 = vpack.c.bf16 %v890_v12, %v890_v12  ;;  %v878_v46 = vadd.f32 %v1694_v1, %v858_v15  ;;  %v866_v30 = vld [vmem:[#allocation2 + $0x48] sm:$0xff]  ;;  %843 = vst.msk [vmem:[#allocation2 + $0x18] sm:$0xff] %vm19_vm0, %v830_v13  ;;  %v790_v31 = vadd.f32 %v789_v18, %v702_v59  ;;  %v821_v33 = vpop.f32.mrf.mxu1  ;;  %v713_v12 = vadd.f32 %v1177_v26, %v1119_v56 }
 0x12d   :  { %v1075_v48 = vpack.c.bf16 %v898_v42, %v898_v42  ;;  %v886_v19 = vadd.f32 %v1694_v1, %v866_v30  ;;  %851 = vst.msk [vmem:[#allocation2 + $0x58] sm:$0xff] %vm19_vm0, %v838_v16  ;;  %v822_v21 = vadd.f32 %v821_v33, %v734_v43  ;;  %v1225_v20 = vpop.f32.mrf.mxu0  ;;  %v80_v42 = vld [vmem:[#allocation2 + $0x38] sm:$0xff] }
 0x12e   :  { %957 = vst.msk [vmem:[%s1789_s3] sm:$0xf] %vm956_vm3, %v1067_v45  ;;  %v891_v34 = vmax.f32 %v878_v46, 0.0  ;;  %v831_v36 = vadd.f32 %v790_v31, %v77_v17  ;;  %v1241_v37 = vpop.f32.mrf.mxu1 }
 0x12f   :  { %965 = vst.msk [vmem:[%s1789_s3 + $0x20] sm:$0xf] %vm956_vm3, %v1075_v48  ;;  %v899_v35 = vmax.f32 %v886_v19, 0.0  ;;  %v859_v39 = vld [vmem:[#allocation2 + $0x10] sm:$0xff]  ;;  %v839_v49 = vadd.f32 %v822_v21, %v85_v32  ;;  %v792_v50 = vpop.f32.mrf.mxu0 }
 0x130   :  { %v1068_v51 = vpack.c.bf16 %v891_v34, %v891_v34  ;;  %v879_v52 = vadd.f32 %v1694_v1, %v859_v39  ;;  %v867_v53 = vld [vmem:[#allocation2 + $0x50] sm:$0xff]  ;;  %844 = vst.msk [vmem:[#allocation2 + $0x20] sm:$0xff] %vm19_vm0, %v831_v36  ;;  %v793_v61 = vadd.f32 %v792_v50, %v705_v22  ;;  %v824_v62 = vpop.f32.mrf.mxu1 }
 0x131   :  { %v1076_v0 = vpack.c.bf16 %v899_v35, %v899_v35  ;;  %v887_v23 = vadd.f32 %v1694_v1, %v867_v53  ;;  %853 = vst.msk [vmem:[#allocation2 + $0x60] sm:$0x3] %vm32_vm2, %v839_v49  ;;  %v1226_v24 = vpop.f32.mrf.mxu0 }
 0x132   :  { %958 = vst.msk [vmem:[%s1789_s3 + $0x4] sm:$0xf] %vm956_vm3, %v1068_v51  ;;  %v892_v28 = vmax.f32 %v879_v52, 0.0  ;;  %v832_v27 = vadd.f32 %v793_v61, %v78_v41  ;;  %v1242_v29 = vpop.f32.mrf.mxu1 }
 0x133   :  { %966 = vst.msk [vmem:[%s1789_s3 + $0x24] sm:$0xf] %vm956_vm3, %v1076_v0  ;;  %v900_v3 = vmax.f32 %v887_v23, 0.0  ;;  %v860_v4 = vld [vmem:[#allocation2 + $0x18] sm:$0xff]  ;;  %v797_v6 = vpop.f32.mrf.mxu0 }
 0x134   :  { %v1069_v7 = vpack.c.bf16 %v892_v28, %v892_v28  ;;  %v880_v8 = vadd.f32 %v1694_v1, %v860_v4  ;;  %v868_v9 = vld [vmem:[#allocation2 + $0x58] sm:$0xff]  ;;  %845 = vst.msk [vmem:[#allocation2 + $0x28] sm:$0xff] %vm19_vm0, %v832_v27  ;;  %v798_v10 = vadd.f32 %v797_v6, %v710_v25 }
 0x135   :  { %v1077_v58 = vpack.c.bf16 %v900_v3, %v900_v3  ;;  %v888_v60 = vadd.f32 %v1694_v1, %v868_v9  ;;  %v1229_v59 = vpop.f32.mrf.mxu0 }
 0x136   :  { %959 = vst.msk [vmem:[%s1789_s3 + $0x8] sm:$0xf] %vm956_vm3, %v1069_v7  ;;  %v893_v63 = vmax.f32 %v880_v8, 0.0  ;;  %v833_v11 = vadd.f32 %v798_v10, %v79_v5 }
 0x137   :  { %967 = vst.msk [vmem:[%s1789_s3 + $0x28] sm:$0xf] %vm956_vm3, %v1077_v58  ;;  %v901_v13 = vmax.f32 %v888_v60, 0.0  ;;  %v861_v14 = vld [vmem:[#allocation2 + $0x20] sm:$0xff]  ;;  %v800_v15 = vpop.f32.mrf.mxu0 }
 0x138   :  { %v1070_v16 = vpack.c.bf16 %v893_v63, %v893_v63  ;;  %v881_v17 = vadd.f32 %v1694_v1, %v861_v14  ;;  %v869_v18 = vld [vmem:[#allocation2 + $0x60] sm:$0x3]  ;;  %846 = vst.msk [vmem:[#allocation2 + $0x30] sm:$0xff] %vm19_vm0, %v833_v11  ;;  %v801_v43 = vadd.f32 %v800_v15, %v713_v12 }
 0x139   :  { %v1078_v44 = vpack.c.bf16 %v901_v13, %v901_v13  ;;  %v889_v45 = vadd.f32 %v1694_v1, %v869_v18  ;;  %v1230_v46 = vpop.f32.mrf.mxu0 }
 0x13a   :  { %960 = vst.msk [vmem:[%s1789_s3 + $0xc] sm:$0xf] %vm956_vm3, %v1070_v16  ;;  %v894_v30 = vmax.f32 %v881_v17, 0.0  ;;  %v834_v31 = vadd.f32 %v801_v43, %v80_v42 }
 0x13b   :  { %968 = vst.msk [vmem:[%s1789_s3 + $0x2c] sm:$0xf] %vm956_vm3, %v1078_v44  ;;  %v902_v32 = vmax.f32 %v889_v45, 0.0  ;;  %v862_v33 = vld [vmem:[#allocation2 + $0x28] sm:$0xff] }
 0x13c   :  { %v1071_v47 = vpack.c.bf16 %v894_v30, %v894_v30  ;;  %v882_v40 = vadd.f32 %v1694_v1, %v862_v33  ;;  %847 = vst.msk [vmem:[#allocation2 + $0x38] sm:$0xff] %vm19_vm0, %v834_v31 }
 0x13d   :  { %v1079_v38 = vpack.c.bf16 %v902_v32, %v902_v32 }
 0x13e   :  { %961 = vst.msk [vmem:[%s1789_s3 + $0x10] sm:$0xf] %vm956_vm3, %v1071_v47  ;;  %v895_v48 = vmax.f32 %v882_v40, 0.0 }
 0x13f   :  { %970 = vst.msk [vmem:[%s1789_s3 + $0x30] sm:$0x1] %vm969_vm4, %v1079_v38  ;;  %v863_v19 = vld [vmem:[#allocation2 + $0x30] sm:$0xff] }
 0x140   :  { %v1072_v21 = vpack.c.bf16 %v895_v48, %v895_v48  ;;  %v883_v20 = vadd.f32 %v1694_v1, %v863_v19 }
 0x142   :  { %962 = vst.msk [vmem:[%s1789_s3 + $0x14] sm:$0xf] %vm956_vm3, %v1072_v21  ;;  %v896_v34 = vmax.f32 %v883_v20, 0.0 }
 0x143   :  { %v864_v36 = vld [vmem:[#allocation2 + $0x38] sm:$0xff] }
 0x144   :  { %v1073_v22 = vpack.c.bf16 %v896_v34, %v896_v34  ;;  %v884_v37 = vadd.f32 %v1694_v1, %v864_v36 }
 0x146   :  { %963 = vst.msk [vmem:[%s1789_s3 + $0x18] sm:$0xf] %vm956_vm3, %v1073_v22  ;;  %v897_v35 = vmax.f32 %v884_v37, 0.0 }
 0x148   :  { %v1074_v39 = vpack.c.bf16 %v897_v35, %v897_v35 }
 0x14a   :  { %964 = vst.msk [vmem:[%s1789_s3 + $0x1c] sm:$0xf] %vm956_vm3, %v1074_v39 }

// kernel: dqn_forward.9
= control target key start
LH: loop header
LB: loop body
LE: loop exit
PB: predicated region body
PF: predicated region fallthrough
CT: control target
= control target key end

     0   :  { %v157_v28 = vlaneseq  ;;  %v1027_v36 = vmov 1966171168   ;;  %s1267_s0 = inlined_call_operand.vmem [shape: bf16[2,1024], index: 0, kind: input, shape index: {}]   ;;  %s1268_s1 = inlined_call_operand.vmem [shape: bf16[1024,6], index: 1, kind: input, shape index: {}]   ;;  %s1269_s2 = inlined_call_operand.vmem [shape: f32[1,6], index: 2, kind: input, shape index: {}]   ;;  %s1270_s3 = inlined_call_operand.hbm [shape: f32[2,6], index: 3, kind: output, shape index: {}]  }
   0x1   :  { %v940_v0 = vld [vmem:[%s1268_s1 + $0x78] sm:$0xff]   ;;  %v944_v4 = vld [vmem:[%s1268_s1 + $0x70] sm:$0xff]   ;;  %v948_v8 = vld [vmem:[%s1268_s1 + $0x68] sm:$0xff]   ;;  %v155_v37 = vunpack.c.l.s4 %v1027_v36 }
   0x2   :  { %v941_v1 = vld [vmem:[%s1268_s1 + $0xf8] sm:$0xff]   ;;  %849 = vmatprep.subr.bf16.mxu0 %v940_v0  ;;  %v945_v5 = vld [vmem:[%s1268_s1 + $0xf0] sm:$0xff]   ;;  %v949_v9 = vld [vmem:[%s1268_s1 + $0xe8] sm:$0xff]   ;;  %v158_v33 = vshrl.u32 %v157_v28, 7 }
   0x3   :  { %v942_v2 = vld [vmem:[%s1268_s1 + $0x38] sm:$0xff]   ;;  %871 = vmatprep.subr.bf16.mxu1 %v941_v1  ;;  %v946_v6 = vld [vmem:[%s1268_s1 + $0x30] sm:$0xff]   ;;  %v950_v10 = vld [vmem:[%s1268_s1 + $0x28] sm:$0xff]   ;;  %v156_v40 = vunpack.c.0.s8 %v155_v37 }
   0x4   :  { %v943_v3 = vld [vmem:[%s1268_s1 + $0xb8] sm:$0xff]   ;;  %850 = vmatpush3.bf16.msra.mxu0 %v942_v2  ;;  %v947_v7 = vld [vmem:[%s1268_s1 + $0xb0] sm:$0xff]   ;;  %v951_v11 = vld [vmem:[%s1268_s1 + $0xa8] sm:$0xff]  }
   0x5   :  { %872 = vmatpush3.bf16.msra.mxu1 %v943_v3  ;;  %851 = vmatprep.subr.bf16.mxu0 %v944_v4  ;;  %v952_v12 = vld [vmem:[%s1268_s1 + $0x60] sm:$0xff]   ;;  %v956_v16 = vld [vmem:[%s1268_s1 + $0x58] sm:$0xff]   ;;  %v960_v20 = vld [vmem:[%s1268_s1 + $0x50] sm:$0xff]   ;;  %v1155_v41 = vsub.s32 %v156_v40, %v158_v33 }
   0x6   :  { %873 = vmatprep.subr.bf16.mxu1 %v945_v5  ;;  %v953_v13 = vld [vmem:[%s1268_s1 + $0xe0] sm:$0xff]   ;;  %v957_v17 = vld [vmem:[%s1268_s1 + $0xd8] sm:$0xff]   ;;  %v961_v21 = vld [vmem:[%s1268_s1 + $0xd0] sm:$0xff]  }
   0x7   :  { %v954_v14 = vld [vmem:[%s1268_s1 + $0x20] sm:$0xff]   ;;  %v958_v18 = vld [vmem:[%s1268_s1 + $0x18] sm:$0xff]   ;;  %v962_v22 = vld [vmem:[%s1268_s1 + $0x10] sm:$0xff]  }
   0x8   :  { %852 = vmatpush3.bf16.msra.mxu0 %v946_v6  ;;  %v955_v15 = vld [vmem:[%s1268_s1 + $0xa0] sm:$0xff]   ;;  %v959_v19 = vld [vmem:[%s1268_s1 + $0x98] sm:$0xff]   ;;  %v963_v23 = vld [vmem:[%s1268_s1 + $0x90] sm:$0xff]  }
   0x9   :  { %874 = vmatpush3.bf16.msra.mxu1 %v947_v7  ;;  %853 = vmatprep.subr.bf16.mxu0 %v948_v8  ;;  %v964_v24 = vld [vmem:[%s1268_s1 + $0x48] sm:$0xff]   ;;  %v968_v29 = vld [vmem:[%s1268_s1 + $0x40] sm:$0xff]   ;;  %v973_v35 = vld [vmem:[%s1268_s1 + $0x178] sm:$0xff]  }
   0xa   :  { %875 = vmatprep.subr.bf16.mxu1 %v949_v9  ;;  %v965_v25 = vld [vmem:[%s1268_s1 + $0xc8] sm:$0xff]   ;;  %v969_v30 = vld [vmem:[%s1268_s1 + $0xc0] sm:$0xff]   ;;  %v974_v38 = vld [vmem:[%s1268_s1 + $0x1f8] sm:$0xff]  }
   0xb   :  { %v966_v26 = vld [vmem:[%s1268_s1 + $0x8] sm:$0xff]   ;;  %v970_v31 = vld [vmem:[%s1268_s1] sm:$0xff]   ;;  %v975_v48 = vld [vmem:[%s1268_s1 + $0x138] sm:$0xff]  }
   0xc   :  { %854 = vmatpush3.bf16.msra.mxu0 %v950_v10  ;;  %v967_v27 = vld [vmem:[%s1268_s1 + $0x88] sm:$0xff]   ;;  %v971_v32 = vld [vmem:[%s1268_s1 + $0x80] sm:$0xff]   ;;  %v977_v51 = vld [vmem:[%s1268_s1 + $0x170] sm:$0xff]  }
   0xd   :  { %876 = vmatpush3.bf16.msra.mxu1 %v951_v11  ;;  %855 = vmatprep.subr.bf16.mxu0 %v952_v12  ;;  %v22_v34 = vld [vmem:[%s1267_s0] sm:$0xff]  ;;  %v976_v53 = vld [vmem:[%s1268_s1 + $0x1b8] sm:$0xff]   ;;  %v978_v54 = vld [vmem:[%s1268_s1 + $0x1f0] sm:$0xff]  }
   0xe   :  { %877 = vmatprep.subr.bf16.mxu1 %v953_v13  ;;  %v153_v39 = vcombine.high %v22_v34, %v22_v34  ;;  %v160_v42 = vrot.slane %v22_v34, %v1155_v41  ;;  %v979_v56 = vld [vmem:[%s1268_s1 + $0x130] sm:$0xff]   ;;  %v981_v57 = vld [vmem:[%s1268_s1 + $0x168] sm:$0xff]   ;;  %v985_v61 = vld [vmem:[%s1268_s1 + $0x160] sm:$0xff]  }
   0xf   :  { %v980_v58 = vld [vmem:[%s1268_s1 + $0x1b0] sm:$0xff]   ;;  %v982_v59 = vld [vmem:[%s1268_s1 + $0x1e8] sm:$0xff]   ;;  %v986_v63 = vld [vmem:[%s1268_s1 + $0x1e0] sm:$0xff]  }
  0x10   :  { %856 = vmatpush3.bf16.msra.mxu0 %v954_v14  ;;  %v1159_v43 = vrot.slane %v153_v39, %v1155_v41  ;;  %v168_v44 = vcombine.high %v160_v42, %v160_v42  ;;  %v176_v45 = vrot.slane %v160_v42, %v1155_v41  ;;  %v983_v60 = vld [vmem:[%s1268_s1 + $0x128] sm:$0xff]   ;;  %v987_v0 = vld [vmem:[%s1268_s1 + $0x120] sm:$0xff]   ;;  %v989_v1 = vld [vmem:[%s1268_s1 + $0x158] sm:$0xff]  }
  0x11   :  { %878 = vmatpush3.bf16.msra.mxu1 %v955_v15  ;;  %857 = vmatprep.subr.bf16.mxu0 %v956_v16  ;;  %v984_v62 = vld [vmem:[%s1268_s1 + $0x1a8] sm:$0xff]   ;;  %v988_v2 = vld [vmem:[%s1268_s1 + $0x1a0] sm:$0xff]   ;;  %v990_v3 = vld [vmem:[%s1268_s1 + $0x1d8] sm:$0xff]  }
  0x12   :  { %879 = vmatprep.subr.bf16.mxu1 %v957_v17  ;;  %v169_v46 = vcombine.high %v1159_v43, %v1159_v43  ;;  %v190_v47 = vrot.slane %v168_v44, %v1155_v41  ;;  %v198_v50 = vcombine.high %v176_v45, %v176_v45  ;;  %v991_v4 = vld [vmem:[%s1268_s1 + $0x118] sm:$0xff]   ;;  %v993_v5 = vld [vmem:[%s1268_s1 + $0x150] sm:$0xff]   ;;  %v997_v9 = vld [vmem:[%s1268_s1 + $0x148] sm:$0xff]  }
  0x13   :  { %v992_v6 = vld [vmem:[%s1268_s1 + $0x198] sm:$0xff]   ;;  %v994_v7 = vld [vmem:[%s1268_s1 + $0x1d0] sm:$0xff]  }
  0x14   :  { %858 = vmatpush3.bf16.msra.mxu0 %v958_v18  ;;  %v197_v49 = vrot.slane %v169_v46, %v1155_v41  ;;  %626 = vmatprep.mubr.bf16.mxu0 %v190_v47  ;;  %v200_v52 = vcombine.high %v190_v47, %v190_v47  ;;  %v995_v8 = vld [vmem:[%s1268_s1 + $0x110] sm:$0xff]  }
  0x15   :  { %880 = vmatpush3.bf16.msra.mxu1 %v959_v19  ;;  %859 = vmatprep.subr.bf16.mxu0 %v960_v20 }
  0x16   :  { %881 = vmatprep.subr.bf16.mxu1 %v961_v21  ;;  %v201_v55 = vcombine.high %v197_v49, %v197_v49  ;;  %666 = vmatprep.mubr.bf16.mxu1 %v200_v52 }
  0x18   :  { %860 = vmatpush3.bf16.msra.mxu0 %v962_v22 }
  0x19   :  { %882 = vmatpush3.bf16.msra.mxu1 %v963_v23  ;;  %861 = vmatprep.subr.bf16.mxu0 %v964_v24 }
  0x1a   :  { %883 = vmatprep.subr.bf16.mxu1 %v965_v25 }
  0x1c   :  { %862 = vmatpush3.bf16.msra.mxu0 %v966_v26 }
  0x1d   :  { %884 = vmatpush3.bf16.msra.mxu1 %v967_v27  ;;  %863 = vmatprep.subr.bf16.mxu0 %v968_v29 }
  0x1e   :  { %885 = vmatprep.subr.bf16.mxu1 %v969_v30 }
  0x20   :  { %864 = vmatpush3.bf16.msra.mxu0 %v970_v31 }
  0x21   :  { %886 = vmatpush3.bf16.msra.mxu1 %v971_v32  ;;  %893 = vmatprep.subr.bf16.mxu0 %v973_v35 }
  0x22   :  { %915 = vmatprep.subr.bf16.mxu1 %v974_v38 }
  0x23   :  { %627 = vmatmul.mubr.bf16.vlgmr.msra.gmra.mxu0 %v176_v45 }
  0x24   :  { %894 = vmatpush3.bf16.msra.mxu0 %v975_v48  ;;  %667 = vmatmul.mubr.bf16.vlgmr.msra.gmra.mxu1 %v198_v50 }
  0x25   :  { %895 = vmatprep.subr.bf16.mxu0 %v977_v51  ;;  %916 = vmatpush3.bf16.msra.mxu1 %v976_v53 }
  0x26   :  { %706 = vmatprep.mubr.bf16.mxu0 %v197_v49  ;;  %917 = vmatprep.subr.bf16.mxu1 %v978_v54 }
  0x27   :  { %746 = vmatprep.mubr.bf16.mxu1 %v201_v55 }
  0x28   :  { %896 = vmatpush3.bf16.msra.mxu0 %v979_v56 }
  0x29   :  { %897 = vmatprep.subr.bf16.mxu0 %v981_v57  ;;  %918 = vmatpush3.bf16.msra.mxu1 %v980_v58 }
  0x2a   :  { %919 = vmatprep.subr.bf16.mxu1 %v982_v59 }
  0x2c   :  { %898 = vmatpush3.bf16.msra.mxu0 %v983_v60 }
  0x2d   :  { %899 = vmatprep.subr.bf16.mxu0 %v985_v61  ;;  %920 = vmatpush3.bf16.msra.mxu1 %v984_v62 }
  0x2e   :  { %921 = vmatprep.subr.bf16.mxu1 %v986_v63 }
  0x30   :  { %900 = vmatpush3.bf16.msra.mxu0 %v987_v0 }
  0x31   :  { %901 = vmatprep.subr.bf16.mxu0 %v989_v1  ;;  %922 = vmatpush3.bf16.msra.mxu1 %v988_v2 }
  0x32   :  { %923 = vmatprep.subr.bf16.mxu1 %v990_v3 }
  0x34   :  { %902 = vmatpush3.bf16.msra.mxu0 %v991_v4 }
  0x35   :  { %903 = vmatprep.subr.bf16.mxu0 %v993_v5 }
  0x36   :  { %8 = vsyncpa [#allocation4], 0  ;;  %924 = vmatpush3.bf16.msra.mxu1 %v992_v6  ;;  %v996_v10 = vld [vmem:[%s1268_s1 + $0x190] sm:$0xff]   ;;  %v998_v11 = vld [vmem:[%s1268_s1 + $0x1c8] sm:$0xff]   ;;  %v183_v17 = vrot.slane %v1159_v43, %v1155_v41  ;;  %vm20_vm0 = vcmask 41984   ;;  %v1028_v20 = vmov 0.0  }
  0x37   :  { %925 = vmatprep.subr.bf16.mxu1 %v994_v7  ;;  %v999_v12 = vld [vmem:[%s1268_s1 + $0x108] sm:$0xff]   ;;  %v1001_v13 = vld [vmem:[%s1268_s1 + $0x140] sm:$0xff]   ;;  %21 = vst.msk [vmem:[#allocation2] sm:$0x3] %vm20_vm0, %v1028_v20  ;;  %s1029_s5 = smov [#allocation3]  }
  0x38   :  { %904 = vmatpush3.bf16.msra.mxu0 %v995_v8  ;;  %v1000_v14 = vld [vmem:[%s1268_s1 + $0x188] sm:$0xff]   ;;  %v1002_v15 = vld [vmem:[%s1268_s1 + $0x1c0] sm:$0xff]   ;;  %v199_v19 = vcombine.high %v183_v17, %v183_v17  ;;  %s776_s6 = sshll.u32 %s1029_s5, 4  ;;  %s777_s6 = int_to_ptr.vmem [resolvable:$true] %s776_s6 }
  0x39   :  { %905 = vmatprep.subr.bf16.mxu0 %v997_v9  ;;  %v1003_v16 = vld [vmem:[%s1268_s1 + $0x100] sm:$0xff]   ;;  %s1005_s7 = scalar_lea.vmem %s777_s6, 32  ;;  %p1010_p1 = scmp.lt.s32.totalorder %s777_s6, %s777_s6 }
  0x3a   :  { %926 = vmatpush3.bf16.msra.mxu1 %v996_v10  ;;  %v1004_v18 = vld [vmem:[%s1268_s1 + $0x180] sm:$0xff]   ;;  %p1006_p0 = scmp.ne.s32.totalorder %s777_s6, %s1005_s7  ;;  %p1011_p2 = scmp.lt.s32.totalorder %s1005_s7, %s1005_s7 }
  0x3b   :  { %927 = vmatprep.subr.bf16.mxu1 %v998_v11  ;;  %v848_v46 = vld [vmem:[%s1269_s2] ss:$0 sm:$0xff] }
  0x3c   :  { %906 = vmatpush3.bf16.msra.mxu0 %v999_v12  ;;  %p1012_p3 = por %p1011_p2, %p1010_p1 }
  0x3d   :  { %907 = vmatprep.subr.bf16.mxu0 %v1001_v13 }
  0x3e   :  { %928 = vmatpush3.bf16.msra.mxu1 %v1000_v14  ;;  %v23_v42 = vld [vmem:[#allocation2] sm:$0x3]  ;;  %p1013_p4 = pnand %p1012_p3, %p1006_p0 }
  0x3f   :  { %929 = vmatprep.subr.bf16.mxu1 %v1002_v15 }
  0x40   :  { %908 = vmatpush3.bf16.msra.mxu0 %v1003_v16 }
  0x42   :  { %930 = vmatpush3.bf16.msra.mxu1 %v1004_v18 }
  0x43   :  { %707 = vmatmul.mubr.bf16.vlgmr.msra.gmra.mxu0 %v183_v17 }
  0x45   :  { %747 = vmatmul.mubr.bf16.vlgmr.msra.gmra.mxu1 %v199_v19 }
  0xe3   :  { %v865_v21 = vpop.f32.mrf.mxu0 }
  0xe4   :  { %v887_v22 = vpop.f32.mrf.mxu1 }
  0xe5   :  { %v866_v23 = vpop.f32.mrf.mxu0 }
  0xe6   :  { %v888_v24 = vpop.f32.mrf.mxu1  ;;  %v867_v29 = vadd.f32 %v866_v23, %v865_v21 }
  0xe7   :  { %v868_v25 = vpop.f32.mrf.mxu0  ;;  %v889_v30 = vadd.f32 %v888_v24, %v887_v22 }
  0xe8   :  { %v890_v26 = vpop.f32.mrf.mxu1 }
  0xe9   :  { %v869_v27 = vpop.f32.mrf.mxu0  ;;  %v669_v34 = vadd.f32 %v889_v30, %v867_v29 }
  0xea   :  { %v891_v28 = vpop.f32.mrf.mxu1 }
 0x103   :  { %v909_v31 = vpop.f32.mrf.mxu0 }
 0x105   :  { %v931_v32 = vpop.f32.mrf.mxu1  ;;  %v910_v33 = vpop.f32.mrf.mxu0 }
 0x106   :  { %v911_v35 = vadd.f32 %v910_v33, %v909_v31 }
 0x107   :  { %v932_v36 = vpop.f32.mrf.mxu1  ;;  %v912_v37 = vpop.f32.mrf.mxu0 }
 0x108   :  { %v709_v38 = vadd.f32 %v911_v35, %v669_v34  ;;  %v933_v39 = vadd.f32 %v932_v36, %v931_v32 }
 0x109   :  { %v934_v40 = vpop.f32.mrf.mxu1  ;;  %v913_v41 = vpop.f32.mrf.mxu0 }
 0x10a   :  { %v749_v43 = vadd.f32 %v933_v39, %v709_v38 }
 0x10b   :  { %v935_v44 = vpop.f32.mrf.mxu1 }
 0x10c   :  { %v754_v45 = vadd.f32 %v749_v43, %v23_v42 }
 0x10e   :  { %756 = vst.msk [vmem:[#allocation2] sm:$0x3] %vm20_vm0, %v754_v45 }
 0x115   :  { %v760_v47 = vld [vmem:[#allocation2] sm:$0x3] }
 0x116   :  { %v768_v48 = vadd.f32 %v848_v46, %v760_v47 }
 0x118   :  { %769 = vst.msk [vmem:[#allocation3] sm:$0x3] %vm20_vm0, %v768_v48 }
 0x119   :  { %1016 = shalt.err (!%p1013_p4)
}
 0x11a   :  { %779 = dma.vmem_to_hbm [thread:$0]  %s777_s6, 32, %s1270_s3, [#allocation4]  }
 0x11b   :  { %1025 = dma.done.wait [#allocation4], 32  }
 0x11c   :  { %1026 = vsyncadd [#allocation4], 4294967264 }
 0x11d   :  { %783 = vsyncpa [#allocation4], 1 }

</bundles_post_ra>
